<compile_context>
chip_gen: v6e
topology: v6e:2x2x1
jax: 0.10.0
libtpu: 0.0.40
codegen_flags: <defaults>
</compile_context>

<pallas_src>
import functools
import math

import jax
import jax.numpy as jnp
import numpy as np
from jax import lax
from jax.experimental import pallas as pl
from jax.experimental.pallas import tpu as pltpu  # noqa: F401  (kept for TPU backend)

D_MODEL = 32
DIM_FF = 64
NUM_HEADS = 4
HEAD_DIM = D_MODEL // NUM_HEADS
LN_EPS = 1e-5  # torch.nn.LayerNorm default

# Module flags (SAM2 defaults)
POS_ENC_AT_ATTN = False
POS_ENC_AT_CROSS_ATTN_QUERIES = False
POS_ENC_AT_CROSS_ATTN_KEYS = True
ACTIVATION = "relu"


# ----------------------------------------------------------------------------
# In-kernel helpers (traced inside the single fused kernel)
# ----------------------------------------------------------------------------
def _layer_norm(x, g, b):
    mean = jnp.mean(x, axis=-1, keepdims=True)
    xc = x - mean
    var = jnp.mean(xc * xc, axis=-1, keepdims=True)
    return xc * lax.rsqrt(var + LN_EPS) * g + b


def _mha_core(qf, kf, vf, wo, bo, *, B, nq, nk, C, H):
    """Multi-head SDPA + output projection, all operands in VMEM/registers.

    qf: (B*nq, C) projected queries;  kf/vf: (B*nk, C) projected keys/values.
    Heads are taken as static lane slices of the packed C dimension, scores use
    a batched dot_general (no k transpose), and the output projection is
    accumulated per head so no concatenate / head transpose is needed.
    """
    Dh = C // H
    scale = 1.0 / math.sqrt(Dh)
    q3 = qf.reshape(B, nq, C)
    k3 = kf.reshape(B, nk, C)
    v3 = vf.reshape(B, nk, C)
    acc = jnp.zeros((B * nq, C), jnp.float32)
    for h in range(H):
        lo, hi = h * Dh, (h + 1) * Dh
        qh = q3[:, :, lo:hi]                                   # (B, nq, Dh)
        kh = k3[:, :, lo:hi]                                   # (B, nk, Dh)
        vh = v3[:, :, lo:hi]                                   # (B, nk, Dh)
        # batched q @ k^T, contracting the last axes (no materialized transpose)
        s = lax.dot_general(qh, kh, (((2,), (2,)), ((0,), (0,))),
                            preferred_element_type=jnp.float32) * scale  # (B,nq,nk)
        m = jnp.max(s, axis=-1, keepdims=True)
        p = jnp.exp(s - m)
        p = p * pl.reciprocal(jnp.sum(p, axis=-1, keepdims=True), approx=False)
        oh = lax.dot_general(p, vh, (((2,), (1,)), ((0,), (0,))),
                             preferred_element_type=jnp.float32)         # (B,nq,Dh)
        acc = acc + jnp.dot(oh.reshape(B * nq, Dh), wo[lo:hi, :],
                            preferred_element_type=jnp.float32)
    return acc + bo


def _activation(x):
    if ACTIVATION == "relu":
        return jnp.maximum(x, 0.0)
    if ACTIVATION == "gelu":
        return jax.nn.gelu(x)
    raise NotImplementedError(ACTIVATION)


# ----------------------------------------------------------------------------
# Fused whole-layer kernel
# ----------------------------------------------------------------------------
def _fused_layer_kernel(
    # activations
    tgt_ref, mem_ref, pos_ref, qpos_ref,
    # self-attention params (fused qkv)
    sa_wqkv_ref, sa_bqkv_ref, sa_wo_ref, sa_bo_ref,
    # cross-attention params (fused qkv)
    ca_wqkv_ref, ca_bqkv_ref, ca_wo_ref, ca_bo_ref,
    # FFN params
    w1_ref, b1_ref, w2_ref, b2_ref,
    # LayerNorm params
    n1g_ref, n1b_ref, n2g_ref, n2b_ref, n3g_ref, n3b_ref,
    # output
    out_ref,
    *, B, Nq, Nk, C, H):

    tgt = tgt_ref[...].reshape(B * Nq, C).astype(jnp.float32)
    mem = mem_ref[...].reshape(B * Nk, C).astype(jnp.float32)
    pos = pos_ref[...].reshape(B * Nk, C).astype(jnp.float32)
    qpos = qpos_ref[...].reshape(B * Nq, C).astype(jnp.float32)

    sa_wqkv = sa_wqkv_ref[...]
    sa_bqkv = sa_bqkv_ref[...]
    ca_wqkv = ca_wqkv_ref[...]
    ca_bqkv = ca_bqkv_ref[...]

    # ---------------- self-attention block ----------------
    tgt2 = _layer_norm(tgt, n1g_ref[...], n1b_ref[...])
    if POS_ENC_AT_ATTN:
        qk_in = tgt2 + qpos
        qf = jnp.dot(qk_in, sa_wqkv[:, :C],
                     preferred_element_type=jnp.float32) + sa_bqkv[:, :C]
        kf = jnp.dot(qk_in, sa_wqkv[:, C:2 * C],
                     preferred_element_type=jnp.float32) + sa_bqkv[:, C:2 * C]
        vf = jnp.dot(tgt2, sa_wqkv[:, 2 * C:],
                     preferred_element_type=jnp.float32) + sa_bqkv[:, 2 * C:]
    else:
        # q = k = v = tgt2  ->  single fused (C, 3C) projection matmul
        qkv = jnp.dot(tgt2, sa_wqkv, preferred_element_type=jnp.float32) + sa_bqkv
        qf, kf, vf = qkv[:, :C], qkv[:, C:2 * C], qkv[:, 2 * C:]
    tgt = tgt + _mha_core(qf, kf, vf, sa_wo_ref[...], sa_bo_ref[...],
                          B=B, nq=Nq, nk=Nq, C=C, H=H)      # dropout1 == identity

    # ---------------- cross-attention block ----------------
    tgt2 = _layer_norm(tgt, n2g_ref[...], n2b_ref[...])
    q_in = tgt2 + qpos if POS_ENC_AT_CROSS_ATTN_QUERIES else tgt2
    k_in = mem + pos if POS_ENC_AT_CROSS_ATTN_KEYS else mem
    qf = jnp.dot(q_in, ca_wqkv[:, :C],
                 preferred_element_type=jnp.float32) + ca_bqkv[:, :C]
    kf = jnp.dot(k_in, ca_wqkv[:, C:2 * C],
                 preferred_element_type=jnp.float32) + ca_bqkv[:, C:2 * C]
    vf = jnp.dot(mem, ca_wqkv[:, 2 * C:],
                 preferred_element_type=jnp.float32) + ca_bqkv[:, 2 * C:]
    tgt = tgt + _mha_core(qf, kf, vf, ca_wo_ref[...], ca_bo_ref[...],
                          B=B, nq=Nq, nk=Nk, C=C, H=H)      # dropout2 == identity

    # ---------------- feed-forward block ----------------
    tgt2 = _layer_norm(tgt, n3g_ref[...], n3b_ref[...])
    hdn = _activation(jnp.dot(tgt2, w1_ref[...],
                              preferred_element_type=jnp.float32) + b1_ref[...])
    ff = jnp.dot(hdn, w2_ref[...], preferred_element_type=jnp.float32) + b2_ref[...]
    tgt = tgt + ff                                          # dropout3 == identity

    out_ref[...] = tgt.reshape(B, Nq, C).astype(out_ref.dtype)
    # TODO(synk): num_k_exclude_rope / RoPEAttention path not modeled (plain Attention used).


# ----------------------------------------------------------------------------
# Host-side wrapper: one pallas_call for the whole layer
# ----------------------------------------------------------------------------
def memory_attention_layer_forward(params, tgt, memory, pos, query_pos):
    B, Nq, C = tgt.shape
    Nk = memory.shape[1]

    def row(v):
        return v.reshape(1, -1)

    sa, ca = params["self_attn"], params["cross_attn"]
    sa_wqkv = jnp.concatenate([sa["wq"], sa["wk"], sa["wv"]], axis=1)       # (C, 3C)
    sa_bqkv = jnp.concatenate([sa["bq"], sa["bk"], sa["bv"]]).reshape(1, -1)
    ca_wqkv = jnp.concatenate([ca["wq"], ca["wk"], ca["wv"]], axis=1)
    ca_bqkv = jnp.concatenate([ca["bq"], ca["bk"], ca["bv"]]).reshape(1, -1)

    kernel = functools.partial(_fused_layer_kernel,
                               B=B, Nq=Nq, Nk=Nk, C=C, H=NUM_HEADS)
    return pl.pallas_call(
        kernel,
        out_shape=jax.ShapeDtypeStruct((B, Nq, C), tgt.dtype),
    )(tgt, memory, pos, query_pos,
      sa_wqkv, sa_bqkv, sa["wo"], row(sa["bo"]),
      ca_wqkv, ca_bqkv, ca["wo"], row(ca["bo"]),
      params["w1"], row(params["b1"]), params["w2"], row(params["b2"]),
      row(params["norm1_g"]), row(params["norm1_b"]),
      row(params["norm2_g"]), row(params["norm2_b"]),
      row(params["norm3_g"]), row(params["norm3_b"]))


# ----------------------------------------------------------------------------
# Pure-JAX reference (for correctness check)
# ----------------------------------------------------------------------------
def _ref_ln(x, g, b):
    m = jnp.mean(x, axis=-1, keepdims=True)
    v = jnp.mean((x - m) ** 2, axis=-1, keepdims=True)
    return (x - m) * jax.lax.rsqrt(v + LN_EPS) * g + b


def _ref_mha(q, k, v, p, num_heads):
    B, Nq, C = q.shape
    Nk = k.shape[1]
    Ci = p["wq"].shape[1]
    Dh = Ci // num_heads
    qf = (q @ p["wq"] + p["bq"]).reshape(B, Nq, num_heads, Dh).transpose(0, 2, 1, 3)
    kf = (k @ p["wk"] + p["bk"]).reshape(B, Nk, num_heads, Dh).transpose(0, 2, 1, 3)
    vf = (v @ p["wv"] + p["bv"]).reshape(B, Nk, num_heads, Dh).transpose(0, 2, 1, 3)
    s = jnp.einsum("bhqd,bhkd->bhqk", qf, kf) / jnp.sqrt(Dh).astype(jnp.float32)
    a = jax.nn.softmax(s, axis=-1)
    o = jnp.einsum("bhqk,bhkd->bhqd", a, vf).transpose(0, 2, 1, 3).reshape(B, Nq, Ci)
    return o @ p["wo"] + p["bo"]


def _ref_forward(params, tgt, memory, pos, query_pos):
    tgt2 = _ref_ln(tgt, params["norm1_g"], params["norm1_b"])
    qk = tgt2 + query_pos if POS_ENC_AT_ATTN else tgt2
    tgt = tgt + _ref_mha(qk, qk, tgt2, params["self_attn"], NUM_HEADS)
    tgt2 = _ref_ln(tgt, params["norm2_g"], params["norm2_b"])
    q = tgt2 + query_pos if POS_ENC_AT_CROSS_ATTN_QUERIES else tgt2
    k = memory + pos if POS_ENC_AT_CROSS_ATTN_KEYS else memory
    tgt = tgt + _ref_mha(q, k, memory, params["cross_attn"], NUM_HEADS)
    tgt2 = _ref_ln(tgt, params["norm3_g"], params["norm3_b"])
    ff = jnp.maximum(tgt2 @ params["w1"] + params["b1"], 0.0) @ params["w2"] + params["b2"]
    return tgt + ff


# ----------------------------------------------------------------------------
# Deterministic parameter construction
# ----------------------------------------------------------------------------
def make_params(key):
    keys = jax.random.split(key, 16)
    it = iter(keys)

    def w(shape, k):
        return (0.05 * jax.random.normal(k, shape)).astype(jnp.float32)

    def attn_params(k):
        ks = jax.random.split(k, 4)
        return {
            "wq": w((D_MODEL, D_MODEL), ks[0]), "bq": jnp.zeros((D_MODEL,), jnp.float32),
            "wk": w((D_MODEL, D_MODEL), ks[1]), "bk": jnp.zeros((D_MODEL,), jnp.float32),
            "wv": w((D_MODEL, D_MODEL), ks[2]), "bv": jnp.zeros((D_MODEL,), jnp.float32),
            "wo": w((D_MODEL, D_MODEL), ks[3]), "bo": jnp.zeros((D_MODEL,), jnp.float32),
        }

    return {
        "self_attn": attn_params(next(it)),
        "cross_attn": attn_params(next(it)),
        "w1": w((D_MODEL, DIM_FF), next(it)), "b1": jnp.zeros((DIM_FF,), jnp.float32),
        "w2": w((DIM_FF, D_MODEL), next(it)), "b2": jnp.zeros((D_MODEL,), jnp.float32),
        "norm1_g": jnp.ones((D_MODEL,), jnp.float32), "norm1_b": jnp.zeros((D_MODEL,), jnp.float32),
        "norm2_g": jnp.ones((D_MODEL,), jnp.float32), "norm2_b": jnp.zeros((D_MODEL,), jnp.float32),
        "norm3_g": jnp.ones((D_MODEL,), jnp.float32), "norm3_b": jnp.zeros((D_MODEL,), jnp.float32),
    }


if __name__ == "__main__":
    key = jax.random.PRNGKey(0)
    k_tgt, k_mem, k_pos, k_qpos, k_par = jax.random.split(key, 5)

    B, NQ, NK = 2, 16, 24
    tgt = jax.random.normal(k_tgt, (B, NQ, D_MODEL), dtype=jnp.float32)
    memory = jax.random.normal(k_mem, (B, NK, D_MODEL), dtype=jnp.float32)
    pos = jax.random.normal(k_pos, (B, NK, D_MODEL), dtype=jnp.float32)
    query_pos = jax.random.normal(k_qpos, (B, NQ, D_MODEL), dtype=jnp.float32)
    params = make_params(k_par)

    fwd = jax.jit(memory_attention_layer_forward)
    out = jax.block_until_ready(fwd(params, tgt, memory, pos, query_pos))

    ref = jax.block_until_ready(_ref_forward(params, tgt, memory, pos, query_pos))
    np.testing.assert_allclose(np.asarray(out), np.asarray(ref), rtol=2e-4, atol=2e-4)

    print("KERNEL_OK")
</pallas_src>

<mosaic_0001>
module attributes {stable_mosaic.version = 11 : i64} {
  func.func @_fused_layer_kernel(%arg0: memref<2x16x32xf32, #tpu.memory_space<vmem>>, %arg1: memref<2x24x32xf32, #tpu.memory_space<vmem>>, %arg2: memref<2x24x32xf32, #tpu.memory_space<vmem>>, %arg3: memref<2x16x32xf32, #tpu.memory_space<vmem>>, %arg4: memref<32x96xf32, #tpu.memory_space<vmem>>, %arg5: memref<1x96xf32, #tpu.memory_space<vmem>>, %arg6: memref<32x32xf32, #tpu.memory_space<vmem>>, %arg7: memref<1x32xf32, #tpu.memory_space<vmem>>, %arg8: memref<32x96xf32, #tpu.memory_space<vmem>>, %arg9: memref<1x96xf32, #tpu.memory_space<vmem>>, %arg10: memref<32x32xf32, #tpu.memory_space<vmem>>, %arg11: memref<1x32xf32, #tpu.memory_space<vmem>>, %arg12: memref<32x64xf32, #tpu.memory_space<vmem>>, %arg13: memref<1x64xf32, #tpu.memory_space<vmem>>, %arg14: memref<64x32xf32, #tpu.memory_space<vmem>>, %arg15: memref<1x32xf32, #tpu.memory_space<vmem>>, %arg16: memref<1x32xf32, #tpu.memory_space<vmem>>, %arg17: memref<1x32xf32, #tpu.memory_space<vmem>>, %arg18: memref<1x32xf32, #tpu.memory_space<vmem>>, %arg19: memref<1x32xf32, #tpu.memory_space<vmem>>, %arg20: memref<1x32xf32, #tpu.memory_space<vmem>>, %arg21: memref<1x32xf32, #tpu.memory_space<vmem>>, %arg22: memref<2x16x32xf32, #tpu.memory_space<vmem>>) attributes {dimension_semantics = [], scalar_prefetch = 0 : i64, scratch_operands = 0 : i64, tpu.core_type = #tpu.core_type<tc>} {
    %c0 = arith.constant 0 : index
    %c0_0 = arith.constant 0 : index
    %c0_1 = arith.constant 0 : index
    %0 = vector.load %arg0[%c0, %c0_0, %c0_1] : memref<2x16x32xf32, #tpu.memory_space<vmem>>, vector<2x16x32xf32>
    %1 = vector.shape_cast %0 : vector<2x16x32xf32> to vector<32x32xf32>
    %c0_2 = arith.constant 0 : index
    %c0_3 = arith.constant 0 : index
    %c0_4 = arith.constant 0 : index
    %2 = vector.load %arg1[%c0_2, %c0_3, %c0_4] : memref<2x24x32xf32, #tpu.memory_space<vmem>>, vector<2x24x32xf32>
    %3 = vector.shape_cast %2 : vector<2x24x32xf32> to vector<48x32xf32>
    %c0_5 = arith.constant 0 : index
    %c0_6 = arith.constant 0 : index
    %c0_7 = arith.constant 0 : index
    %4 = vector.load %arg2[%c0_5, %c0_6, %c0_7] : memref<2x24x32xf32, #tpu.memory_space<vmem>>, vector<2x24x32xf32>
    %5 = vector.shape_cast %4 : vector<2x24x32xf32> to vector<48x32xf32>
    %c0_8 = arith.constant 0 : index
    %c0_9 = arith.constant 0 : index
    %6 = vector.load %arg4[%c0_8, %c0_9] : memref<32x96xf32, #tpu.memory_space<vmem>>, vector<32x96xf32>
    %c0_10 = arith.constant 0 : index
    %c0_11 = arith.constant 0 : index
    %7 = vector.load %arg5[%c0_10, %c0_11] : memref<1x96xf32, #tpu.memory_space<vmem>>, vector<1x96xf32>
    %c0_12 = arith.constant 0 : index
    %c0_13 = arith.constant 0 : index
    %8 = vector.load %arg8[%c0_12, %c0_13] : memref<32x96xf32, #tpu.memory_space<vmem>>, vector<32x96xf32>
    %c0_14 = arith.constant 0 : index
    %c0_15 = arith.constant 0 : index
    %9 = vector.load %arg9[%c0_14, %c0_15] : memref<1x96xf32, #tpu.memory_space<vmem>>, vector<1x96xf32>
    %c0_16 = arith.constant 0 : index
    %c0_17 = arith.constant 0 : index
    %10 = vector.load %arg16[%c0_16, %c0_17] : memref<1x32xf32, #tpu.memory_space<vmem>>, vector<1x32xf32>
    %c0_18 = arith.constant 0 : index
    %c0_19 = arith.constant 0 : index
    %11 = vector.load %arg17[%c0_18, %c0_19] : memref<1x32xf32, #tpu.memory_space<vmem>>, vector<1x32xf32>
    %cst = arith.constant dense<0.000000e+00> : vector<32xf32>
    %12 = vector.multi_reduction <add>, %1, %cst [1] : vector<32x32xf32> to vector<32xf32>
    %13 = vector.shape_cast %12 : vector<32xf32> to vector<32x1xf32>
    %cst_20 = arith.constant 3.200000e+01 : f32
    %14 = vector.broadcast %cst_20 : f32 to vector<32x1xf32>
    %15 = arith.divf %13, %14 : vector<32x1xf32>
    %16 = vector.broadcast %15 : vector<32x1xf32> to vector<32x32xf32>
    %17 = arith.subf %1, %16 : vector<32x32xf32>
    %18 = arith.mulf %17, %17 : vector<32x32xf32>
    %cst_21 = arith.constant dense<0.000000e+00> : vector<32xf32>
    %19 = vector.multi_reduction <add>, %18, %cst_21 [1] : vector<32x32xf32> to vector<32xf32>
    %20 = vector.shape_cast %19 : vector<32xf32> to vector<32x1xf32>
    %cst_22 = arith.constant 3.200000e+01 : f32
    %21 = vector.broadcast %cst_22 : f32 to vector<32x1xf32>
    %22 = arith.divf %20, %21 : vector<32x1xf32>
    %cst_23 = arith.constant 9.99999974E-6 : f32
    %23 = vector.broadcast %cst_23 : f32 to vector<32x1xf32>
    %24 = arith.addf %22, %23 : vector<32x1xf32>
    %25 = math.rsqrt %24 : vector<32x1xf32>
    %26 = vector.broadcast %25 : vector<32x1xf32> to vector<32x32xf32>
    %27 = arith.mulf %17, %26 : vector<32x32xf32>
    %28 = vector.broadcast %10 : vector<1x32xf32> to vector<32x32xf32>
    %29 = arith.mulf %27, %28 : vector<32x32xf32>
    %30 = vector.broadcast %11 : vector<1x32xf32> to vector<32x32xf32>
    %31 = arith.addf %29, %30 : vector<32x32xf32>
    %cst_24 = arith.constant dense<0.000000e+00> : vector<32x96xf32>
    %32 = tpu.matmul %31, %6, %cst_24 {dimension_numbers = #tpu.dot_dimension_numbers<[1], [0], [0], [1], [0, 0, 1, 1], [], []>} : vector<32x32xf32>, vector<32x96xf32>, vector<32x96xf32> -> vector<32x96xf32>
    %33 = vector.broadcast %7 : vector<1x96xf32> to vector<32x96xf32>
    %34 = arith.addf %32, %33 : vector<32x96xf32>
    %35 = vector.extract_strided_slice %34 {offsets = [0, 0], sizes = [32, 32], strides = [1, 1]} : vector<32x96xf32> to vector<32x32xf32>
    %36 = vector.extract_strided_slice %34 {offsets = [0, 32], sizes = [32, 32], strides = [1, 1]} : vector<32x96xf32> to vector<32x32xf32>
    %37 = vector.extract_strided_slice %34 {offsets = [0, 64], sizes = [32, 32], strides = [1, 1]} : vector<32x96xf32> to vector<32x32xf32>
    %c0_25 = arith.constant 0 : index
    %c0_26 = arith.constant 0 : index
    %38 = vector.load %arg6[%c0_25, %c0_26] : memref<32x32xf32, #tpu.memory_space<vmem>>, vector<32x32xf32>
    %c0_27 = arith.constant 0 : index
    %c0_28 = arith.constant 0 : index
    %39 = vector.load %arg7[%c0_27, %c0_28] : memref<1x32xf32, #tpu.memory_space<vmem>>, vector<1x32xf32>
    %40 = vector.shape_cast %35 : vector<32x32xf32> to vector<2x16x32xf32>
    %41 = vector.shape_cast %36 : vector<32x32xf32> to vector<2x16x32xf32>
    %42 = vector.shape_cast %37 : vector<32x32xf32> to vector<2x16x32xf32>
    %cst_29 = arith.constant 0.000000e+00 : f32
    %43 = vector.broadcast %cst_29 : f32 to vector<32x32xf32>
    %44 = vector.extract_strided_slice %40 {offsets = [0, 0, 0], sizes = [2, 16, 8], strides = [1, 1, 1]} : vector<2x16x32xf32> to vector<2x16x8xf32>
    %45 = vector.extract_strided_slice %41 {offsets = [0, 0, 0], sizes = [2, 16, 8], strides = [1, 1, 1]} : vector<2x16x32xf32> to vector<2x16x8xf32>
    %46 = vector.extract_strided_slice %42 {offsets = [0, 0, 0], sizes = [2, 16, 8], strides = [1, 1, 1]} : vector<2x16x32xf32> to vector<2x16x8xf32>
    %cst_30 = arith.constant dense<0.000000e+00> : vector<2x16x16xf32>
    %47 = tpu.matmul %44, %45, %cst_30 {dimension_numbers = #tpu.dot_dimension_numbers<[2], [2], [1], [1], [0, 0, 0, 1, 1, 1], [0], [0]>} : vector<2x16x8xf32>, vector<2x16x8xf32>, vector<2x16x16xf32> -> vector<2x16x16xf32>
    %cst_31 = arith.constant 0.353553385 : f32
    %48 = vector.broadcast %cst_31 : f32 to vector<2x16x16xf32>
    %49 = arith.mulf %47, %48 : vector<2x16x16xf32>
    %cst_32 = arith.constant dense<0xFF800000> : vector<2x16xf32>
    %50 = vector.multi_reduction <maximumf>, %49, %cst_32 [2] : vector<2x16x16xf32> to vector<2x16xf32>
    %51 = vector.shape_cast %50 : vector<2x16xf32> to vector<2x16x1xf32>
    %52 = vector.broadcast %51 : vector<2x16x1xf32> to vector<2x16x16xf32>
    %53 = arith.subf %49, %52 : vector<2x16x16xf32>
    %54 = math.exp %53 : vector<2x16x16xf32>
    %cst_33 = arith.constant dense<0.000000e+00> : vector<2x16xf32>
    %55 = vector.multi_reduction <add>, %54, %cst_33 [2] : vector<2x16x16xf32> to vector<2x16xf32>
    %56 = vector.shape_cast %55 : vector<2x16xf32> to vector<2x16x1xf32>
    %57 = tpu.reciprocal %56 : vector<2x16x1xf32> -> vector<2x16x1xf32>
    %58 = vector.broadcast %57 : vector<2x16x1xf32> to vector<2x16x16xf32>
    %59 = arith.mulf %54, %58 : vector<2x16x16xf32>
    %cst_34 = arith.constant dense<0.000000e+00> : vector<2x16x8xf32>
    %60 = tpu.matmul %59, %46, %cst_34 {dimension_numbers = #tpu.dot_dimension_numbers<[2], [1], [1], [2], [0, 0, 0, 1, 1, 2], [0], [0]>} : vector<2x16x16xf32>, vector<2x16x8xf32>, vector<2x16x8xf32> -> vector<2x16x8xf32>
    %61 = vector.shape_cast %60 : vector<2x16x8xf32> to vector<32x8xf32>
    %62 = vector.extract_strided_slice %38 {offsets = [0, 0], sizes = [8, 32], strides = [1, 1]} : vector<32x32xf32> to vector<8x32xf32>
    %cst_35 = arith.constant dense<0.000000e+00> : vector<32x32xf32>
    %63 = tpu.matmul %61, %62, %cst_35 {dimension_numbers = #tpu.dot_dimension_numbers<[1], [0], [0], [1], [0, 0, 1, 1], [], []>} : vector<32x8xf32>, vector<8x32xf32>, vector<32x32xf32> -> vector<32x32xf32>
    %64 = arith.addf %43, %63 : vector<32x32xf32>
    %65 = vector.extract_strided_slice %40 {offsets = [0, 0, 8], sizes = [2, 16, 8], strides = [1, 1, 1]} : vector<2x16x32xf32> to vector<2x16x8xf32>
    %66 = vector.extract_strided_slice %41 {offsets = [0, 0, 8], sizes = [2, 16, 8], strides = [1, 1, 1]} : vector<2x16x32xf32> to vector<2x16x8xf32>
    %67 = vector.extract_strided_slice %42 {offsets = [0, 0, 8], sizes = [2, 16, 8], strides = [1, 1, 1]} : vector<2x16x32xf32> to vector<2x16x8xf32>
    %cst_36 = arith.constant dense<0.000000e+00> : vector<2x16x16xf32>
    %68 = tpu.matmul %65, %66, %cst_36 {dimension_numbers = #tpu.dot_dimension_numbers<[2], [2], [1], [1], [0, 0, 0, 1, 1, 1], [0], [0]>} : vector<2x16x8xf32>, vector<2x16x8xf32>, vector<2x16x16xf32> -> vector<2x16x16xf32>
    %cst_37 = arith.constant 0.353553385 : f32
    %69 = vector.broadcast %cst_37 : f32 to vector<2x16x16xf32>
    %70 = arith.mulf %68, %69 : vector<2x16x16xf32>
    %cst_38 = arith.constant dense<0xFF800000> : vector<2x16xf32>
    %71 = vector.multi_reduction <maximumf>, %70, %cst_38 [2] : vector<2x16x16xf32> to vector<2x16xf32>
    %72 = vector.shape_cast %71 : vector<2x16xf32> to vector<2x16x1xf32>
    %73 = vector.broadcast %72 : vector<2x16x1xf32> to vector<2x16x16xf32>
    %74 = arith.subf %70, %73 : vector<2x16x16xf32>
    %75 = math.exp %74 : vector<2x16x16xf32>
    %cst_39 = arith.constant dense<0.000000e+00> : vector<2x16xf32>
    %76 = vector.multi_reduction <add>, %75, %cst_39 [2] : vector<2x16x16xf32> to vector<2x16xf32>
    %77 = vector.shape_cast %76 : vector<2x16xf32> to vector<2x16x1xf32>
    %78 = tpu.reciprocal %77 : vector<2x16x1xf32> -> vector<2x16x1xf32>
    %79 = vector.broadcast %78 : vector<2x16x1xf32> to vector<2x16x16xf32>
    %80 = arith.mulf %75, %79 : vector<2x16x16xf32>
    %cst_40 = arith.constant dense<0.000000e+00> : vector<2x16x8xf32>
    %81 = tpu.matmul %80, %67, %cst_40 {dimension_numbers = #tpu.dot_dimension_numbers<[2], [1], [1], [2], [0, 0, 0, 1, 1, 2], [0], [0]>} : vector<2x16x16xf32>, vector<2x16x8xf32>, vector<2x16x8xf32> -> vector<2x16x8xf32>
    %82 = vector.shape_cast %81 : vector<2x16x8xf32> to vector<32x8xf32>
    %83 = vector.extract_strided_slice %38 {offsets = [8, 0], sizes = [8, 32], strides = [1, 1]} : vector<32x32xf32> to vector<8x32xf32>
    %cst_41 = arith.constant dense<0.000000e+00> : vector<32x32xf32>
    %84 = tpu.matmul %82, %83, %cst_41 {dimension_numbers = #tpu.dot_dimension_numbers<[1], [0], [0], [1], [0, 0, 1, 1], [], []>} : vector<32x8xf32>, vector<8x32xf32>, vector<32x32xf32> -> vector<32x32xf32>
    %85 = arith.addf %64, %84 : vector<32x32xf32>
    %86 = vector.extract_strided_slice %40 {offsets = [0, 0, 16], sizes = [2, 16, 8], strides = [1, 1, 1]} : vector<2x16x32xf32> to vector<2x16x8xf32>
    %87 = vector.extract_strided_slice %41 {offsets = [0, 0, 16], sizes = [2, 16, 8], strides = [1, 1, 1]} : vector<2x16x32xf32> to vector<2x16x8xf32>
    %88 = vector.extract_strided_slice %42 {offsets = [0, 0, 16], sizes = [2, 16, 8], strides = [1, 1, 1]} : vector<2x16x32xf32> to vector<2x16x8xf32>
    %cst_42 = arith.constant dense<0.000000e+00> : vector<2x16x16xf32>
    %89 = tpu.matmul %86, %87, %cst_42 {dimension_numbers = #tpu.dot_dimension_numbers<[2], [2], [1], [1], [0, 0, 0, 1, 1, 1], [0], [0]>} : vector<2x16x8xf32>, vector<2x16x8xf32>, vector<2x16x16xf32> -> vector<2x16x16xf32>
    %cst_43 = arith.constant 0.353553385 : f32
    %90 = vector.broadcast %cst_43 : f32 to vector<2x16x16xf32>
    %91 = arith.mulf %89, %90 : vector<2x16x16xf32>
    %cst_44 = arith.constant dense<0xFF800000> : vector<2x16xf32>
    %92 = vector.multi_reduction <maximumf>, %91, %cst_44 [2] : vector<2x16x16xf32> to vector<2x16xf32>
    %93 = vector.shape_cast %92 : vector<2x16xf32> to vector<2x16x1xf32>
    %94 = vector.broadcast %93 : vector<2x16x1xf32> to vector<2x16x16xf32>
    %95 = arith.subf %91, %94 : vector<2x16x16xf32>
    %96 = math.exp %95 : vector<2x16x16xf32>
    %cst_45 = arith.constant dense<0.000000e+00> : vector<2x16xf32>
    %97 = vector.multi_reduction <add>, %96, %cst_45 [2] : vector<2x16x16xf32> to vector<2x16xf32>
    %98 = vector.shape_cast %97 : vector<2x16xf32> to vector<2x16x1xf32>
    %99 = tpu.reciprocal %98 : vector<2x16x1xf32> -> vector<2x16x1xf32>
    %100 = vector.broadcast %99 : vector<2x16x1xf32> to vector<2x16x16xf32>
    %101 = arith.mulf %96, %100 : vector<2x16x16xf32>
    %cst_46 = arith.constant dense<0.000000e+00> : vector<2x16x8xf32>
    %102 = tpu.matmul %101, %88, %cst_46 {dimension_numbers = #tpu.dot_dimension_numbers<[2], [1], [1], [2], [0, 0, 0, 1, 1, 2], [0], [0]>} : vector<2x16x16xf32>, vector<2x16x8xf32>, vector<2x16x8xf32> -> vector<2x16x8xf32>
    %103 = vector.shape_cast %102 : vector<2x16x8xf32> to vector<32x8xf32>
    %104 = vector.extract_strided_slice %38 {offsets = [16, 0], sizes = [8, 32], strides = [1, 1]} : vector<32x32xf32> to vector<8x32xf32>
    %cst_47 = arith.constant dense<0.000000e+00> : vector<32x32xf32>
    %105 = tpu.matmul %103, %104, %cst_47 {dimension_numbers = #tpu.dot_dimension_numbers<[1], [0], [0], [1], [0, 0, 1, 1], [], []>} : vector<32x8xf32>, vector<8x32xf32>, vector<32x32xf32> -> vector<32x32xf32>
    %106 = arith.addf %85, %105 : vector<32x32xf32>
    %107 = vector.extract_strided_slice %40 {offsets = [0, 0, 24], sizes = [2, 16, 8], strides = [1, 1, 1]} : vector<2x16x32xf32> to vector<2x16x8xf32>
    %108 = vector.extract_strided_slice %41 {offsets = [0, 0, 24], sizes = [2, 16, 8], strides = [1, 1, 1]} : vector<2x16x32xf32> to vector<2x16x8xf32>
    %109 = vector.extract_strided_slice %42 {offsets = [0, 0, 24], sizes = [2, 16, 8], strides = [1, 1, 1]} : vector<2x16x32xf32> to vector<2x16x8xf32>
    %cst_48 = arith.constant dense<0.000000e+00> : vector<2x16x16xf32>
    %110 = tpu.matmul %107, %108, %cst_48 {dimension_numbers = #tpu.dot_dimension_numbers<[2], [2], [1], [1], [0, 0, 0, 1, 1, 1], [0], [0]>} : vector<2x16x8xf32>, vector<2x16x8xf32>, vector<2x16x16xf32> -> vector<2x16x16xf32>
    %cst_49 = arith.constant 0.353553385 : f32
    %111 = vector.broadcast %cst_49 : f32 to vector<2x16x16xf32>
    %112 = arith.mulf %110, %111 : vector<2x16x16xf32>
    %cst_50 = arith.constant dense<0xFF800000> : vector<2x16xf32>
    %113 = vector.multi_reduction <maximumf>, %112, %cst_50 [2] : vector<2x16x16xf32> to vector<2x16xf32>
    %114 = vector.shape_cast %113 : vector<2x16xf32> to vector<2x16x1xf32>
    %115 = vector.broadcast %114 : vector<2x16x1xf32> to vector<2x16x16xf32>
    %116 = arith.subf %112, %115 : vector<2x16x16xf32>
    %117 = math.exp %116 : vector<2x16x16xf32>
    %cst_51 = arith.constant dense<0.000000e+00> : vector<2x16xf32>
    %118 = vector.multi_reduction <add>, %117, %cst_51 [2] : vector<2x16x16xf32> to vector<2x16xf32>
    %119 = vector.shape_cast %118 : vector<2x16xf32> to vector<2x16x1xf32>
    %120 = tpu.reciprocal %119 : vector<2x16x1xf32> -> vector<2x16x1xf32>
    %121 = vector.broadcast %120 : vector<2x16x1xf32> to vector<2x16x16xf32>
    %122 = arith.mulf %117, %121 : vector<2x16x16xf32>
    %cst_52 = arith.constant dense<0.000000e+00> : vector<2x16x8xf32>
    %123 = tpu.matmul %122, %109, %cst_52 {dimension_numbers = #tpu.dot_dimension_numbers<[2], [1], [1], [2], [0, 0, 0, 1, 1, 2], [0], [0]>} : vector<2x16x16xf32>, vector<2x16x8xf32>, vector<2x16x8xf32> -> vector<2x16x8xf32>
    %124 = vector.shape_cast %123 : vector<2x16x8xf32> to vector<32x8xf32>
    %125 = vector.extract_strided_slice %38 {offsets = [24, 0], sizes = [8, 32], strides = [1, 1]} : vector<32x32xf32> to vector<8x32xf32>
    %cst_53 = arith.constant dense<0.000000e+00> : vector<32x32xf32>
    %126 = tpu.matmul %124, %125, %cst_53 {dimension_numbers = #tpu.dot_dimension_numbers<[1], [0], [0], [1], [0, 0, 1, 1], [], []>} : vector<32x8xf32>, vector<8x32xf32>, vector<32x32xf32> -> vector<32x32xf32>
    %127 = arith.addf %106, %126 : vector<32x32xf32>
    %128 = vector.broadcast %39 : vector<1x32xf32> to vector<32x32xf32>
    %129 = arith.addf %127, %128 : vector<32x32xf32>
    %130 = arith.addf %1, %129 : vector<32x32xf32>
    %c0_54 = arith.constant 0 : index
    %c0_55 = arith.constant 0 : index
    %131 = vector.load %arg18[%c0_54, %c0_55] : memref<1x32xf32, #tpu.memory_space<vmem>>, vector<1x32xf32>
    %c0_56 = arith.constant 0 : index
    %c0_57 = arith.constant 0 : index
    %132 = vector.load %arg19[%c0_56, %c0_57] : memref<1x32xf32, #tpu.memory_space<vmem>>, vector<1x32xf32>
    %cst_58 = arith.constant dense<0.000000e+00> : vector<32xf32>
    %133 = vector.multi_reduction <add>, %130, %cst_58 [1] : vector<32x32xf32> to vector<32xf32>
    %134 = vector.shape_cast %133 : vector<32xf32> to vector<32x1xf32>
    %cst_59 = arith.constant 3.200000e+01 : f32
    %135 = vector.broadcast %cst_59 : f32 to vector<32x1xf32>
    %136 = arith.divf %134, %135 : vector<32x1xf32>
    %137 = vector.broadcast %136 : vector<32x1xf32> to vector<32x32xf32>
    %138 = arith.subf %130, %137 : vector<32x32xf32>
    %139 = arith.mulf %138, %138 : vector<32x32xf32>
    %cst_60 = arith.constant dense<0.000000e+00> : vector<32xf32>
    %140 = vector.multi_reduction <add>, %139, %cst_60 [1] : vector<32x32xf32> to vector<32xf32>
    %141 = vector.shape_cast %140 : vector<32xf32> to vector<32x1xf32>
    %cst_61 = arith.constant 3.200000e+01 : f32
    %142 = vector.broadcast %cst_61 : f32 to vector<32x1xf32>
    %143 = arith.divf %141, %142 : vector<32x1xf32>
    %cst_62 = arith.constant 9.99999974E-6 : f32
    %144 = vector.broadcast %cst_62 : f32 to vector<32x1xf32>
    %145 = arith.addf %143, %144 : vector<32x1xf32>
    %146 = math.rsqrt %145 : vector<32x1xf32>
    %147 = vector.broadcast %146 : vector<32x1xf32> to vector<32x32xf32>
    %148 = arith.mulf %138, %147 : vector<32x32xf32>
    %149 = vector.broadcast %131 : vector<1x32xf32> to vector<32x32xf32>
    %150 = arith.mulf %148, %149 : vector<32x32xf32>
    %151 = vector.broadcast %132 : vector<1x32xf32> to vector<32x32xf32>
    %152 = arith.addf %150, %151 : vector<32x32xf32>
    %153 = arith.addf %3, %5 : vector<48x32xf32>
    %154 = vector.extract_strided_slice %8 {offsets = [0, 0], sizes = [32, 32], strides = [1, 1]} : vector<32x96xf32> to vector<32x32xf32>
    %cst_63 = arith.constant dense<0.000000e+00> : vector<32x32xf32>
    %155 = tpu.matmul %152, %154, %cst_63 {dimension_numbers = #tpu.dot_dimension_numbers<[1], [0], [0], [1], [0, 0, 1, 1], [], []>} : vector<32x32xf32>, vector<32x32xf32>, vector<32x32xf32> -> vector<32x32xf32>
    %156 = vector.extract_strided_slice %9 {offsets = [0, 0], sizes = [1, 32], strides = [1, 1]} : vector<1x96xf32> to vector<1x32xf32>
    %157 = vector.broadcast %156 : vector<1x32xf32> to vector<32x32xf32>
    %158 = arith.addf %155, %157 : vector<32x32xf32>
    %159 = vector.extract_strided_slice %8 {offsets = [0, 32], sizes = [32, 32], strides = [1, 1]} : vector<32x96xf32> to vector<32x32xf32>
    %cst_64 = arith.constant dense<0.000000e+00> : vector<48x32xf32>
    %160 = tpu.matmul %153, %159, %cst_64 {dimension_numbers = #tpu.dot_dimension_numbers<[1], [0], [0], [1], [0, 0, 1, 1], [], []>} : vector<48x32xf32>, vector<32x32xf32>, vector<48x32xf32> -> vector<48x32xf32>
    %161 = vector.extract_strided_slice %9 {offsets = [0, 32], sizes = [1, 32], strides = [1, 1]} : vector<1x96xf32> to vector<1x32xf32>
    %162 = vector.broadcast %161 : vector<1x32xf32> to vector<48x32xf32>
    %163 = arith.addf %160, %162 : vector<48x32xf32>
    %164 = vector.extract_strided_slice %8 {offsets = [0, 64], sizes = [32, 32], strides = [1, 1]} : vector<32x96xf32> to vector<32x32xf32>
    %cst_65 = arith.constant dense<0.000000e+00> : vector<48x32xf32>
    %165 = tpu.matmul %3, %164, %cst_65 {dimension_numbers = #tpu.dot_dimension_numbers<[1], [0], [0], [1], [0, 0, 1, 1], [], []>} : vector<48x32xf32>, vector<32x32xf32>, vector<48x32xf32> -> vector<48x32xf32>
    %166 = vector.extract_strided_slice %9 {offsets = [0, 64], sizes = [1, 32], strides = [1, 1]} : vector<1x96xf32> to vector<1x32xf32>
    %167 = vector.broadcast %166 : vector<1x32xf32> to vector<48x32xf32>
    %168 = arith.addf %165, %167 : vector<48x32xf32>
    %c0_66 = arith.constant 0 : index
    %c0_67 = arith.constant 0 : index
    %169 = vector.load %arg10[%c0_66, %c0_67] : memref<32x32xf32, #tpu.memory_space<vmem>>, vector<32x32xf32>
    %c0_68 = arith.constant 0 : index
    %c0_69 = arith.constant 0 : index
    %170 = vector.load %arg11[%c0_68, %c0_69] : memref<1x32xf32, #tpu.memory_space<vmem>>, vector<1x32xf32>
    %171 = vector.shape_cast %158 : vector<32x32xf32> to vector<2x16x32xf32>
    %172 = vector.shape_cast %163 : vector<48x32xf32> to vector<2x24x32xf32>
    %173 = vector.shape_cast %168 : vector<48x32xf32> to vector<2x24x32xf32>
    %cst_70 = arith.constant 0.000000e+00 : f32
    %174 = vector.broadcast %cst_70 : f32 to vector<32x32xf32>
    %175 = vector.extract_strided_slice %171 {offsets = [0, 0, 0], sizes = [2, 16, 8], strides = [1, 1, 1]} : vector<2x16x32xf32> to vector<2x16x8xf32>
    %176 = vector.extract_strided_slice %172 {offsets = [0, 0, 0], sizes = [2, 24, 8], strides = [1, 1, 1]} : vector<2x24x32xf32> to vector<2x24x8xf32>
    %177 = vector.extract_strided_slice %173 {offsets = [0, 0, 0], sizes = [2, 24, 8], strides = [1, 1, 1]} : vector<2x24x32xf32> to vector<2x24x8xf32>
    %cst_71 = arith.constant dense<0.000000e+00> : vector<2x16x24xf32>
    %178 = tpu.matmul %175, %176, %cst_71 {dimension_numbers = #tpu.dot_dimension_numbers<[2], [2], [1], [1], [0, 0, 0, 1, 1, 1], [0], [0]>} : vector<2x16x8xf32>, vector<2x24x8xf32>, vector<2x16x24xf32> -> vector<2x16x24xf32>
    %cst_72 = arith.constant 0.353553385 : f32
    %179 = vector.broadcast %cst_72 : f32 to vector<2x16x24xf32>
    %180 = arith.mulf %178, %179 : vector<2x16x24xf32>
    %cst_73 = arith.constant dense<0xFF800000> : vector<2x16xf32>
    %181 = vector.multi_reduction <maximumf>, %180, %cst_73 [2] : vector<2x16x24xf32> to vector<2x16xf32>
    %182 = vector.shape_cast %181 : vector<2x16xf32> to vector<2x16x1xf32>
    %183 = vector.broadcast %182 : vector<2x16x1xf32> to vector<2x16x24xf32>
    %184 = arith.subf %180, %183 : vector<2x16x24xf32>
    %185 = math.exp %184 : vector<2x16x24xf32>
    %cst_74 = arith.constant dense<0.000000e+00> : vector<2x16xf32>
    %186 = vector.multi_reduction <add>, %185, %cst_74 [2] : vector<2x16x24xf32> to vector<2x16xf32>
    %187 = vector.shape_cast %186 : vector<2x16xf32> to vector<2x16x1xf32>
    %188 = tpu.reciprocal %187 : vector<2x16x1xf32> -> vector<2x16x1xf32>
    %189 = vector.broadcast %188 : vector<2x16x1xf32> to vector<2x16x24xf32>
    %190 = arith.mulf %185, %189 : vector<2x16x24xf32>
    %cst_75 = arith.constant dense<0.000000e+00> : vector<2x16x8xf32>
    %191 = tpu.matmul %190, %177, %cst_75 {dimension_numbers = #tpu.dot_dimension_numbers<[2], [1], [1], [2], [0, 0, 0, 1, 1, 2], [0], [0]>} : vector<2x16x24xf32>, vector<2x24x8xf32>, vector<2x16x8xf32> -> vector<2x16x8xf32>
    %192 = vector.shape_cast %191 : vector<2x16x8xf32> to vector<32x8xf32>
    %193 = vector.extract_strided_slice %169 {offsets = [0, 0], sizes = [8, 32], strides = [1, 1]} : vector<32x32xf32> to vector<8x32xf32>
    %cst_76 = arith.constant dense<0.000000e+00> : vector<32x32xf32>
    %194 = tpu.matmul %192, %193, %cst_76 {dimension_numbers = #tpu.dot_dimension_numbers<[1], [0], [0], [1], [0, 0, 1, 1], [], []>} : vector<32x8xf32>, vector<8x32xf32>, vector<32x32xf32> -> vector<32x32xf32>
    %195 = arith.addf %174, %194 : vector<32x32xf32>
    %196 = vector.extract_strided_slice %171 {offsets = [0, 0, 8], sizes = [2, 16, 8], strides = [1, 1, 1]} : vector<2x16x32xf32> to vector<2x16x8xf32>
    %197 = vector.extract_strided_slice %172 {offsets = [0, 0, 8], sizes = [2, 24, 8], strides = [1, 1, 1]} : vector<2x24x32xf32> to vector<2x24x8xf32>
    %198 = vector.extract_strided_slice %173 {offsets = [0, 0, 8], sizes = [2, 24, 8], strides = [1, 1, 1]} : vector<2x24x32xf32> to vector<2x24x8xf32>
    %cst_77 = arith.constant dense<0.000000e+00> : vector<2x16x24xf32>
    %199 = tpu.matmul %196, %197, %cst_77 {dimension_numbers = #tpu.dot_dimension_numbers<[2], [2], [1], [1], [0, 0, 0, 1, 1, 1], [0], [0]>} : vector<2x16x8xf32>, vector<2x24x8xf32>, vector<2x16x24xf32> -> vector<2x16x24xf32>
    %cst_78 = arith.constant 0.353553385 : f32
    %200 = vector.broadcast %cst_78 : f32 to vector<2x16x24xf32>
    %201 = arith.mulf %199, %200 : vector<2x16x24xf32>
    %cst_79 = arith.constant dense<0xFF800000> : vector<2x16xf32>
    %202 = vector.multi_reduction <maximumf>, %201, %cst_79 [2] : vector<2x16x24xf32> to vector<2x16xf32>
    %203 = vector.shape_cast %202 : vector<2x16xf32> to vector<2x16x1xf32>
    %204 = vector.broadcast %203 : vector<2x16x1xf32> to vector<2x16x24xf32>
    %205 = arith.subf %201, %204 : vector<2x16x24xf32>
    %206 = math.exp %205 : vector<2x16x24xf32>
    %cst_80 = arith.constant dense<0.000000e+00> : vector<2x16xf32>
    %207 = vector.multi_reduction <add>, %206, %cst_80 [2] : vector<2x16x24xf32> to vector<2x16xf32>
    %208 = vector.shape_cast %207 : vector<2x16xf32> to vector<2x16x1xf32>
    %209 = tpu.reciprocal %208 : vector<2x16x1xf32> -> vector<2x16x1xf32>
    %210 = vector.broadcast %209 : vector<2x16x1xf32> to vector<2x16x24xf32>
    %211 = arith.mulf %206, %210 : vector<2x16x24xf32>
    %cst_81 = arith.constant dense<0.000000e+00> : vector<2x16x8xf32>
    %212 = tpu.matmul %211, %198, %cst_81 {dimension_numbers = #tpu.dot_dimension_numbers<[2], [1], [1], [2], [0, 0, 0, 1, 1, 2], [0], [0]>} : vector<2x16x24xf32>, vector<2x24x8xf32>, vector<2x16x8xf32> -> vector<2x16x8xf32>
    %213 = vector.shape_cast %212 : vector<2x16x8xf32> to vector<32x8xf32>
    %214 = vector.extract_strided_slice %169 {offsets = [8, 0], sizes = [8, 32], strides = [1, 1]} : vector<32x32xf32> to vector<8x32xf32>
    %cst_82 = arith.constant dense<0.000000e+00> : vector<32x32xf32>
    %215 = tpu.matmul %213, %214, %cst_82 {dimension_numbers = #tpu.dot_dimension_numbers<[1], [0], [0], [1], [0, 0, 1, 1], [], []>} : vector<32x8xf32>, vector<8x32xf32>, vector<32x32xf32> -> vector<32x32xf32>
    %216 = arith.addf %195, %215 : vector<32x32xf32>
    %217 = vector.extract_strided_slice %171 {offsets = [0, 0, 16], sizes = [2, 16, 8], strides = [1, 1, 1]} : vector<2x16x32xf32> to vector<2x16x8xf32>
    %218 = vector.extract_strided_slice %172 {offsets = [0, 0, 16], sizes = [2, 24, 8], strides = [1, 1, 1]} : vector<2x24x32xf32> to vector<2x24x8xf32>
    %219 = vector.extract_strided_slice %173 {offsets = [0, 0, 16], sizes = [2, 24, 8], strides = [1, 1, 1]} : vector<2x24x32xf32> to vector<2x24x8xf32>
    %cst_83 = arith.constant dense<0.000000e+00> : vector<2x16x24xf32>
    %220 = tpu.matmul %217, %218, %cst_83 {dimension_numbers = #tpu.dot_dimension_numbers<[2], [2], [1], [1], [0, 0, 0, 1, 1, 1], [0], [0]>} : vector<2x16x8xf32>, vector<2x24x8xf32>, vector<2x16x24xf32> -> vector<2x16x24xf32>
    %cst_84 = arith.constant 0.353553385 : f32
    %221 = vector.broadcast %cst_84 : f32 to vector<2x16x24xf32>
    %222 = arith.mulf %220, %221 : vector<2x16x24xf32>
    %cst_85 = arith.constant dense<0xFF800000> : vector<2x16xf32>
    %223 = vector.multi_reduction <maximumf>, %222, %cst_85 [2] : vector<2x16x24xf32> to vector<2x16xf32>
    %224 = vector.shape_cast %223 : vector<2x16xf32> to vector<2x16x1xf32>
    %225 = vector.broadcast %224 : vector<2x16x1xf32> to vector<2x16x24xf32>
    %226 = arith.subf %222, %225 : vector<2x16x24xf32>
    %227 = math.exp %226 : vector<2x16x24xf32>
    %cst_86 = arith.constant dense<0.000000e+00> : vector<2x16xf32>
    %228 = vector.multi_reduction <add>, %227, %cst_86 [2] : vector<2x16x24xf32> to vector<2x16xf32>
    %229 = vector.shape_cast %228 : vector<2x16xf32> to vector<2x16x1xf32>
    %230 = tpu.reciprocal %229 : vector<2x16x1xf32> -> vector<2x16x1xf32>
    %231 = vector.broadcast %230 : vector<2x16x1xf32> to vector<2x16x24xf32>
    %232 = arith.mulf %227, %231 : vector<2x16x24xf32>
    %cst_87 = arith.constant dense<0.000000e+00> : vector<2x16x8xf32>
    %233 = tpu.matmul %232, %219, %cst_87 {dimension_numbers = #tpu.dot_dimension_numbers<[2], [1], [1], [2], [0, 0, 0, 1, 1, 2], [0], [0]>} : vector<2x16x24xf32>, vector<2x24x8xf32>, vector<2x16x8xf32> -> vector<2x16x8xf32>
    %234 = vector.shape_cast %233 : vector<2x16x8xf32> to vector<32x8xf32>
    %235 = vector.extract_strided_slice %169 {offsets = [16, 0], sizes = [8, 32], strides = [1, 1]} : vector<32x32xf32> to vector<8x32xf32>
    %cst_88 = arith.constant dense<0.000000e+00> : vector<32x32xf32>
    %236 = tpu.matmul %234, %235, %cst_88 {dimension_numbers = #tpu.dot_dimension_numbers<[1], [0], [0], [1], [0, 0, 1, 1], [], []>} : vector<32x8xf32>, vector<8x32xf32>, vector<32x32xf32> -> vector<32x32xf32>
    %237 = arith.addf %216, %236 : vector<32x32xf32>
    %238 = vector.extract_strided_slice %171 {offsets = [0, 0, 24], sizes = [2, 16, 8], strides = [1, 1, 1]} : vector<2x16x32xf32> to vector<2x16x8xf32>
    %239 = vector.extract_strided_slice %172 {offsets = [0, 0, 24], sizes = [2, 24, 8], strides = [1, 1, 1]} : vector<2x24x32xf32> to vector<2x24x8xf32>
    %240 = vector.extract_strided_slice %173 {offsets = [0, 0, 24], sizes = [2, 24, 8], strides = [1, 1, 1]} : vector<2x24x32xf32> to vector<2x24x8xf32>
    %cst_89 = arith.constant dense<0.000000e+00> : vector<2x16x24xf32>
    %241 = tpu.matmul %238, %239, %cst_89 {dimension_numbers = #tpu.dot_dimension_numbers<[2], [2], [1], [1], [0, 0, 0, 1, 1, 1], [0], [0]>} : vector<2x16x8xf32>, vector<2x24x8xf32>, vector<2x16x24xf32> -> vector<2x16x24xf32>
    %cst_90 = arith.constant 0.353553385 : f32
    %242 = vector.broadcast %cst_90 : f32 to vector<2x16x24xf32>
    %243 = arith.mulf %241, %242 : vector<2x16x24xf32>
    %cst_91 = arith.constant dense<0xFF800000> : vector<2x16xf32>
    %244 = vector.multi_reduction <maximumf>, %243, %cst_91 [2] : vector<2x16x24xf32> to vector<2x16xf32>
    %245 = vector.shape_cast %244 : vector<2x16xf32> to vector<2x16x1xf32>
    %246 = vector.broadcast %245 : vector<2x16x1xf32> to vector<2x16x24xf32>
    %247 = arith.subf %243, %246 : vector<2x16x24xf32>
    %248 = math.exp %247 : vector<2x16x24xf32>
    %cst_92 = arith.constant dense<0.000000e+00> : vector<2x16xf32>
    %249 = vector.multi_reduction <add>, %248, %cst_92 [2] : vector<2x16x24xf32> to vector<2x16xf32>
    %250 = vector.shape_cast %249 : vector<2x16xf32> to vector<2x16x1xf32>
    %251 = tpu.reciprocal %250 : vector<2x16x1xf32> -> vector<2x16x1xf32>
    %252 = vector.broadcast %251 : vector<2x16x1xf32> to vector<2x16x24xf32>
    %253 = arith.mulf %248, %252 : vector<2x16x24xf32>
    %cst_93 = arith.constant dense<0.000000e+00> : vector<2x16x8xf32>
    %254 = tpu.matmul %253, %240, %cst_93 {dimension_numbers = #tpu.dot_dimension_numbers<[2], [1], [1], [2], [0, 0, 0, 1, 1, 2], [0], [0]>} : vector<2x16x24xf32>, vector<2x24x8xf32>, vector<2x16x8xf32> -> vector<2x16x8xf32>
    %255 = vector.shape_cast %254 : vector<2x16x8xf32> to vector<32x8xf32>
    %256 = vector.extract_strided_slice %169 {offsets = [24, 0], sizes = [8, 32], strides = [1, 1]} : vector<32x32xf32> to vector<8x32xf32>
    %cst_94 = arith.constant dense<0.000000e+00> : vector<32x32xf32>
    %257 = tpu.matmul %255, %256, %cst_94 {dimension_numbers = #tpu.dot_dimension_numbers<[1], [0], [0], [1], [0, 0, 1, 1], [], []>} : vector<32x8xf32>, vector<8x32xf32>, vector<32x32xf32> -> vector<32x32xf32>
    %258 = arith.addf %237, %257 : vector<32x32xf32>
    %259 = vector.broadcast %170 : vector<1x32xf32> to vector<32x32xf32>
    %260 = arith.addf %258, %259 : vector<32x32xf32>
    %261 = arith.addf %130, %260 : vector<32x32xf32>
    %c0_95 = arith.constant 0 : index
    %c0_96 = arith.constant 0 : index
    %262 = vector.load %arg20[%c0_95, %c0_96] : memref<1x32xf32, #tpu.memory_space<vmem>>, vector<1x32xf32>
    %c0_97 = arith.constant 0 : index
    %c0_98 = arith.constant 0 : index
    %263 = vector.load %arg21[%c0_97, %c0_98] : memref<1x32xf32, #tpu.memory_space<vmem>>, vector<1x32xf32>
    %cst_99 = arith.constant dense<0.000000e+00> : vector<32xf32>
    %264 = vector.multi_reduction <add>, %261, %cst_99 [1] : vector<32x32xf32> to vector<32xf32>
    %265 = vector.shape_cast %264 : vector<32xf32> to vector<32x1xf32>
    %cst_100 = arith.constant 3.200000e+01 : f32
    %266 = vector.broadcast %cst_100 : f32 to vector<32x1xf32>
    %267 = arith.divf %265, %266 : vector<32x1xf32>
    %268 = vector.broadcast %267 : vector<32x1xf32> to vector<32x32xf32>
    %269 = arith.subf %261, %268 : vector<32x32xf32>
    %270 = arith.mulf %269, %269 : vector<32x32xf32>
    %cst_101 = arith.constant dense<0.000000e+00> : vector<32xf32>
    %271 = vector.multi_reduction <add>, %270, %cst_101 [1] : vector<32x32xf32> to vector<32xf32>
    %272 = vector.shape_cast %271 : vector<32xf32> to vector<32x1xf32>
    %cst_102 = arith.constant 3.200000e+01 : f32
    %273 = vector.broadcast %cst_102 : f32 to vector<32x1xf32>
    %274 = arith.divf %272, %273 : vector<32x1xf32>
    %cst_103 = arith.constant 9.99999974E-6 : f32
    %275 = vector.broadcast %cst_103 : f32 to vector<32x1xf32>
    %276 = arith.addf %274, %275 : vector<32x1xf32>
    %277 = math.rsqrt %276 : vector<32x1xf32>
    %278 = vector.broadcast %277 : vector<32x1xf32> to vector<32x32xf32>
    %279 = arith.mulf %269, %278 : vector<32x32xf32>
    %280 = vector.broadcast %262 : vector<1x32xf32> to vector<32x32xf32>
    %281 = arith.mulf %279, %280 : vector<32x32xf32>
    %282 = vector.broadcast %263 : vector<1x32xf32> to vector<32x32xf32>
    %283 = arith.addf %281, %282 : vector<32x32xf32>
    %c0_104 = arith.constant 0 : index
    %c0_105 = arith.constant 0 : index
    %284 = vector.load %arg12[%c0_104, %c0_105] : memref<32x64xf32, #tpu.memory_space<vmem>>, vector<32x64xf32>
    %cst_106 = arith.constant dense<0.000000e+00> : vector<32x64xf32>
    %285 = tpu.matmul %283, %284, %cst_106 {dimension_numbers = #tpu.dot_dimension_numbers<[1], [0], [0], [1], [0, 0, 1, 1], [], []>} : vector<32x32xf32>, vector<32x64xf32>, vector<32x64xf32> -> vector<32x64xf32>
    %c0_107 = arith.constant 0 : index
    %c0_108 = arith.constant 0 : index
    %286 = vector.load %arg13[%c0_107, %c0_108] : memref<1x64xf32, #tpu.memory_space<vmem>>, vector<1x64xf32>
    %287 = vector.broadcast %286 : vector<1x64xf32> to vector<32x64xf32>
    %288 = arith.addf %285, %287 : vector<32x64xf32>
    %cst_109 = arith.constant 0.000000e+00 : f32
    %289 = vector.broadcast %cst_109 : f32 to vector<32x64xf32>
    %290 = arith.maximumf %288, %289 : vector<32x64xf32>
    %c0_110 = arith.constant 0 : index
    %c0_111 = arith.constant 0 : index
    %291 = vector.load %arg14[%c0_110, %c0_111] : memref<64x32xf32, #tpu.memory_space<vmem>>, vector<64x32xf32>
    %cst_112 = arith.constant dense<0.000000e+00> : vector<32x32xf32>
    %292 = tpu.matmul %290, %291, %cst_112 {dimension_numbers = #tpu.dot_dimension_numbers<[1], [0], [0], [1], [0, 0, 1, 1], [], []>} : vector<32x64xf32>, vector<64x32xf32>, vector<32x32xf32> -> vector<32x32xf32>
    %c0_113 = arith.constant 0 : index
    %c0_114 = arith.constant 0 : index
    %293 = vector.load %arg15[%c0_113, %c0_114] : memref<1x32xf32, #tpu.memory_space<vmem>>, vector<1x32xf32>
    %294 = vector.broadcast %293 : vector<1x32xf32> to vector<32x32xf32>
    %295 = arith.addf %292, %294 : vector<32x32xf32>
    %296 = arith.addf %261, %295 : vector<32x32xf32>
    %297 = vector.shape_cast %296 : vector<32x32xf32> to vector<2x16x32xf32>
    %c0_115 = arith.constant 0 : index
    %c0_116 = arith.constant 0 : index
    %c0_117 = arith.constant 0 : index
    %298 = vector.load %arg22[%c0_115, %c0_116, %c0_117] : memref<2x16x32xf32, #tpu.memory_space<vmem>>, vector<2x16x32xf32>
    tpu.vector_store %arg22[%c0_115, %c0_116, %c0_117], %297 {strides = array<i32>} : memref<2x16x32xf32, #tpu.memory_space<vmem>>, vector<2x16x32xf32>,
    return
  }
}

</mosaic_0001>

<bundles_post_ra>
// kernel: memory_attention_layer_forward.1
= control target key start
LH: loop header
LB: loop body
LE: loop exit
PB: predicated region body
PF: predicated region fallthrough
CT: control target
= control target key end

     0   :  { %s7459_s0 = inlined_call_operand.vmem [shape: f32[2,16,32], index: 0, kind: input, shape index: {}]   ;;  %s7460_s1 = inlined_call_operand.vmem [shape: f32[2,24,32], index: 1, kind: input, shape index: {}]   ;;  %s7461_s2 = inlined_call_operand.vmem [shape: f32[2,24,32], index: 2, kind: input, shape index: {}]   ;;  %s7462_s3 = inlined_call_operand.vmem [shape: f32[2,16,32], index: 3, kind: input, shape index: {}]   ;;  %s7463_s4 = inlined_call_operand.vmem [shape: f32[32,96], index: 4, kind: input, shape index: {}]   ;;  %s7464_s5 = inlined_call_operand.vmem [shape: f32[1,96], index: 5, kind: input, shape index: {}]   ;;  %s7465_s6 = inlined_call_operand.vmem [shape: f32[32,32], index: 6, kind: input, shape index: {}]   ;;  %s7466_s7 = inlined_call_operand.vmem [shape: f32[1,32], index: 7, kind: input, shape index: {}]   ;;  %s7467_s8 = inlined_call_operand.vmem [shape: f32[32,96], index: 8, kind: input, shape index: {}]   ;;  %s7468_s9 = inlined_call_operand.vmem [shape: f32[1,96], index: 9, kind: input, shape index: {}]   ;;  %s7469_s10 = inlined_call_operand.vmem [shape: f32[32,32], index: 10, kind: input, shape index: {}]   ;;  %s7470_s11 = inlined_call_operand.vmem [shape: f32[1,32], index: 11, kind: input, shape index: {}]   ;;  %s7471_s12 = inlined_call_operand.vmem [shape: f32[32,64], index: 12, kind: input, shape index: {}]   ;;  %s7472_s13 = inlined_call_operand.vmem [shape: f32[1,64], index: 13, kind: input, shape index: {}]   ;;  %s7473_s14 = inlined_call_operand.vmem [shape: f32[64,32], index: 14, kind: input, shape index: {}]   ;;  %s7474_s15 = inlined_call_operand.hbm [shape: f32[1,32], index: 15, kind: input, shape index: {}]   ;;  %s7475_s16 = inlined_call_operand.hbm [shape: f32[1,32], index: 16, kind: input, shape index: {}]   ;;  %s7476_s17 = inlined_call_operand.hbm [shape: f32[1,32], index: 17, kind: input, shape index: {}]   ;;  %s7477_s18 = inlined_call_operand.hbm [shape: f32[1,32], index: 18, kind: input, shape index: {}]   ;;  %s7478_s19 = inlined_call_operand.hbm [shape: f32[1,32], index: 19, kind: input, shape index: {}]   ;;  %s7479_s20 = inlined_call_operand.hbm [shape: f32[1,32], index: 20, kind: input, shape index: {}]   ;;  %s7480_s21 = inlined_call_operand.hbm [shape: f32[1,32], index: 21, kind: input, shape index: {}]   ;;  %s7481_s22 = inlined_call_operand.hbm [shape: f32[2,16,32], index: 22, kind: output, shape index: {}]  }
   0x1   :  { %7487 = sst [smem:[#allocation20_spill]] %s7459_s0 }
   0x2   :  { %7488 = sst [smem:[#allocation21_spill]] %s7460_s1 }
   0x3   :  { %7489 = sst [smem:[#allocation22_spill]] %s7461_s2 }
   0x4   :  { %7490 = sst [smem:[#allocation23_spill]] %s7463_s4 }
   0x5   :  { %7491 = sst [smem:[#allocation24_spill]] %s7464_s5 }
   0x6   :  { %7492 = sst [smem:[#allocation25_spill]] %s7465_s6 }
   0x7   :  { %27 = vsyncpa [#allocation3], 0 }
   0x8   :  { %28 = vsyncpa [#allocation6], 0 }
   0x9   :  { %29 = vsyncpa [#allocation9], 0 }
   0xa   :  { %30 = vsyncpa [#allocation12], 0 }
   0xb   :  { %31 = vsyncpa [#allocation4], 0  ;;  %s6404_s28 = smov [#allocation5]   ;;  %s6405_s29 = smov [#allocation8]  }
   0xc   :  { %s78_s3 = sshll.u32 %s6404_s28, 4  ;;  %s98_s30 = sshll.u32 %s6405_s29, 4  ;;  %s79_s3 = int_to_ptr.vmem [resolvable:$true] %s78_s3  ;;  %s99_s30 = int_to_ptr.vmem [resolvable:$true] %s98_s30 }
   0xd   :  { %s6242_s4 = scalar_lea.vmem %s79_s3, 16  ;;  %s6246_s0 = scalar_lea.vmem %s79_s3, 32 }
   0xe   :  { %p6243_p0 = scmp.ne.s32.totalorder %s79_s3, %s6242_s4  ;;  %p6247_p1 = scmp.lt.s32.totalorder %s79_s3, %s79_s3 }
   0xf   :  { %p6248_p2 = scmp.lt.s32.totalorder %s6246_s0, %s6242_s4 }
  0x11   :  { %p6249_p3 = por %p6248_p2, %p6247_p1 }
  0x13   :  { %p6250_p4 = pnand %p6249_p3, %p6243_p0 }
  0x15   :  { %6253 = shalt.err (!%p6250_p4)
}
  0x16   :  { %81 = dma.hbm_to_vmem [thread:$0]  %s7475_s16, 16, %s79_s3, [#allocation6]  }
  0x17   :  { %s6262_s5 = scalar_lea.vmem %s99_s30, 16  ;;  %s6266_s24 = scalar_lea.vmem %s99_s30, 32 }
  0x18   :  { %p6263_p5 = scmp.ne.s32.totalorder %s99_s30, %s6262_s5  ;;  %p6267_p6 = scmp.lt.s32.totalorder %s99_s30, %s99_s30 }
  0x19   :  { %p6268_p7 = scmp.lt.s32.totalorder %s6266_s24, %s6262_s5 }
  0x1b   :  { %p6269_p8 = por %p6268_p7, %p6267_p6 }
  0x1d   :  { %p6270_p9 = pnand %p6269_p8, %p6263_p5 }
  0x1f   :  { %6273 = shalt.err (!%p6270_p9)
}
  0x20   :  { %101 = dma.hbm_to_vmem [thread:$0]  %s7477_s18, 16, %s99_s30, [#allocation9]  }
  0x21   :  { %s6406_s26 = smov [#allocation11]   ;;  %s6407_s27 = smov [#allocation2]  }
  0x22   :  { %s118_s2 = sshll.u32 %s6406_s26, 4  ;;  %s68_s28 = sshll.u32 %s6407_s27, 4  ;;  %s119_s2 = int_to_ptr.vmem [resolvable:$true] %s118_s2  ;;  %s69_s28 = int_to_ptr.vmem [resolvable:$true] %s68_s28 }
  0x23   :  { %s6282_s29 = scalar_lea.vmem %s119_s2, 16  ;;  %s6286_s16 = scalar_lea.vmem %s119_s2, 32 }
  0x24   :  { %p6283_p10 = scmp.ne.s32.totalorder %s119_s2, %s6282_s29  ;;  %p6287_p11 = scmp.lt.s32.totalorder %s119_s2, %s119_s2 }
  0x25   :  { %p6288_p12 = scmp.lt.s32.totalorder %s6286_s16, %s6282_s29 }
  0x27   :  { %p6289_p13 = por %p6288_p12, %p6287_p11 }
  0x29   :  { %p6290_p0 = pnand %p6289_p13, %p6283_p10 }
  0x2b   :  { %6293 = shalt.err (!%p6290_p0)
}
  0x2c   :  { %121 = dma.hbm_to_vmem [thread:$0]  %s7479_s20, 16, %s119_s2, [#allocation12]  }
  0x2d   :  { %s6302_s0 = scalar_lea.vmem %s69_s28, 16  ;;  %s6306_s18 = scalar_lea.vmem %s69_s28, 32 }
  0x2e   :  { %p6303_p1 = scmp.ne.s32.totalorder %s69_s28, %s6302_s0  ;;  %p6307_p2 = scmp.lt.s32.totalorder %s69_s28, %s69_s28 }
  0x2f   :  { %p6308_p3 = scmp.lt.s32.totalorder %s6306_s18, %s6302_s0 }
  0x31   :  { %p6309_p4 = por %p6308_p3, %p6307_p2 }
  0x33   :  { %p6310_p5 = pnand %p6309_p4, %p6303_p1 }
  0x35   :  { %6313 = shalt.err (!%p6310_p5)
}
  0x36   :  { %71 = dma.hbm_to_vmem [thread:$0]  %s7474_s15, 16, %s69_s28, [#allocation3]  }
  0x37   :  { %s6408_s1 = smov [#allocation7]   ;;  %s6409_s24 = smov [#allocation10]  }
  0x38   :  { %s88_s5 = sshll.u32 %s6408_s1, 4  ;;  %s108_s6 = sshll.u32 %s6409_s24, 4  ;;  %s89_s5 = int_to_ptr.vmem [resolvable:$true] %s88_s5  ;;  %s109_s6 = int_to_ptr.vmem [resolvable:$true] %s108_s6 }
  0x39   :  { %s6322_s25 = scalar_lea.vmem %s89_s5, 16  ;;  %s6326_s20 = scalar_lea.vmem %s89_s5, 32 }
  0x3a   :  { %p6323_p6 = scmp.ne.s32.totalorder %s89_s5, %s6322_s25  ;;  %p6327_p7 = scmp.lt.s32.totalorder %s89_s5, %s89_s5 }
  0x3b   :  { %p6328_p8 = scmp.lt.s32.totalorder %s6326_s20, %s6322_s25 }
  0x3d   :  { %p6329_p9 = por %p6328_p8, %p6327_p7 }
  0x3f   :  { %p6330_p10 = pnand %p6329_p9, %p6323_p6 }
  0x41   :  { %6333 = shalt.err (!%p6330_p10)
}
  0x42   :  { %91 = dma.hbm_to_vmem [thread:$0]  %s7476_s17, 16, %s89_s5, [#allocation6]  }
  0x43   :  { %s6342_s27 = scalar_lea.vmem %s109_s6, 16  ;;  %s6346_s15 = scalar_lea.vmem %s109_s6, 32 }
  0x44   :  { %p6343_p11 = scmp.ne.s32.totalorder %s109_s6, %s6342_s27  ;;  %p6347_p12 = scmp.lt.s32.totalorder %s109_s6, %s109_s6 }
  0x45   :  { %p6348_p13 = scmp.lt.s32.totalorder %s6346_s15, %s6342_s27 }
  0x47   :  { %p6349_p0 = por %p6348_p13, %p6347_p12 }
  0x49   :  { %p6350_p1 = pnand %p6349_p0, %p6343_p11 }
  0x4b   :  { %6353 = shalt.err (!%p6350_p1)
}
  0x4c   :  { %111 = dma.hbm_to_vmem [thread:$0]  %s7478_s19, 16, %s109_s6, [#allocation9]  }
  0x4d   :  { %s6410_s16 = smov [#allocation13]  }
  0x4e   :  { %s128_s3 = sshll.u32 %s6410_s16, 4  ;;  %s129_s3 = int_to_ptr.vmem [resolvable:$true] %s128_s3 }
  0x4f   :  { %s6362_s4 = scalar_lea.vmem %s129_s3, 16  ;;  %s6366_s0 = scalar_lea.vmem %s129_s3, 32 }
  0x50   :  { %p6363_p2 = scmp.ne.s32.totalorder %s129_s3, %s6362_s4  ;;  %p6367_p3 = scmp.lt.s32.totalorder %s129_s3, %s129_s3 }
  0x51   :  { %p6368_p4 = scmp.lt.s32.totalorder %s6366_s0, %s6362_s4 }
  0x53   :  { %p6369_p5 = por %p6368_p4, %p6367_p3 }
  0x55   :  { %p6370_p6 = pnand %p6369_p5, %p6363_p2 }
  0x57   :  { %6373 = shalt.err (!%p6370_p6)
}
  0x58   :  { %131 = dma.hbm_to_vmem [thread:$0]  %s7480_s21, 16, %s129_s3, [#allocation12]  }
  0x59   :  { %6394 = dma.done.wait [#allocation3], 16  }
  0x5a   :  { %6395 = vsyncadd [#allocation3], 4294967280 }
  0x5b   :  { %6396 = dma.done.wait [#allocation6], 32  }
  0x5c   :  { %6397 = vsyncadd [#allocation6], 4294967264 }
  0x5d   :  { %6398 = dma.done.wait [#allocation9], 32  }
  0x5e   :  { %6399 = vsyncadd [#allocation9], 4294967264 }
  0x5f   :  { %6400 = dma.done.wait [#allocation12], 32  }
  0x60   :  { %6401 = vsyncadd [#allocation12], 4294967264  ;;  %vm181_vm0 = vcmask 261120   ;;  %s7493_s23 = sld [smem:[#allocation20_spill]]  ;;  %v5223_v45 = vld [vmem:[#allocation5] ss:$0 sm:$0xff] }
  0x61   :  { %s7494_s2 = sld [smem:[#allocation23_spill]]  ;;  %v5224_v47 = vld [vmem:[#allocation7] ss:$0 sm:$0xff]  ;;  %vm369_vm1 = vcmask 64512   ;;  %s6411_s18 = smov 96   ;;  %vm546_vm2 = vcmask 130048  }
  0x62   :  { %s7495_s17 = sld [smem:[#allocation24_spill]]  ;;  %s6412_s19 = smov 64   ;;  %vm3019_vm3 = vcmask 195584   ;;  %vm5097_vm4 = vcmask 523264  }
  0x63   :  { %s6413_s30 = smov 88   ;;  %s6414_s1 = smov 120  }
  0x64   :  { %s6415_s5 = smov 56   ;;  %s6416_s24 = smov 80  }
  0x65   :  { %s6417_s6 = smov 112   ;;  %s7496_s20 = sld [smem:[#allocation25_spill]] }
  0x66   :  { %v153_v0 = vld [vmem:[%s7493_s23] sm:$0xff]  ;;  %v155_v1 = vld [vmem:[%s7493_s23 + $0x10] sm:$0xff]  ;;  %v154_v2 = vld [vmem:[%s7493_s23 + $0x8] sm:$0xff]  ;;  %s6418_s27 = smov 48   ;;  %s6419_s15 = smov 72  }
  0x67   :  { %v182_v3 = vsel %vm181_vm0, %v153_v0, 0.0  ;;  %v188_v4 = vsel %vm181_vm0, %v155_v1, 0.0  ;;  %v156_v5 = vld [vmem:[%s7493_s23 + $0x18] sm:$0xff]  ;;  %v185_v6 = vsel %vm181_vm0, %v154_v2, 0.0  ;;  %v171_v29 = vld [vmem:[%s7494_s2 + $0x10] sm:$0xff]  ;;  %v170_v30 = vld [vmem:[%s7494_s2 + $0x8] sm:$0xff] }
  0x68   :  { %183 = vadd.xlane.f32.xlu0 %v182_v3  ;;  %189 = vadd.xlane.f32.xlu1 %v188_v4  ;;  %v191_v7 = vsel %vm181_vm0, %v156_v5, 0.0  ;;  %v172_v28 = vld [vmem:[%s7494_s2 + $0x18] sm:$0xff]  ;;  %v169_v31 = vld [vmem:[%s7494_s2] sm:$0xff]  ;;  %s6420_s28 = smov 104   ;;  %s6421_s3 = smov 40  }
  0x69   :  { %5639 = vmatprep.subr.mxu0 %v172_v28  ;;  %v5225_v62 = vld [vmem:[%s7495_s17] ss:$0 sm:$0xff]  ;;  %s7498_s21 = sld [smem:[#allocation22_spill]] }
  0x6a   :  { %5640 = vmatpush3.msra.mxu0 %v172_v28 }
  0x6b   :  { %5641 = vmatprep.subr.mxu0 %v171_v29 }
  0x6c   :  { %186 = vadd.xlane.f32.xlu0 %v185_v6  ;;  %192 = vadd.xlane.f32.xlu1 %v191_v7 }
  0x6d   :  { %5642 = vmatpush3.msra.mxu0 %v171_v29 }
  0x6e   :  { %5643 = vmatprep.subr.mxu0 %v170_v30 }
  0x6f   :  { %5644 = vmatpush3.msra.mxu0 %v170_v30 }
  0x70   :  { %5645 = vmatprep.subr.mxu0 %v169_v31 }
  0x71   :  { %5646 = vmatpush3.msra.mxu0 %v169_v31 }
  0xf1   :  { %v184_v8 = vpop.xlane.xlu0 %183  ;;  %v190_v9 = vpop.xlane.xlu1 %189 }
  0xf2   :  { %v195_v10 = vmul.f32 0.03125, %v184_v8  ;;  %v197_v11 = vmul.f32 0.03125, %v190_v9 }
  0xf4   :  { %v199_v12 = vsub.f32 %v153_v0, %v195_v10  ;;  %v201_v13 = vsub.f32 %v155_v1, %v197_v11 }
  0xf5   :  { %v187_v14 = vpop.xlane.xlu0 %186  ;;  %v193_v15 = vpop.xlane.xlu1 %192 }
  0xf6   :  { %v196_v16 = vmul.f32 0.03125, %v187_v14  ;;  %v198_v17 = vmul.f32 0.03125, %v193_v15  ;;  %v203_v18 = vmul.f32 %v199_v12, %v199_v12  ;;  %v205_v19 = vmul.f32 %v201_v13, %v201_v13 }
  0xf8   :  { %v200_v20 = vsub.f32 %v154_v2, %v196_v16  ;;  %v202_v21 = vsub.f32 %v156_v5, %v198_v17  ;;  %v207_v22 = vsel %vm181_vm0, %v203_v18, 0.0  ;;  %v213_v23 = vsel %vm181_vm0, %v205_v19, 0.0 }
  0xf9   :  { %208 = vadd.xlane.f32.xlu0 %v207_v22 }
  0xfa   :  { %v204_v24 = vmul.f32 %v200_v20, %v200_v20  ;;  %v206_v25 = vmul.f32 %v202_v21, %v202_v21 }
  0xfc   :  { %v210_v26 = vsel %vm181_vm0, %v204_v24, 0.0  ;;  %v216_v27 = vsel %vm181_vm0, %v206_v25, 0.0 }
  0xfd   :  { %214 = vadd.xlane.f32.xlu0 %v213_v23  ;;  %211 = vadd.xlane.f32.xlu1 %v210_v26 }
 0x101   :  { %217 = vadd.xlane.f32.xlu1 %v216_v27 }
 0x182   :  { %v209_v32 = vpop.xlane.xlu0 %208 }
 0x183   :  { %v219_v33 = vmul.f32 0.03125, %v209_v32 }
 0x185   :  { %v223_v34 = vadd.f32 1e-05, %v219_v33 }
 0x186   :  { %v212_v35 = vpop.xlane.xlu1 %211  ;;  %v215_v36 = vpop.xlane.xlu0 %214 }
 0x187   :  { %6078 = vrsqrt.f32 %v223_v34  ;;  %v220_v37 = vmul.f32 0.03125, %v212_v35  ;;  %v221_v38 = vmul.f32 0.03125, %v215_v36 }
 0x189   :  { %v224_v39 = vadd.f32 1e-05, %v220_v37  ;;  %v225_v40 = vadd.f32 1e-05, %v221_v38 }
 0x18a   :  { %v218_v41 = vpop.xlane.xlu1 %217 }
 0x18b   :  { %6080 = vrsqrt.f32 %v224_v39  ;;  %v222_v42 = vmul.f32 0.03125, %v218_v41 }
 0x18c   :  { %6082 = vrsqrt.f32 %v225_v40 }
 0x18d   :  { %v226_v43 = vadd.f32 1e-05, %v222_v42 }
 0x18f   :  { %6084 = vrsqrt.f32 %v226_v43 }
 0x194   :  { %v6079_v44 = vpop.eup %6078 }
 0x195   :  { %v231_v46 = vmul.f32 %v6079_v44, %v199_v12 }
 0x197   :  { %v241_v48 = vmul.f32 %v5223_v45, %v231_v46 }
 0x198   :  { %v6081_v49 = vpop.eup %6080 }
 0x199   :  { %v6083_v50 = vpop.eup %6082  ;;  %v251_v51 = vadd.f32 %v5224_v47, %v241_v48  ;;  %v232_v52 = vmul.f32 %v6081_v49, %v200_v20 }
 0x19a   :  { %v233_v53 = vmul.f32 %v6083_v50, %v201_v13 }
 0x19b   :  { %5647 = vmatprep.mubr.msk.f32.mxu0 %vm181_vm0, %v251_v51  ;;  %v242_v54 = vmul.f32 %v5223_v45, %v232_v52 }
 0x19c   :  { %v6085_v55 = vpop.eup %6084  ;;  %v243_v56 = vmul.f32 %v5223_v45, %v233_v53 }
 0x19d   :  { %v252_v57 = vadd.f32 %v5224_v47, %v242_v54  ;;  %v234_v58 = vmul.f32 %v6085_v55, %v202_v21 }
 0x19e   :  { %v253_v59 = vadd.f32 %v5224_v47, %v243_v56 }
 0x19f   :  { %5648 = vmatmul.mubr.msk.f32.vlgmr.msra.gmra.mxu0 %vm181_vm0, %v252_v57  ;;  %v244_v60 = vmul.f32 %v5223_v45, %v234_v58 }
 0x1a0   :  { %5650 = vmatprep.mubr.msk.f32.mxu0 %vm181_vm0, %v253_v59 }
 0x1a1   :  { %v254_v61 = vadd.f32 %v5224_v47, %v244_v60 }
 0x1a3   :  { %5651 = vmatmul.mubr.msk.f32.gmra.mxu0 %vm181_vm0, %v254_v61 }
 0x25f   :  { %v5649_v63 = vpop.f32.mrf.mxu0 }
 0x260   :  { %v6600_v0 = vadd.f32 %v5649_v63, %v5225_v62 }
 0x261   :  { %v339_v1 = vpop.f32.mrf.mxu0 }
 0x262   :  { %v6602_v2 = vadd.f32 %v5225_v62, %v339_v1  ;;  %367 = vrot.lane.b32.xlu0 %v6600_v0, %s6411_s18 }
 0x263   :  { %v5652_v3 = vpop.f32.mrf.mxu0 }
 0x264   :  { %365 = vrot.lane.b32.xlu1 %v6602_v2, %s6411_s18  ;;  %5657 = vmatprep.mubr.msk.f32.mxu1 %vm369_vm1, %v6602_v2  ;;  %v6610_v5 = vadd.f32 %v5652_v3, %v5225_v62 }
 0x265   :  { %v349_v4 = vpop.f32.mrf.mxu0 }
 0x266   :  { %v6612_v6 = vadd.f32 %v5225_v62, %v349_v4 }
 0x268   :  { %457 = vrot.lane.b32.xlu1 %v6610_v5, %s6411_s18  ;;  %5664 = vmatprep.mubr.msk.f32.mxu0 %vm369_vm1, %v6612_v6 }
 0x26c   :  { %455 = vrot.lane.b32.xlu1 %v6612_v6, %s6411_s18 }
 0x2d4   :  { %v368_v7 = vpop.permute.xlu0 %367 }
 0x2d5   :  { %5653 = vmatprep.subr.msk.mxu1 %vm369_vm1, %v368_v7 }
 0x2d6   :  { %v366_v8 = vpop.permute.xlu1 %365  ;;  %5654 = vmatpush3.xpose.msk.msra.mxu1 %vm369_vm1, %v368_v7 }
 0x2d7   :  { %5655 = vmatprep.subr.msk.mxu1 %vm369_vm1, %v366_v8 }
 0x2da   :  { %v458_v9 = vpop.permute.xlu1 %457  ;;  %5656 = vmatpush3.xpose.msk.msra.mxu1 %vm369_vm1, %v366_v8 }
 0x2db   :  { %5660 = vmatprep.subr.msk.mxu0 %vm369_vm1, %v458_v9 }
 0x2dc   :  { %5661 = vmatpush3.xpose.msk.msra.mxu0 %vm369_vm1, %v458_v9 }
 0x2dd   :  { %5658 = vmatmul.mubr.msk.f32.vlgmr.msra.gmra.mxu1 %vm369_vm1, %v6600_v0 }
 0x2de   :  { %v456_v10 = vpop.permute.xlu1 %455 }
 0x2df   :  { %5662 = vmatprep.subr.msk.mxu0 %vm369_vm1, %v456_v10 }
 0x2e0   :  { %5663 = vmatpush3.xpose.msk.msra.mxu0 %vm369_vm1, %v456_v10 }
 0x2e3   :  { %5665 = vmatmul.mubr.msk.f32.vlgmr.msra.gmra.mxu0 %vm369_vm1, %v6610_v5 }
 0x39d   :  { %v5659_v11 = vpop.f32.mrf.mxu1 }
 0x39e   :  { %v543_v12 = vmul.f32 0.35355338, %v5659_v11 }
 0x39f   :  { %v444_v13 = vpop.f32.mrf.mxu1 }
 0x3a0   :  { %v542_v14 = vmul.f32 0.35355338, %v444_v13  ;;  %v550_v15 = vsel %vm546_vm2, %v543_v12, -inf }
 0x3a1   :  { %551 = vmax.xlane.f32.xlu1 %v550_v15 }
 0x3a2   :  { %v547_v16 = vsel %vm546_vm2, %v542_v14, -inf }
 0x3a3   :  { %v5666_v17 = vpop.f32.mrf.mxu0  ;;  %548 = vmax.xlane.f32.xlu0 %v547_v16 }
 0x3a4   :  { %v545_v20 = vmul.f32 0.35355338, %v5666_v17 }
 0x3a5   :  { %v533_v18 = vpop.f32.mrf.mxu0 }
 0x3a6   :  { %v544_v19 = vmul.f32 0.35355338, %v533_v18  ;;  %v556_v22 = vsel %vm546_vm2, %v545_v20, -inf }
 0x3a8   :  { %v553_v21 = vsel %vm546_vm2, %v544_v19, -inf }
 0x3a9   :  { %554 = vmax.xlane.f32.xlu0 %v553_v21 }
 0x3ad   :  { %557 = vmax.xlane.f32.xlu0 %v556_v22 }
 0x3b2   :  { %591 = vrot.lane.b32.xlu1 %v6602_v2, %s6412_s19 }
 0x3b6   :  { %680 = vrot.lane.b32.xlu1 %v6610_v5, %s6412_s19 }
 0x3ba   :  { %771 = vrot.lane.b32.xlu1 %v6600_v0, %s6413_s30 }
 0x3be   :  { %769 = vrot.lane.b32.xlu1 %v6602_v2, %s6413_s30 }
 0x3c2   :  { %765 = vrot.lane.b32.xlu1 %v6602_v2, %s6414_s1 }
 0x3c3   :  { %593 = vrot.lane.b32.xlu0 %v6600_v0, %s6412_s19 }
 0x3c7   :  { %678 = vrot.lane.b32.xlu0 %v6612_v6, %s6412_s19 }
 0x3cb   :  { %862 = vrot.lane.b32.xlu0 %v6610_v5, %s6413_s30 }
 0x42a   :  { %v552_v23 = vpop.xlane.xlu1 %551 }
 0x42b   :  { %v560_v24 = vsub.f32 %v543_v12, %v552_v23 }
 0x42c   :  { %v549_v25 = vpop.xlane.xlu0 %548 }
 0x42d   :  { %v565_v26 = vmul.f32 1.442695, %v560_v24  ;;  %v559_v27 = vsub.f32 %v542_v14, %v549_v25 }
 0x42e   :  { %v592_v28 = vpop.permute.xlu1 %591 }
 0x42f   :  { %6086 = vpow2.f32 %v565_v26  ;;  %v563_v29 = vmul.f32 1.442695, %v559_v27 }
 0x431   :  { %6088 = vpow2.f32 %v563_v29 }
 0x432   :  { %v681_v30 = vpop.permute.xlu1 %680  ;;  %v555_v31 = vpop.xlane.xlu0 %554 }
 0x433   :  { %v561_v32 = vsub.f32 %v544_v19, %v555_v31 }
 0x435   :  { %v567_v33 = vmul.f32 1.442695, %v561_v32 }
 0x436   :  { %v772_v34 = vpop.permute.xlu1 %771  ;;  %v558_v35 = vpop.xlane.xlu0 %557 }
 0x437   :  { %6090 = vpow2.f32 %v567_v33  ;;  %v562_v36 = vsub.f32 %v545_v20, %v558_v35  ;;  %5681 = vmatprep.subr.msk.mxu0 %vm369_vm1, %v772_v34 }
 0x438   :  { %5682 = vmatpush3.xpose.msk.msra.mxu0 %vm369_vm1, %v772_v34 }
 0x439   :  { %v569_v37 = vmul.f32 1.442695, %v562_v36 }
 0x43a   :  { %v770_v38 = vpop.permute.xlu1 %769  ;;  %v594_v39 = vpop.permute.xlu0 %593 }
 0x43b   :  { %6092 = vpow2.f32 %v569_v37  ;;  %5667 = vmatprep.subr.mxu1 %v594_v39  ;;  %5683 = vmatprep.subr.msk.mxu0 %vm369_vm1, %v770_v38 }
 0x43c   :  { %v6087_v40 = vpop.eup %6086  ;;  %5668 = vmatpush3.msra.mxu1 %v594_v39  ;;  %5684 = vmatpush3.xpose.msk.msra.mxu0 %vm369_vm1, %v770_v38 }
 0x43d   :  { %5669 = vmatprep.subr.mxu1 %v592_v28  ;;  %v574_v41 = vsel %vm546_vm2, %v6087_v40, 0.0 }
 0x43e   :  { %v6089_v42 = vpop.eup %6088  ;;  %575 = vadd.xlane.f32.xlu1 %v574_v41  ;;  %v766_v43 = vpop.permute.xlu1 %765  ;;  %5670 = vmatpush3.msra.mxu1 %v592_v28 }
 0x43f   :  { %5674 = vmatprep.subr.mxu1 %v681_v30  ;;  %5685 = vmatprep.mubr.msk.f32.mxu0 %vm369_vm1, %v766_v43  ;;  %v571_v44 = vsel %vm546_vm2, %v6089_v42, 0.0  ;;  %v679_v49 = vpop.permute.xlu0 %678 }
 0x440   :  { %572 = vadd.xlane.f32.xlu0 %v571_v44 }
 0x443   :  { %v863_v50 = vpop.permute.xlu0 %862 }
 0x444   :  { %v6091_v45 = vpop.eup %6090 }
 0x445   :  { %v577_v46 = vsel %vm546_vm2, %v6091_v45, 0.0 }
 0x446   :  { %578 = vadd.xlane.f32.xlu0 %v577_v46 }
 0x448   :  { %v6093_v47 = vpop.eup %6092 }
 0x449   :  { %v580_v48 = vsel %vm546_vm2, %v6093_v47, 0.0 }
 0x44a   :  { %581 = vadd.xlane.f32.xlu1 %v580_v48 }
 0x45b   :  { %860 = vrot.lane.b32.xlu1 %v6612_v6, %s6413_s30  ;;  %s7497_s30 = sld [smem:[#allocation21_spill]] }
 0x45c   :  { %767 = vrot.lane.b32.xlu0 %v6600_v0, %s6414_s1 }
 0x45f   :  { %858 = vrot.lane.b32.xlu1 %v6610_v5, %s6414_s1 }
 0x460   :  { %856 = vrot.lane.b32.xlu0 %v6612_v6, %s6414_s1 }
 0x4c7   :  { %v576_v51 = vpop.xlane.xlu1 %575 }
 0x4c8   :  { %6094 = vrcp.f32 %v576_v51 }
 0x4c9   :  { %v573_v52 = vpop.xlane.xlu0 %572 }
 0x4ca   :  { %6096 = vrcp.f32 %v573_v52  ;;  %v359_v52 = vld [vmem:[%s7496_s20 + $0x8] sm:$0xff] }
 0x4cf   :  { %v579_v53 = vpop.xlane.xlu0 %578 }
 0x4d0   :  { %6098 = vrcp.f32 %v579_v53 }
 0x4d3   :  { %v582_v54 = vpop.xlane.xlu1 %581  ;;  %v768_v55 = vpop.permute.xlu0 %767 }
 0x4d4   :  { %6100 = vrcp.f32 %v582_v54  ;;  %5686 = vmatmul.mubr.msk.f32.vlgmr.msra.gmra.mxu0 %vm369_vm1, %v768_v55 }
 0x4d5   :  { %v6095_v56 = vpop.eup %6094 }
 0x4d6   :  { %v588_v59 = vmul.f32 %v6095_v56, %v6087_v40 }
 0x4d7   :  { %v6097_v57 = vpop.eup %6096  ;;  %v857_v1 = vpop.permute.xlu0 %856 }
 0x4d8   :  { %v587_v58 = vmul.f32 %v6097_v57, %v6089_v42  ;;  %v861_v3 = vpop.permute.xlu1 %860 }
 0x4da   :  { %5671 = vmatprep.mubr.msk.f32.mxu1 %vm546_vm2, %v587_v58 }
 0x4db   :  { %5672 = vmatmul.mubr.msk.f32.vlgmr.msra.gmra.mxu1 %vm546_vm2, %v588_v59  ;;  %v358_v59 = vld [vmem:[%s7496_s20] sm:$0xff] }
 0x4dc   :  { %5675 = vmatpush3.msra.mxu1 %v681_v30  ;;  %v859_v4 = vpop.permute.xlu1 %858 }
 0x4dd   :  { %v6099_v60 = vpop.eup %6098  ;;  %5676 = vmatprep.subr.mxu1 %v679_v49 }
 0x4de   :  { %5677 = vmatpush3.msra.mxu1 %v679_v49  ;;  %v589_v61 = vmul.f32 %v6099_v60, %v6091_v45 }
 0x4df   :  { %5688 = vmatprep.subr.msk.mxu1 %vm369_vm1, %v863_v50 }
 0x4e0   :  { %5678 = vmatprep.mubr.msk.f32.mxu1 %vm546_vm2, %v589_v61 }
 0x4e1   :  { %v6101_v62 = vpop.eup %6100 }
 0x4e2   :  { %v590_v63 = vmul.f32 %v6101_v62, %v6093_v47 }
 0x4e4   :  { %5679 = vmatmul.mubr.msk.f32.vlgmr.msra.gmra.mxu1 %vm546_vm2, %v590_v63 }
 0x4e5   :  { %5689 = vmatpush3.xpose.msk.msra.mxu1 %vm369_vm1, %v863_v50  ;;  %5692 = vmatprep.mubr.msk.f32.mxu1 %vm369_vm1, %v857_v1 }
 0x4e6   :  { %5690 = vmatprep.subr.msk.mxu1 %vm369_vm1, %v861_v3 }
 0x4e9   :  { %5691 = vmatpush3.xpose.msk.msra.mxu1 %vm369_vm1, %v861_v3 }
 0x4ec   :  { %5693 = vmatmul.mubr.msk.f32.vlgmr.msra.gmra.mxu1 %vm369_vm1, %v859_v4 }
 0x594   :  { %v5687_v7 = vpop.f32.mrf.mxu0 }
 0x595   :  { %v948_v8 = vmul.f32 0.35355338, %v5687_v7 }
 0x596   :  { %v847_v9 = vpop.f32.mrf.mxu0 }
 0x597   :  { %v947_v10 = vmul.f32 0.35355338, %v847_v9  ;;  %v954_v11 = vsel %vm546_vm2, %v948_v8, -inf }
 0x598   :  { %955 = vmax.xlane.f32.xlu1 %v954_v11 }
 0x599   :  { %v951_v12 = vsel %vm546_vm2, %v947_v10, -inf }
 0x59a   :  { %952 = vmax.xlane.f32.xlu0 %v951_v12 }
 0x59b   :  { %v6682_v13 = vpop.f32.mrf.mxu1 }
 0x59d   :  { %v6684_v14 = vpop.f32.mrf.mxu1 }
 0x5a4   :  { %v6686_v15 = vpop.f32.mrf.mxu1 }
 0x5a6   :  { %v6688_v16 = vpop.f32.mrf.mxu1 }
 0x5ac   :  { %v5694_v17 = vpop.f32.mrf.mxu1 }
 0x5ad   :  { %v950_v20 = vmul.f32 0.35355338, %v5694_v17 }
 0x5ae   :  { %v938_v18 = vpop.f32.mrf.mxu1 }
 0x5af   :  { %v949_v19 = vmul.f32 0.35355338, %v938_v18  ;;  %v960_v22 = vsel %vm546_vm2, %v950_v20, -inf }
 0x5b1   :  { %v957_v21 = vsel %vm546_vm2, %v949_v19, -inf }
 0x5b2   :  { %958 = vmax.xlane.f32.xlu0 %v957_v21 }
 0x5b6   :  { %961 = vmax.xlane.f32.xlu0 %v960_v22 }
 0x621   :  { %v956_v23 = vpop.xlane.xlu1 %955 }
 0x622   :  { %v964_v24 = vsub.f32 %v948_v8, %v956_v23 }
 0x623   :  { %v953_v25 = vpop.xlane.xlu0 %952 }
 0x624   :  { %v969_v26 = vmul.f32 1.442695, %v964_v24  ;;  %v963_v27 = vsub.f32 %v947_v10, %v953_v25 }
 0x626   :  { %6102 = vpow2.f32 %v969_v26  ;;  %v967_v28 = vmul.f32 1.442695, %v963_v27 }
 0x628   :  { %6104 = vpow2.f32 %v967_v28 }
 0x633   :  { %v6103_v29 = vpop.eup %6102 }
 0x634   :  { %v978_v30 = vsel %vm546_vm2, %v6103_v29, 0.0 }
 0x635   :  { %v6105_v31 = vpop.eup %6104  ;;  %979 = vadd.xlane.f32.xlu1 %v978_v30 }
 0x636   :  { %v975_v32 = vsel %vm546_vm2, %v6105_v31, 0.0 }
 0x637   :  { %976 = vadd.xlane.f32.xlu0 %v975_v32 }
 0x63b   :  { %v959_v33 = vpop.xlane.xlu0 %958 }
 0x63c   :  { %v965_v34 = vsub.f32 %v949_v19, %v959_v33 }
 0x63e   :  { %v971_v35 = vmul.f32 1.442695, %v965_v34 }
 0x63f   :  { %v962_v36 = vpop.xlane.xlu0 %961 }
 0x640   :  { %6106 = vpow2.f32 %v971_v35  ;;  %v966_v37 = vsub.f32 %v950_v20, %v962_v36 }
 0x642   :  { %v973_v38 = vmul.f32 1.442695, %v966_v37 }
 0x644   :  { %6108 = vpow2.f32 %v973_v38 }
 0x64d   :  { %v6107_v39 = vpop.eup %6106 }
 0x64e   :  { %v981_v40 = vsel %vm546_vm2, %v6107_v39, 0.0 }
 0x64f   :  { %982 = vadd.xlane.f32.xlu0 %v981_v40 }
 0x651   :  { %v6109_v41 = vpop.eup %6108 }
 0x652   :  { %v984_v42 = vsel %vm546_vm2, %v6109_v41, 0.0 }
 0x653   :  { %985 = vadd.xlane.f32.xlu1 %v984_v42 }
 0x664   :  { %995 = vrot.lane.b32.xlu1 %v6602_v2, %s6415_s5 }
 0x665   :  { %997 = vrot.lane.b32.xlu0 %v6600_v0, %s6415_s5 }
 0x668   :  { %1084 = vrot.lane.b32.xlu1 %v6610_v5, %s6415_s5 }
 0x669   :  { %1369 = vrot.lane.b32.xlu0 %v6600_v0, %s6416_s24 }
 0x66c   :  { %1082 = vrot.lane.b32.xlu1 %v6612_v6, %s6415_s5 }
 0x66d   :  { %1460 = vrot.lane.b32.xlu0 %v6610_v5, %s6416_s24 }
 0x670   :  { %1367 = vrot.lane.b32.xlu1 %v6602_v2, %s6416_s24 }
 0x671   :  { %1365 = vrot.lane.b32.xlu0 %v6600_v0, %s6417_s6 }
 0x674   :  { %1363 = vrot.lane.b32.xlu1 %v6602_v2, %s6417_s6 }
 0x675   :  { %1454 = vrot.lane.b32.xlu0 %v6612_v6, %s6417_s6 }
 0x678   :  { %1458 = vrot.lane.b32.xlu1 %v6612_v6, %s6416_s24 }
 0x67c   :  { %1456 = vrot.lane.b32.xlu1 %v6610_v5, %s6417_s6 }
 0x6be   :  { %v980_v45 = vpop.xlane.xlu1 %979 }
 0x6c0   :  { %v977_v43 = vpop.xlane.xlu0 %976 }
 0x6c1   :  { %6110 = vrcp.f32 %v977_v43 }
 0x6c2   :  { %6112 = vrcp.f32 %v980_v45 }
 0x6ce   :  { %v6111_v44 = vpop.eup %6110 }
 0x6cf   :  { %v991_v46 = vmul.f32 %v6111_v44, %v6105_v31  ;;  %v6113_v50 = vpop.eup %6112 }
 0x6d0   :  { %v992_v53 = vmul.f32 %v6113_v50, %v6103_v29 }
 0x6d1   :  { %5699 = vmatprep.mubr.msk.f32.mxu0 %vm546_vm2, %v991_v46 }
 0x6d8   :  { %v983_v47 = vpop.xlane.xlu0 %982 }
 0x6d9   :  { %6114 = vrcp.f32 %v983_v47 }
 0x6dc   :  { %v986_v48 = vpop.xlane.xlu1 %985  ;;  %v998_v49 = vpop.permute.xlu0 %997 }
 0x6dd   :  { %6116 = vrcp.f32 %v986_v48  ;;  %5695 = vmatprep.subr.mxu0 %v998_v49 }
 0x6de   :  { %5696 = vmatpush3.msra.mxu0 %v998_v49 }
 0x6e0   :  { %v996_v51 = vpop.permute.xlu1 %995  ;;  %v1370_v54 = vpop.permute.xlu0 %1369 }
 0x6e1   :  { %5697 = vmatprep.subr.mxu0 %v996_v51 }
 0x6e2   :  { %5698 = vmatpush3.msra.mxu0 %v996_v51 }
 0x6e3   :  { %5700 = vmatmul.mubr.msk.f32.vlgmr.msra.gmra.mxu0 %vm546_vm2, %v992_v53  ;;  %5709 = vmatprep.subr.mxu0 %v359_v52 }
 0x6e4   :  { %v1085_v55 = vpop.permute.xlu1 %1084  ;;  %5710 = vmatpush3.msra.mxu0 %v359_v52  ;;  %v1461_v60 = vpop.permute.xlu0 %1460 }
 0x6e5   :  { %5702 = vmatprep.subr.mxu1 %v1085_v55  ;;  %5725 = vmatprep.subr.msk.mxu0 %vm369_vm1, %v1370_v54 }
 0x6e6   :  { %v6115_v56 = vpop.eup %6114  ;;  %5703 = vmatpush3.msra.mxu1 %v1085_v55 }
 0x6e7   :  { %v993_v57 = vmul.f32 %v6115_v56, %v6107_v39 }
 0x6e8   :  { %v1083_v58 = vpop.permute.xlu1 %1082  ;;  %v1366_v1 = vpop.permute.xlu0 %1365 }
 0x6e9   :  { %5704 = vmatprep.subr.mxu1 %v1083_v58  ;;  %5706 = vmatprep.mubr.msk.f32.mxu1 %vm546_vm2, %v993_v57 }
 0x6ea   :  { %v6117_v61 = vpop.eup %6116  ;;  %5705 = vmatpush3.msra.mxu1 %v1083_v58 }
 0x6eb   :  { %5717 = vmatprep.subr.mxu1 %v358_v59  ;;  %v994_v62 = vmul.f32 %v6117_v61, %v6109_v41 }
 0x6ec   :  { %v1368_v63 = vpop.permute.xlu1 %1367  ;;  %v1455_v7 = vpop.permute.xlu0 %1454 }
 0x6ed   :  { %5707 = vmatmul.mubr.msk.f32.vlgmr.msra.gmra.mxu1 %vm546_vm2, %v994_v62 }
 0x6ee   :  { %5718 = vmatpush3.msra.mxu1 %v358_v59  ;;  %5719 = vmatprep.mubr.msk.f32.mxu1 %vm369_vm1, %v6684_v14  ;;  %v360_v59 = vld [vmem:[%s7496_s20 + $0x10] sm:$0xff] }
 0x6ef   :  { %5732 = vmatprep.subr.msk.mxu1 %vm369_vm1, %v1461_v60 }
 0x6f0   :  { %v1364_v3 = vpop.permute.xlu1 %1363 }
 0x6f1   :  { %5720 = vmatmul.mubr.msk.f32.vlgmr.msra.gmra.mxu1 %vm369_vm1, %v6682_v13 }
 0x6f2   :  { %5733 = vmatpush3.xpose.msk.msra.mxu1 %vm369_vm1, %v1461_v60  ;;  %5722 = vmatprep.mubr.msk.f32.mxu1 %vm369_vm1, %v6688_v16 }
 0x6f4   :  { %v1459_v4 = vpop.permute.xlu1 %1458 }
 0x6f5   :  { %5723 = vmatmul.mubr.msk.f32.gmra.mxu1 %vm369_vm1, %v6686_v15  ;;  %5734 = vmatprep.subr.msk.mxu1 %vm369_vm1, %v1459_v4 }
 0x6f6   :  { %5735 = vmatpush3.xpose.msk.msra.mxu1 %vm369_vm1, %v1459_v4  ;;  %5736 = vmatprep.mubr.msk.f32.mxu1 %vm369_vm1, %v1455_v7 }
 0x6f8   :  { %v1457_v8 = vpop.permute.xlu1 %1456 }
 0x6f9   :  { %5737 = vmatmul.mubr.msk.f32.vlgmr.msra.gmra.mxu1 %vm369_vm1, %v1457_v8 }
 0x7a3   :  { %v5701_v9 = vpop.f32.mrf.mxu0 }
 0x7a5   :  { %v1073_v10 = vpop.f32.mrf.mxu0 }
 0x7a6   :  { %5711 = vmatprep.mubr.msk.f32.mxu0 %vm369_vm1, %v1073_v10 }
 0x7a7   :  { %5712 = vmatmul.mubr.msk.f32.vlgmr.msra.gmra.mxu0 %vm369_vm1, %v5701_v9 }
 0x7a8   :  { %5726 = vmatpush3.xpose.msk.msra.mxu0 %vm369_vm1, %v1370_v54 }
 0x7a9   :  { %5727 = vmatprep.subr.msk.mxu0 %vm369_vm1, %v1368_v63 }
 0x7ac   :  { %5728 = vmatpush3.xpose.msk.msra.mxu0 %vm369_vm1, %v1368_v63 }
 0x7ad   :  { %v5708_v11 = vpop.f32.mrf.mxu1 }
 0x7af   :  { %v1160_v12 = vpop.f32.mrf.mxu1 }
 0x7b0   :  { %5714 = vmatprep.mubr.msk.f32.mxu0 %vm369_vm1, %v1160_v12 }
 0x7b1   :  { %5715 = vmatmul.mubr.msk.f32.gmra.mxu0 %vm369_vm1, %v5708_v11  ;;  %v6746_v13 = vpop.f32.mrf.mxu1 }
 0x7b2   :  { %5729 = vmatprep.mubr.msk.f32.mxu0 %vm369_vm1, %v1364_v3 }
 0x7b3   :  { %v6748_v14 = vpop.f32.mrf.mxu1 }
 0x7b5   :  { %5730 = vmatmul.mubr.msk.f32.vlgmr.msra.gmra.mxu0 %vm369_vm1, %v1366_v1  ;;  %v6750_v15 = vpop.f32.mrf.mxu1 }
 0x7b7   :  { %v6754_v17 = vpop.f32.mrf.mxu1 }
 0x7b9   :  { %v5738_v20 = vpop.f32.mrf.mxu1 }
 0x7ba   :  { %v1548_v30 = vmul.f32 0.35355338, %v5738_v20 }
 0x7bb   :  { %v1536_v24 = vpop.f32.mrf.mxu1 }
 0x7bc   :  { %v1547_v28 = vmul.f32 0.35355338, %v1536_v24  ;;  %v1558_v32 = vsel %vm546_vm2, %v1548_v30, -inf }
 0x7be   :  { %v1555_v31 = vsel %vm546_vm2, %v1547_v28, -inf }
 0x867   :  { %v6752_v16 = vpop.f32.mrf.mxu0 }
 0x869   :  { %v6756_v18 = vpop.f32.mrf.mxu0 }
 0x871   :  { %v6758_v19 = vpop.f32.mrf.mxu0 }
 0x873   :  { %v6760_v21 = vpop.f32.mrf.mxu0 }
 0x875   :  { %v5731_v22 = vpop.f32.mrf.mxu0 }
 0x876   :  { %v1546_v23 = vmul.f32 0.35355338, %v5731_v22 }
 0x877   :  { %v1445_v25 = vpop.f32.mrf.mxu0 }
 0x878   :  { %v1545_v26 = vmul.f32 0.35355338, %v1445_v25  ;;  %v1552_v27 = vsel %vm546_vm2, %v1546_v23, -inf }
 0x879   :  { %1553 = vmax.xlane.f32.xlu1 %v1552_v27 }
 0x87a   :  { %v1549_v29 = vsel %vm546_vm2, %v1545_v26, -inf }
 0x87b   :  { %1550 = vmax.xlane.f32.xlu0 %v1549_v29 }
 0x87f   :  { %1556 = vmax.xlane.f32.xlu0 %v1555_v31 }
 0x883   :  { %1559 = vmax.xlane.f32.xlu0 %v1558_v32 }
 0x902   :  { %v1554_v35 = vpop.xlane.xlu1 %1553 }
 0x903   :  { %v1562_v38 = vsub.f32 %v1546_v23, %v1554_v35 }
 0x904   :  { %v1551_v33 = vpop.xlane.xlu0 %1550 }
 0x905   :  { %v1561_v34 = vsub.f32 %v1545_v26, %v1551_v33  ;;  %v1567_v43 = vmul.f32 1.442695, %v1562_v38 }
 0x907   :  { %v1565_v39 = vmul.f32 1.442695, %v1561_v34 }
 0x908   :  { %v1557_v36 = vpop.xlane.xlu0 %1556 }
 0x909   :  { %v1563_v37 = vsub.f32 %v1547_v28, %v1557_v36 }
 0x90b   :  { %v1569_v40 = vmul.f32 1.442695, %v1563_v37 }
 0x90c   :  { %v1560_v41 = vpop.xlane.xlu0 %1559 }
 0x90d   :  { %6118 = vpow2.f32 %v1569_v40  ;;  %v1564_v42 = vsub.f32 %v1548_v30, %v1560_v41 }
 0x90e   :  { %6120 = vpow2.f32 %v1565_v39 }
 0x90f   :  { %v1571_v44 = vmul.f32 1.442695, %v1564_v42 }
 0x911   :  { %6122 = vpow2.f32 %v1571_v44 }
 0x912   :  { %6124 = vpow2.f32 %v1567_v43  ;;  %v1350_v43 = vadd.f32 %v6746_v13, %v6752_v16 }
 0x91a   :  { %v6119_v45 = vpop.eup %6118 }
 0x91b   :  { %v1579_v46 = vsel %vm546_vm2, %v6119_v45, 0.0  ;;  %v6121_v47 = vpop.eup %6120 }
 0x91c   :  { %1580 = vadd.xlane.f32.xlu0 %v1579_v46  ;;  %v1573_v49 = vsel %vm546_vm2, %v6121_v47, 0.0 }
 0x91e   :  { %v6123_v48 = vpop.eup %6122 }
 0x91f   :  { %v1582_v50 = vsel %vm546_vm2, %v6123_v48, 0.0  ;;  %v6125_v51 = vpop.eup %6124 }
 0x920   :  { %1574 = vadd.xlane.f32.xlu0 %v1573_v49  ;;  %1583 = vadd.xlane.f32.xlu1 %v1582_v50  ;;  %v1576_v52 = vsel %vm546_vm2, %v6125_v51, 0.0  ;;  %v1360_v49 = vadd.f32 %v6750_v15, %v6758_v19 }
 0x924   :  { %1577 = vadd.xlane.f32.xlu1 %v1576_v52  ;;  %v1355_v52 = vadd.f32 %v6754_v17, %v6760_v21 }
 0x935   :  { %1593 = vrot.lane.b32.xlu1 %v6602_v2, %s6418_s27 }
 0x936   :  { %1595 = vrot.lane.b32.xlu0 %v6600_v0, %s6418_s27 }
 0x939   :  { %1682 = vrot.lane.b32.xlu1 %v6610_v5, %s6418_s27 }
 0x93a   :  { %1874 = vrot.lane.b32.xlu0 %v6600_v0, %s6419_s15 }
 0x93d   :  { %1680 = vrot.lane.b32.xlu1 %v6612_v6, %s6418_s27 }
 0x93e   :  { %1965 = vrot.lane.b32.xlu0 %v6610_v5, %s6419_s15 }
 0x941   :  { %1872 = vrot.lane.b32.xlu1 %v6602_v2, %s6419_s15 }
 0x942   :  { %1870 = vrot.lane.b32.xlu0 %v6600_v0, %s6420_s28 }
 0x945   :  { %1868 = vrot.lane.b32.xlu1 %v6602_v2, %s6420_s28 }
 0x946   :  { %1959 = vrot.lane.b32.xlu0 %v6612_v6, %s6420_s28 }
 0x949   :  { %1963 = vrot.lane.b32.xlu1 %v6612_v6, %s6419_s15 }
 0x94d   :  { %1961 = vrot.lane.b32.xlu1 %v6610_v5, %s6420_s28 }
 0x9a5   :  { %v1581_v53 = vpop.xlane.xlu0 %1580 }
 0x9a6   :  { %6126 = vrcp.f32 %v1581_v53 }
 0x9a9   :  { %v1584_v54 = vpop.xlane.xlu1 %1583  ;;  %v1575_v55 = vpop.xlane.xlu0 %1574 }
 0x9aa   :  { %6128 = vrcp.f32 %v1584_v54 }
 0x9ab   :  { %6130 = vrcp.f32 %v1575_v55 }
 0x9ad   :  { %v1578_v56 = vpop.xlane.xlu1 %1577  ;;  %v1596_v57 = vpop.permute.xlu0 %1595 }
 0x9ae   :  { %6132 = vrcp.f32 %v1578_v56  ;;  %5739 = vmatprep.subr.mxu0 %v1596_v57 }
 0x9af   :  { %5740 = vmatpush3.msra.mxu0 %v1596_v57 }
 0x9b1   :  { %v1594_v58 = vpop.permute.xlu1 %1593  ;;  %v1875_v1 = vpop.permute.xlu0 %1874 }
 0x9b2   :  { %5741 = vmatprep.subr.mxu0 %v1594_v58 }
 0x9b3   :  { %v6127_v60 = vpop.eup %6126  ;;  %5742 = vmatpush3.msra.mxu0 %v1594_v58 }
 0x9b4   :  { %v1591_v61 = vmul.f32 %v6127_v60, %v6119_v45  ;;  %5753 = vmatprep.subr.mxu0 %v360_v59  ;;  %v1345_v45 = vadd.f32 %v6748_v14, %v6756_v18 }
 0x9b5   :  { %v1683_v62 = vpop.permute.xlu1 %1682  ;;  %v1966_v11 = vpop.permute.xlu0 %1965 }
 0x9b6   :  { %5746 = vmatprep.subr.mxu1 %v1683_v62  ;;  %5750 = vmatprep.mubr.msk.f32.mxu1 %vm546_vm2, %v1591_v61 }
 0x9b7   :  { %v6129_v63 = vpop.eup %6128  ;;  %5747 = vmatpush3.msra.mxu1 %v1683_v62 }
 0x9b8   :  { %v6131_v3 = vpop.eup %6130  ;;  %v1592_v8 = vmul.f32 %v6129_v63, %v6123_v48 }
 0x9b9   :  { %v1681_v4 = vpop.permute.xlu1 %1680  ;;  %v1589_v7 = vmul.f32 %v6131_v3, %v6121_v47  ;;  %v1871_v22 = vpop.permute.xlu0 %1870 }
 0x9ba   :  { %5748 = vmatprep.subr.mxu1 %v1681_v4 }
 0x9bb   :  { %v6133_v9 = vpop.eup %6132  ;;  %5743 = vmatprep.mubr.msk.f32.mxu0 %vm546_vm2, %v1589_v7  ;;  %5749 = vmatpush3.msra.mxu1 %v1681_v4 }
 0x9bc   :  { %5751 = vmatmul.mubr.msk.f32.vlgmr.msra.gmra.mxu1 %vm546_vm2, %v1592_v8  ;;  %5761 = vmatprep.subr.msk.mxu1 %vm369_vm1, %v1875_v1  ;;  %v1590_v10 = vmul.f32 %v6133_v9, %v6125_v51 }
 0x9bd   :  { %v1873_v12 = vpop.permute.xlu1 %1872  ;;  %5762 = vmatpush3.xpose.msk.msra.mxu1 %vm369_vm1, %v1875_v1  ;;  %v1960_v30 = vpop.permute.xlu0 %1959 }
 0x9be   :  { %5744 = vmatmul.mubr.msk.f32.vlgmr.msra.gmra.mxu0 %vm546_vm2, %v1590_v10  ;;  %5763 = vmatprep.subr.msk.mxu1 %vm369_vm1, %v1873_v12 }
 0x9bf   :  { %5754 = vmatpush3.msra.mxu0 %v360_v59 }
 0x9c0   :  { %5768 = vmatprep.subr.msk.mxu0 %vm369_vm1, %v1966_v11 }
 0x9c1   :  { %v1869_v20 = vpop.permute.xlu1 %1868  ;;  %5764 = vmatpush3.xpose.msk.msra.mxu1 %vm369_vm1, %v1873_v12 }
 0x9c2   :  { %5765 = vmatprep.mubr.msk.f32.mxu1 %vm369_vm1, %v1869_v20 }
 0x9c4   :  { %5766 = vmatmul.mubr.msk.f32.vlgmr.msra.gmra.mxu1 %vm369_vm1, %v1871_v22 }
 0x9c5   :  { %v1964_v27 = vpop.permute.xlu1 %1963 }
 0x9c9   :  { %v1962_v34 = vpop.permute.xlu1 %1961 }
 0xa7c   :  { %v5752_v23 = vpop.f32.mrf.mxu1 }
 0xa7e   :  { %v5745_v24 = vpop.f32.mrf.mxu0  ;;  %v1758_v26 = vpop.f32.mrf.mxu1 }
 0xa80   :  { %v1671_v25 = vpop.f32.mrf.mxu0 }
 0xa81   :  { %5755 = vmatprep.mubr.msk.f32.mxu0 %vm369_vm1, %v1671_v25 }
 0xa82   :  { %5756 = vmatmul.mubr.msk.f32.vlgmr.msra.gmra.mxu0 %vm369_vm1, %v5745_v24 }
 0xa83   :  { %5769 = vmatpush3.xpose.msk.msra.mxu0 %vm369_vm1, %v1966_v11  ;;  %5758 = vmatprep.mubr.msk.f32.mxu0 %vm369_vm1, %v1758_v26  ;;  %v361_v26 = vld [vmem:[%s7496_s20 + $0x18] sm:$0xff] }
 0xa84   :  { %5770 = vmatprep.subr.msk.mxu0 %vm369_vm1, %v1964_v27  ;;  %v5767_v28 = vpop.f32.mrf.mxu1 }
 0xa85   :  { %v2051_v29 = vmul.f32 0.35355338, %v5767_v28 }
 0xa86   :  { %5759 = vmatmul.mubr.msk.f32.gmra.mxu0 %vm369_vm1, %v5752_v23  ;;  %v1950_v31 = vpop.f32.mrf.mxu1 }
 0xa87   :  { %v2050_v32 = vmul.f32 0.35355338, %v1950_v31  ;;  %5771 = vmatpush3.xpose.msk.msra.mxu0 %vm369_vm1, %v1964_v27  ;;  %5772 = vmatprep.mubr.msk.f32.mxu0 %vm369_vm1, %v1960_v30  ;;  %v2057_v33 = vsel %vm546_vm2, %v2051_v29, -inf  ;;  %v5294_v31 = vld [vmem:[%s7466_s7] ss:$0 sm:$0xff] }
 0xa88   :  { %2058 = vmax.xlane.f32.xlu1 %v2057_v33 }
 0xa89   :  { %v2054_v35 = vsel %vm546_vm2, %v2050_v32, -inf }
 0xa8a   :  { %2055 = vmax.xlane.f32.xlu0 %v2054_v35  ;;  %5773 = vmatmul.mubr.msk.f32.vlgmr.msra.gmra.mxu0 %vm369_vm1, %v1962_v34 }
 0xb11   :  { %v2059_v36 = vpop.xlane.xlu1 %2058 }
 0xb12   :  { %v2067_v37 = vsub.f32 %v2051_v29, %v2059_v36 }
 0xb13   :  { %v2056_v41 = vpop.xlane.xlu0 %2055 }
 0xb14   :  { %v2072_v38 = vmul.f32 1.442695, %v2067_v37  ;;  %v2066_v42 = vsub.f32 %v2050_v32, %v2056_v41  ;;  %v6230_v37 = vld [vmem:[%s7493_s23 + $0x8] sm:$0xff] }
 0xb16   :  { %6134 = vpow2.f32 %v2072_v38  ;;  %v2070_v46 = vmul.f32 1.442695, %v2066_v42 }
 0xb18   :  { %6136 = vpow2.f32 %v2070_v46 }
 0xb23   :  { %v6811_v39 = vpop.eup %6134 }
 0xb24   :  { %v2081_v40 = vsel %vm546_vm2, %v6811_v39, 0.0 }
 0xb25   :  { %2082 = vadd.xlane.f32.xlu1 %v2081_v40  ;;  %v6137_v19 = vpop.eup %6136  ;;  %v6231_v40 = vld [vmem:[%s7493_s23] sm:$0xff] }
 0xb26   :  { %v2078_v57 = vsel %vm546_vm2, %v6137_v19, 0.0 }
 0xb42   :  { %v5757_v44 = vpop.f32.mrf.mxu0 }
 0xb43   :  { %v6819_v47 = vadd.f32 %v5757_v44, %v1350_v43 }
 0xb44   :  { %v1845_v48 = vpop.f32.mrf.mxu0 }
 0xb45   :  { %v6823_v50 = vadd.f32 %v1845_v48, %v1345_v45 }
 0xb46   :  { %v5760_v51 = vpop.f32.mrf.mxu0 }
 0xb47   :  { %v6827_v53 = vadd.f32 %v5760_v51, %v1360_v49 }
 0xb48   :  { %v1855_v13 = vpop.f32.mrf.mxu0 }
 0xb49   :  { %v6829_v16 = vadd.f32 %v1855_v13, %v1355_v52  ;;  %v6233_v52 = vld [vmem:[%s7493_s23 + $0x18] sm:$0xff] }
 0xb4a   :  { %v5774_v14 = vpop.f32.mrf.mxu0 }
 0xb4b   :  { %v2053_v55 = vmul.f32 0.35355338, %v5774_v14  ;;  %v177_v14 = vld [vmem:[%s7467_s8 + $0x18] sm:$0xff] }
 0xb4c   :  { %v2041_v18 = vpop.f32.mrf.mxu0 }
 0xb4d   :  { %v2052_v54 = vmul.f32 0.35355338, %v2041_v18  ;;  %v2063_v15 = vsel %vm546_vm2, %v2053_v55, -inf  ;;  %v176_v18 = vld [vmem:[%s7467_s8 + $0x10] sm:$0xff] }
 0xb4f   :  { %v2060_v56 = vsel %vm546_vm2, %v2052_v54, -inf }
 0xb50   :  { %2061 = vmax.xlane.f32.xlu0 %v2060_v56 }
 0xb54   :  { %2064 = vmax.xlane.f32.xlu0 %v2063_v15 }
 0xb58   :  { %2079 = vadd.xlane.f32.xlu0 %v2078_v57 }
 0xbae   :  { %v2083_v9 = vpop.xlane.xlu1 %2082 }
 0xbd9   :  { %v2062_v17 = vpop.xlane.xlu0 %2061 }
 0xbda   :  { %v2068_v21 = vsub.f32 %v2052_v54, %v2062_v17  ;;  %v175_v54 = vld [vmem:[%s7467_s8 + $0x8] sm:$0xff] }
 0xbdc   :  { %v2074_v58 = vmul.f32 1.442695, %v2068_v21 }
 0xbdd   :  { %v2065_v59 = vpop.xlane.xlu0 %2064 }
 0xbde   :  { %6138 = vpow2.f32 %v2074_v58  ;;  %v2069_v60 = vsub.f32 %v2053_v55, %v2065_v59  ;;  %v174_v55 = vld [vmem:[%s7467_s8] sm:$0xff] }
 0xbe0   :  { %v2076_v61 = vmul.f32 1.442695, %v2069_v60 }
 0xbe1   :  { %v2080_v62 = vpop.xlane.xlu0 %2079 }
 0xbe2   :  { %6140 = vpow2.f32 %v2076_v61 }
 0xbe3   :  { %6142 = vrcp.f32 %v2080_v62 }
 0xbe4   :  { %6144 = vrcp.f32 %v2083_v9 }
 0xbeb   :  { %v6139_v63 = vpop.eup %6138 }
 0xbec   :  { %v2084_v1 = vsel %vm546_vm2, %v6139_v63, 0.0 }
 0xbed   :  { %2085 = vadd.xlane.f32.xlu0 %v2084_v1 }
 0xbef   :  { %v6141_v3 = vpop.eup %6140 }
 0xbf0   :  { %v6143_v4 = vpop.eup %6142  ;;  %v2087_v7 = vsel %vm546_vm2, %v6141_v3, 0.0 }
 0xbf1   :  { %2088 = vadd.xlane.f32.xlu1 %v2087_v7  ;;  %v2094_v8 = vmul.f32 %v6143_v4, %v6137_v19  ;;  %v6145_v20 = vpop.eup %6144 }
 0xbf3   :  { %5779 = vmatprep.mubr.msk.f32.mxu1 %vm546_vm2, %v2094_v8 }
 0xc02   :  { %2098 = vrot.lane.b32.xlu1 %v6602_v2, %s6421_s3  ;;  %v2095_v2 = vmul.f32 %v6145_v20, %v6811_v39  ;;  %v163_v20 = vld [vmem:[%s7498_s21] sm:$0xff] }
 0xc03   :  { %2100 = vrot.lane.b32.xlu0 %v6600_v0, %s6421_s3 }
 0xc06   :  { %2187 = vrot.lane.b32.xlu1 %v6610_v5, %s6421_s3 }
 0xc0a   :  { %2185 = vrot.lane.b32.xlu1 %v6612_v6, %s6421_s3 }
 0xc76   :  { %v2086_v10 = vpop.xlane.xlu0 %2085 }
 0xc77   :  { %6146 = vrcp.f32 %v2086_v10 }
 0xc7a   :  { %v2089_v11 = vpop.xlane.xlu1 %2088  ;;  %v2101_v12 = vpop.permute.xlu0 %2100 }
 0xc7b   :  { %6148 = vrcp.f32 %v2089_v11  ;;  %5775 = vmatprep.subr.mxu1 %v2101_v12 }
 0xc7c   :  { %5776 = vmatpush3.msra.mxu1 %v2101_v12  ;;  %v6921_v12 = vld [vmem:[%s7497_s30] sm:$0xff] }
 0xc7e   :  { %v2099_v22 = vpop.permute.xlu1 %2098 }
 0xc7f   :  { %5777 = vmatprep.subr.mxu1 %v2099_v22 }
 0xc80   :  { %5778 = vmatpush3.msra.mxu1 %v2099_v22  ;;  %v2461_v22 = vadd.f32 %v163_v20, %v6921_v12 }
 0xc81   :  { %5780 = vmatmul.mubr.msk.f32.vlgmr.msra.gmra.mxu1 %vm546_vm2, %v2095_v2  ;;  %5789 = vmatprep.subr.mxu1 %v361_v26  ;;  %v6934_v2 = vld [vmem:[%s7468_s9] ss:$0 sm:$0xff] }
 0xc82   :  { %v2188_v0 = vpop.permute.xlu1 %2187  ;;  %5790 = vmatpush3.msra.mxu1 %v361_v26 }
 0xc83   :  { %5782 = vmatprep.subr.mxu0 %v2188_v0 }
 0xc84   :  { %v6147_v5 = vpop.eup %6146  ;;  %5783 = vmatpush3.msra.mxu0 %v2188_v0 }
 0xc85   :  { %v2096_v6 = vmul.f32 %v6147_v5, %v6139_v63 }
 0xc86   :  { %v2186_v23 = vpop.permute.xlu1 %2185 }
 0xc87   :  { %5784 = vmatprep.subr.mxu0 %v2186_v23  ;;  %5786 = vmatprep.mubr.msk.f32.mxu0 %vm546_vm2, %v2096_v6 }
 0xc88   :  { %v6149_v24 = vpop.eup %6148  ;;  %5785 = vmatpush3.msra.mxu0 %v2186_v23 }
 0xc89   :  { %v2097_v25 = vmul.f32 %v6149_v24, %v6141_v3  ;;  %5797 = vmatprep.subr.mxu0 %v177_v14 }
 0xc8b   :  { %5787 = vmatmul.mubr.msk.f32.vlgmr.msra.gmra.mxu0 %vm546_vm2, %v2097_v25 }
 0xc8c   :  { %5798 = vmatpush3.msra.mxu0 %v177_v14 }
 0xc8d   :  { %5799 = vmatprep.subr.mxu0 %v176_v18 }
 0xc8e   :  { %5800 = vmatpush3.msra.mxu0 %v176_v18 }
 0xc8f   :  { %5801 = vmatprep.subr.mxu0 %v175_v54 }
 0xc90   :  { %5802 = vmatpush3.msra.mxu0 %v175_v54 }
 0xc91   :  { %5803 = vmatprep.subr.mxu0 %v174_v55 }
 0xc92   :  { %5804 = vmatpush3.msra.mxu0 %v174_v55 }
 0xd41   :  { %v5781_v27 = vpop.f32.mrf.mxu1 }
 0xd43   :  { %v2176_v28 = vpop.f32.mrf.mxu1 }
 0xd44   :  { %5791 = vmatprep.mubr.msk.f32.mxu1 %vm369_vm1, %v2176_v28 }
 0xd45   :  { %5792 = vmatmul.mubr.msk.f32.vlgmr.msra.gmra.mxu1 %vm369_vm1, %v5781_v27 }
 0xd4b   :  { %v5788_v29 = vpop.f32.mrf.mxu0 }
 0xd4d   :  { %v2263_v30 = vpop.f32.mrf.mxu0 }
 0xd4e   :  { %5794 = vmatprep.mubr.msk.f32.mxu1 %vm369_vm1, %v2263_v30 }
 0xd4f   :  { %5795 = vmatmul.mubr.msk.f32.gmra.mxu1 %vm369_vm1, %v5788_v29 }
 0xd50   :  { %5819 = vmatprep.mubr.msk.f32.mxu1 %vm181_vm0, %v2461_v22 }
 0xe05   :  { %v5793_v32 = vpop.f32.mrf.mxu1 }
 0xe06   :  { %v2370_v33 = vadd.f32 %v5793_v32, %v6819_v47 }
 0xe07   :  { %v2350_v34 = vpop.f32.mrf.mxu1 }
 0xe08   :  { %v2380_v35 = vadd.f32 %v5294_v31, %v2370_v33  ;;  %v2369_v36 = vadd.f32 %v2350_v34, %v6823_v50  ;;  %v6232_v50 = vld [vmem:[%s7493_s23 + $0x10] sm:$0xff]  ;;  %v5295_v34 = vld [vmem:[#allocation8] ss:$0 sm:$0xff] }
 0xe0a   :  { %v6860_v38 = vadd.f32 %v6230_v37, %v2380_v35  ;;  %v2379_v39 = vadd.f32 %v5294_v31, %v2369_v36 }
 0xe0c   :  { %v6865_v41 = vadd.f32 %v6231_v40, %v2379_v39  ;;  %v2392_v42 = vsel %vm181_vm0, %v6860_v38, 0.0 }
 0xe0d   :  { %2393 = vadd.xlane.f32.xlu1 %v2392_v42  ;;  %v5296_v42 = vld [vmem:[#allocation10] ss:$0 sm:$0xff] }
 0xe0e   :  { %v2389_v43 = vsel %vm181_vm0, %v6865_v41, 0.0 }
 0xe0f   :  { %2390 = vadd.xlane.f32.xlu0 %v2389_v43  ;;  %v5796_v44 = vpop.f32.mrf.mxu1 }
 0xe10   :  { %v2372_v45 = vadd.f32 %v5796_v44, %v6827_v53 }
 0xe11   :  { %v2360_v46 = vpop.f32.mrf.mxu1 }
 0xe12   :  { %v2371_v47 = vadd.f32 %v2360_v46, %v6829_v16  ;;  %v2382_v48 = vadd.f32 %v5294_v31, %v2372_v45  ;;  %v158_v45 = vld [vmem:[%s7497_s30 + $0x8] sm:$0xff] }
 0xe13   :  { %v164_v46 = vld [vmem:[%s7498_s21 + $0x8] sm:$0xff] }
 0xe14   :  { %v2381_v49 = vadd.f32 %v5294_v31, %v2371_v47  ;;  %v6881_v13 = vadd.f32 %v6233_v52, %v2382_v48  ;;  %v159_v48 = vld [vmem:[%s7497_s30 + $0x10] sm:$0xff]  ;;  %v2462_v52 = vadd.f32 %v164_v46, %v158_v45 }
 0xe16   :  { %v6876_v51 = vadd.f32 %v6232_v50, %v2381_v49  ;;  %v2398_v16 = vsel %vm181_vm0, %v6881_v13, 0.0  ;;  %v165_v49 = vld [vmem:[%s7498_s21 + $0x10] sm:$0xff] }
 0xe18   :  { %v2395_v53 = vsel %vm181_vm0, %v6876_v51, 0.0 }
 0xe19   :  { %2396 = vadd.xlane.f32.xlu0 %v2395_v53 }
 0xe1d   :  { %2399 = vadd.xlane.f32.xlu0 %v2398_v16  ;;  %v2463_v16 = vadd.f32 %v165_v49, %v159_v48 }
 0xe96   :  { %v2394_v56 = vpop.xlane.xlu1 %2393 }
 0xe97   :  { %v2402_v15 = vmul.f32 0.03125, %v2394_v56 }
 0xe98   :  { %v2391_v19 = vpop.xlane.xlu0 %2390 }
 0xe99   :  { %v2406_v57 = vsub.f32 %v6860_v38, %v2402_v15  ;;  %v2401_v17 = vmul.f32 0.03125, %v2391_v19 }
 0xe9b   :  { %v2405_v21 = vsub.f32 %v6865_v41, %v2401_v17  ;;  %v2410_v58 = vmul.f32 %v2406_v57, %v2406_v57  ;;  %v162_v17 = vld [vmem:[%s7497_s30 + $0x28] sm:$0xff] }
 0xe9d   :  { %v2416_v59 = vsel %vm181_vm0, %v2410_v58, 0.0  ;;  %v2409_v60 = vmul.f32 %v2405_v21, %v2405_v21 }
 0xe9e   :  { %2417 = vadd.xlane.f32.xlu1 %v2416_v59 }
 0xe9f   :  { %v2413_v61 = vsel %vm181_vm0, %v2409_v60, 0.0 }
 0xea0   :  { %2414 = vadd.xlane.f32.xlu0 %v2413_v61 }
 0xea2   :  { %v2397_v62 = vpop.xlane.xlu0 %2396 }
 0xea3   :  { %v2403_v63 = vmul.f32 0.03125, %v2397_v62 }
 0xea5   :  { %v6904_v1 = vsub.f32 %v6876_v51, %v2403_v63 }
 0xea6   :  { %v2400_v3 = vpop.xlane.xlu0 %2399 }
 0xea7   :  { %v2404_v4 = vmul.f32 0.03125, %v2400_v3  ;;  %v2411_v7 = vmul.f32 %v6904_v1, %v6904_v1 }
 0xea9   :  { %v6909_v8 = vsub.f32 %v6881_v13, %v2404_v4  ;;  %v2419_v9 = vsel %vm181_vm0, %v2411_v7, 0.0 }
 0xeaa   :  { %2420 = vadd.xlane.f32.xlu0 %v2419_v9 }
 0xeab   :  { %v2412_v10 = vmul.f32 %v6909_v8, %v6909_v8 }
 0xead   :  { %v2422_v11 = vsel %vm181_vm0, %v2412_v10, 0.0 }
 0xeae   :  { %2423 = vadd.xlane.f32.xlu1 %v2422_v11 }
 0xebf   :  { %2578 = vrot.lane.b32.xlu1 %v176_v18, %s6411_s18 }
 0xec0   :  { %2580 = vrot.lane.b32.xlu0 %v177_v14, %s6411_s18 }
 0xec3   :  { %2576 = vrot.lane.b32.xlu1 %v175_v54, %s6411_s18 }
 0xec4   :  { %2586 = vrot.lane.b32.xlu0 %v6934_v2, %s6411_s18 }
 0xec7   :  { %2574 = vrot.lane.b32.xlu1 %v174_v55, %s6411_s18 }
 0xec8   :  { %2706 = vrot.lane.b32.xlu0 %v176_v18, %s6412_s19  ;;  %v166_v18 = vld [vmem:[%s7498_s21 + $0x18] sm:$0xff] }
 0xecb   :  { %2708 = vrot.lane.b32.xlu1 %v177_v14, %s6412_s19  ;;  %v160_v14 = vld [vmem:[%s7497_s30 + $0x18] sm:$0xff] }
 0xecc   :  { %2702 = vrot.lane.b32.xlu0 %v174_v55, %s6412_s19  ;;  %v167_v55 = vld [vmem:[%s7498_s21 + $0x20] sm:$0xff]  ;;  %v2464_v15 = vadd.f32 %v166_v18, %v160_v14 }
 0xecf   :  { %2704 = vrot.lane.b32.xlu1 %v175_v54, %s6412_s19  ;;  %v161_v54 = vld [vmem:[%s7497_s30 + $0x20] sm:$0xff] }
 0xf27   :  { %v2418_v0 = vpop.xlane.xlu1 %2417 }
 0xf28   :  { %v2426_v5 = vmul.f32 0.03125, %v2418_v0 }
 0xf29   :  { %v2415_v6 = vpop.xlane.xlu0 %2414 }
 0xf2a   :  { %v2430_v23 = vadd.f32 1e-05, %v2426_v5  ;;  %v2425_v24 = vmul.f32 0.03125, %v2415_v6 }
 0xf2c   :  { %6150 = vrsqrt.f32 %v2430_v23  ;;  %v2429_v25 = vadd.f32 1e-05, %v2425_v24 }
 0xf2e   :  { %6152 = vrsqrt.f32 %v2429_v25 }
 0xf33   :  { %v2421_v26 = vpop.xlane.xlu0 %2420 }
 0xf34   :  { %v2427_v27 = vmul.f32 0.03125, %v2421_v26 }
 0xf36   :  { %v2431_v28 = vadd.f32 1e-05, %v2427_v27 }
 0xf37   :  { %v2424_v29 = vpop.xlane.xlu1 %2423  ;;  %v2581_v30 = vpop.permute.xlu0 %2580 }
 0xf38   :  { %6154 = vrsqrt.f32 %v2431_v28  ;;  %v2428_v31 = vmul.f32 0.03125, %v2424_v29  ;;  %5811 = vmatprep.subr.mxu1 %v2581_v30 }
 0xf39   :  { %v6151_v32 = vpop.eup %6150  ;;  %5812 = vmatpush3.msra.mxu1 %v2581_v30 }
 0xf3a   :  { %v2432_v33 = vadd.f32 1e-05, %v2428_v31  ;;  %v2438_v35 = vmul.f32 %v6151_v32, %v2406_v57  ;;  %v2465_v57 = vadd.f32 %v167_v55, %v161_v54 }
 0xf3b   :  { %v6153_v36 = vpop.eup %6152  ;;  %v2579_v37 = vpop.permute.xlu1 %2578 }
 0xf3c   :  { %6156 = vrsqrt.f32 %v2432_v33  ;;  %5813 = vmatprep.subr.mxu1 %v2579_v37  ;;  %v2437_v39 = vmul.f32 %v6153_v36, %v2405_v21  ;;  %v2448_v40 = vmul.f32 %v5295_v34, %v2438_v35  ;;  %v168_v21 = vld [vmem:[%s7498_s21 + $0x28] sm:$0xff]  ;;  %v2587_v4 = vpop.permute.xlu0 %2586 }
 0xf3d   :  { %5814 = vmatpush3.msra.mxu1 %v2579_v37  ;;  %v2466_v62 = vadd.f32 %v168_v21, %v162_v17 }
 0xf3e   :  { %v2447_v43 = vmul.f32 %v5295_v34, %v2437_v39  ;;  %v2458_v50 = vadd.f32 %v5296_v42, %v2448_v40 }
 0xf3f   :  { %v2577_v44 = vpop.permute.xlu1 %2576 }
 0xf40   :  { %5815 = vmatprep.subr.mxu1 %v2577_v44  ;;  %v2457_v47 = vadd.f32 %v5296_v42, %v2447_v43  ;;  %v2707_v7 = vpop.permute.xlu0 %2706 }
 0xf41   :  { %5816 = vmatpush3.msra.mxu1 %v2577_v44 }
 0xf42   :  { %5805 = vmatprep.mubr.msk.f32.mxu0 %vm181_vm0, %v2457_v47 }
 0xf43   :  { %v2575_v53 = vpop.permute.xlu1 %2574  ;;  %5806 = vmatmul.mubr.msk.f32.vlgmr.msra.gmra.mxu0 %vm181_vm0, %v2458_v50 }
 0xf44   :  { %5817 = vmatprep.subr.mxu1 %v2575_v53 }
 0xf45   :  { %v6155_v56 = vpop.eup %6154  ;;  %5818 = vmatpush3.msra.mxu1 %v2575_v53 }
 0xf46   :  { %5820 = vmatmul.mubr.msk.f32.vlgmr.msra.gmra.mxu1 %vm181_vm0, %v2462_v52  ;;  %v2439_v19 = vmul.f32 %v6155_v56, %v6904_v1 }
 0xf47   :  { %5822 = vmatprep.mubr.msk.f32.mxu1 %vm181_vm0, %v2463_v16  ;;  %v2709_v58 = vpop.permute.xlu1 %2708 }
 0xf48   :  { %v2449_v59 = vmul.f32 %v5295_v34, %v2439_v19  ;;  %5828 = vmatprep.subr.mxu0 %v2709_v58 }
 0xf49   :  { %v6157_v60 = vpop.eup %6156  ;;  %5829 = vmatpush3.msra.mxu0 %v2709_v58 }
 0xf4a   :  { %5823 = vmatmul.mubr.msk.f32.gmra.mxu1 %vm181_vm0, %v2464_v15  ;;  %v2459_v61 = vadd.f32 %v5296_v42, %v2449_v59  ;;  %v2440_v63 = vmul.f32 %v6157_v60, %v6909_v8  ;;  %5830 = vmatprep.subr.mxu0 %v2707_v7  ;;  %v2703_v8 = vpop.permute.xlu0 %2702 }
 0xf4b   :  { %5825 = vmatprep.mubr.msk.f32.mxu1 %vm181_vm0, %v2465_v57  ;;  %v2705_v9 = vpop.permute.xlu1 %2704  ;;  %5831 = vmatpush3.msra.mxu0 %v2707_v7 }
 0xf4c   :  { %5808 = vmatprep.mubr.msk.f32.mxu0 %vm181_vm0, %v2459_v61  ;;  %v2450_v1 = vmul.f32 %v5295_v34, %v2440_v63  ;;  %5832 = vmatprep.subr.mxu0 %v2705_v9 }
 0xf4d   :  { %5833 = vmatpush3.msra.mxu0 %v2705_v9 }
 0xf4e   :  { %5826 = vmatmul.mubr.msk.f32.gmra.mxu1 %vm181_vm0, %v2466_v62  ;;  %v2460_v3 = vadd.f32 %v5296_v42, %v2450_v1  ;;  %5834 = vmatprep.subr.mxu0 %v2703_v8 }
 0xf4f   :  { %5835 = vmatpush3.msra.mxu0 %v2703_v8 }
 0xf50   :  { %5809 = vmatmul.mubr.msk.f32.gmra.mxu0 %vm181_vm0, %v2460_v3 }
 0xf51   :  { %5836 = vmatprep.mubr.msk.f32.mxu0 %vm181_vm0, %v6921_v12 }
 0xf54   :  { %5837 = vmatmul.mubr.msk.f32.vlgmr.msra.gmra.mxu0 %vm181_vm0, %v158_v45 }
 0xf55   :  { %5839 = vmatprep.mubr.msk.f32.mxu0 %vm181_vm0, %v159_v48 }
 0xf58   :  { %5840 = vmatmul.mubr.msk.f32.gmra.mxu0 %vm181_vm0, %v160_v14 }
 0xf59   :  { %5842 = vmatprep.mubr.msk.f32.mxu0 %vm181_vm0, %v161_v54 }
 0xf5c   :  { %5843 = vmatmul.mubr.msk.f32.gmra.mxu0 %vm181_vm0, %v162_v17 }
0x1003   :  { %v5807_v10 = vpop.f32.mrf.mxu0 }
0x1004   :  { %v7033_v33 = vadd.f32 %v5807_v10, %v6934_v2 }
0x1005   :  { %v2551_v11 = vpop.f32.mrf.mxu0 }
0x1006   :  { %v6989_v12 = vadd.f32 %v6934_v2, %v2551_v11  ;;  %v5821_v20 = vpop.f32.mrf.mxu1 }
0x1007   :  { %v6995_v24 = vadd.f32 %v5821_v20, %v2587_v4 }
0x1008   :  { %v2673_v22 = vpop.f32.mrf.mxu1  ;;  %5851 = vmatprep.mubr.msk.f32.mxu1 %vm369_vm1, %v6989_v12 }
0x1009   :  { %v7011_v30 = vadd.f32 %v2673_v22, %v2587_v4 }
0x100a   :  { %v5824_v0 = vpop.f32.mrf.mxu1 }
0x100b   :  { %v7020_v32 = vadd.f32 %v5824_v0, %v2587_v4 }
0x100c   :  { %v2683_v5 = vpop.f32.mrf.mxu1 }
0x100d   :  { %v6993_v6 = vadd.f32 %v2683_v5, %v2587_v4 }
0x100e   :  { %v5827_v23 = vpop.f32.mrf.mxu1 }
0x100f   :  { %v6997_v25 = vadd.f32 %v5827_v23, %v2587_v4  ;;  %5845 = vmatprep.subr.msk.mxu1 %vm369_vm1, %v6993_v6 }
0x1010   :  { %v5810_v26 = vpop.f32.mrf.mxu0  ;;  %v2693_v27 = vpop.f32.mrf.mxu1  ;;  %5846 = vmatpush3.xpose.msk.msra.mxu1 %vm369_vm1, %v6993_v6 }
0x1011   :  { %v7003_v28 = vadd.f32 %v2693_v27, %v2587_v4  ;;  %5847 = vmatprep.subr.msk.mxu1 %vm369_vm1, %v6995_v24  ;;  %5854 = vmatprep.subr.msk.mxu0 %vm369_vm1, %v6997_v25  ;;  %v7038_v34 = vadd.f32 %v5810_v26, %v6934_v2 }
0x1012   :  { %v2561_v29 = vpop.f32.mrf.mxu0  ;;  %5855 = vmatpush3.xpose.msk.msra.mxu0 %vm369_vm1, %v6997_v25 }
0x1013   :  { %v7014_v31 = vadd.f32 %v6934_v2, %v2561_v29  ;;  %5856 = vmatprep.subr.msk.mxu0 %vm369_vm1, %v7003_v28 }
0x1014   :  { %5848 = vmatpush3.xpose.msk.msra.mxu1 %vm369_vm1, %v6995_v24  ;;  %v7044_v35 = vpop.f32.mrf.mxu0 }
0x1015   :  { %5849 = vmatprep.subr.msk.mxu1 %vm369_vm1, %v7011_v30  ;;  %5860 = vmatprep.mubr.msk.f32.mxu0 %vm369_vm1, %v7014_v31 }
0x1016   :  { %5857 = vmatpush3.xpose.msk.msra.mxu0 %vm369_vm1, %v7003_v28  ;;  %v7046_v36 = vpop.f32.mrf.mxu0 }
0x1017   :  { %5858 = vmatprep.subr.msk.mxu0 %vm369_vm1, %v7020_v32 }
0x1018   :  { %5850 = vmatpush3.xpose.msk.msra.mxu1 %vm369_vm1, %v7011_v30  ;;  %v7048_v37 = vpop.f32.mrf.mxu0 }
0x101a   :  { %5859 = vmatpush3.xpose.msk.msra.mxu0 %vm369_vm1, %v7020_v32  ;;  %v7050_v39 = vpop.f32.mrf.mxu0 }
0x101b   :  { %5852 = vmatmul.mubr.msk.f32.vlgmr.msra.gmra.mxu1 %vm369_vm1, %v7033_v33 }
0x101c   :  { %v7052_v40 = vpop.f32.mrf.mxu0 }
0x101d   :  { %5861 = vmatmul.mubr.msk.f32.vlgmr.msra.gmra.mxu0 %vm369_vm1, %v7038_v34 }
0x101e   :  { %v7054_v42 = vpop.f32.mrf.mxu0 }
0x10db   :  { %v5853_v43 = vpop.f32.mrf.mxu1 }
0x10dc   :  { %v3016_v44 = vmul.f32 0.35355338, %v5853_v43 }
0x10dd   :  { %v2916_v45 = vpop.f32.mrf.mxu1  ;;  %v5862_v46 = vpop.f32.mrf.mxu0 }
0x10de   :  { %v3015_v47 = vmul.f32 0.35355338, %v2916_v45  ;;  %v3023_v48 = vsel %vm3019_vm3, %v3016_v44, -inf  ;;  %v3018_v53 = vmul.f32 0.35355338, %v5862_v46 }
0x10df   :  { %3024 = vmax.xlane.f32.xlu0 %v3023_v48  ;;  %v3006_v49 = vpop.f32.mrf.mxu0 }
0x10e0   :  { %v3017_v50 = vmul.f32 0.35355338, %v3006_v49  ;;  %v3020_v52 = vsel %vm3019_vm3, %v3015_v47, -inf  ;;  %v3029_v14 = vsel %vm3019_vm3, %v3018_v53, -inf }
0x10e1   :  { %3021 = vmax.xlane.f32.xlu1 %v3020_v52 }
0x10e2   :  { %v3026_v16 = vsel %vm3019_vm3, %v3017_v50, -inf }
0x10e3   :  { %3027 = vmax.xlane.f32.xlu0 %v3026_v16 }
0x10e7   :  { %3030 = vmax.xlane.f32.xlu0 %v3029_v14 }
0x1168   :  { %v3025_v18 = vpop.xlane.xlu0 %3024 }
0x1169   :  { %v3033_v54 = vsub.f32 %v3016_v44, %v3025_v18 }
0x116a   :  { %v3022_v55 = vpop.xlane.xlu1 %3021 }
0x116b   :  { %v3038_v56 = vmul.f32 1.442695, %v3033_v54  ;;  %v3032_v15 = vsub.f32 %v3015_v47, %v3022_v55 }
0x116c   :  { %v3028_v59 = vpop.xlane.xlu0 %3027 }
0x116d   :  { %6158 = vpow2.f32 %v3038_v56  ;;  %v3036_v19 = vmul.f32 1.442695, %v3032_v15 }
0x116f   :  { %6160 = vpow2.f32 %v3036_v19 }
0x1170   :  { %v3031_v60 = vpop.xlane.xlu0 %3030 }
0x1171   :  { %v3035_v61 = vsub.f32 %v3018_v53, %v3031_v60 }
0x1173   :  { %v3042_v62 = vmul.f32 1.442695, %v3035_v61 }
0x1175   :  { %6162 = vpow2.f32 %v3042_v62 }
0x117a   :  { %v6159_v57 = vpop.eup %6158 }
0x117b   :  { %v3047_v17 = vsel %vm3019_vm3, %v6159_v57, 0.0 }
0x117c   :  { %v6161_v21 = vpop.eup %6160  ;;  %3048 = vadd.xlane.f32.xlu0 %v3047_v17 }
0x117d   :  { %v3044_v58 = vsel %vm3019_vm3, %v6161_v21, 0.0 }
0x117e   :  { %3045 = vadd.xlane.f32.xlu1 %v3044_v58 }
0x1182   :  { %v7074_v63 = vpop.eup %6162 }
0x1183   :  { %v3053_v3 = vsel %vm3019_vm3, %v7074_v63, 0.0 }
0x118f   :  { %2714 = vrot.lane.b32.xlu1 %v6934_v2, %s6412_s19  ;;  %v3034_v2 = vsub.f32 %v3017_v50, %v3028_v59 }
0x1191   :  { %v3040_v1 = vmul.f32 1.442695, %v3034_v2 }
0x1192   :  { %3234 = vrot.lane.b32.xlu0 %v6993_v6, %s6414_s1 }
0x1193   :  { %3232 = vrot.lane.b32.xlu1 %v6995_v24, %s6414_s1  ;;  %6164 = vpow2.f32 %v3040_v1 }
0x1197   :  { %3329 = vrot.lane.b32.xlu1 %v6997_v25, %s6414_s1 }
0x119b   :  { %3230 = vrot.lane.b32.xlu1 %v7011_v30, %s6414_s1 }
0x119f   :  { %3327 = vrot.lane.b32.xlu1 %v7003_v28, %s6414_s1 }
0x11a0   :  { %v6165_v4 = vpop.eup %6164 }
0x11a1   :  { %v3050_v7 = vsel %vm3019_vm3, %v6165_v4, 0.0 }
0x11b1   :  { %3054 = vadd.xlane.f32.xlu0 %v3053_v3 }
0x11c3   :  { %3051 = vadd.xlane.f32.xlu1 %v3050_v7 }
0x11c7   :  { %3226 = vrot.lane.b32.xlu0 %v6989_v12, %s6414_s1 }
0x11cb   :  { %3228 = vrot.lane.b32.xlu0 %v7033_v33, %s6414_s1 }
0x11cf   :  { %3321 = vrot.lane.b32.xlu0 %v7014_v31, %s6414_s1 }
0x11d4   :  { %3325 = vrot.lane.b32.xlu1 %v7020_v32, %s6414_s1 }
0x11d8   :  { %3323 = vrot.lane.b32.xlu1 %v7038_v34, %s6414_s1 }
0x1205   :  { %v3049_v9 = vpop.xlane.xlu0 %3048 }
0x1206   :  { %6166 = vrcp.f32 %v3049_v9 }
0x1207   :  { %v3046_v8 = vpop.xlane.xlu1 %3045 }
0x1208   :  { %6168 = vrcp.f32 %v3046_v8 }
0x1209   :  { %v3235_v10 = vpop.permute.xlu0 %3234 }
0x120a   :  { %5881 = vmatprep.subr.msk.mxu0 %vm369_vm1, %v3235_v10 }
0x120b   :  { %v2715_v11 = vpop.permute.xlu1 %2714  ;;  %5882 = vmatpush3.xpose.msk.msra.mxu0 %vm369_vm1, %v3235_v10 }
0x120c   :  { %v7092_v20 = vadd.f32 %v7050_v39, %v2715_v11  ;;  %v7095_v22 = vadd.f32 %v7044_v35, %v2715_v11  ;;  %v7100_v5 = vadd.f32 %v7046_v36, %v2715_v11  ;;  %v7107_v23 = vadd.f32 %v7052_v40, %v2715_v11 }
0x120d   :  { %v7115_v43 = vadd.f32 %v7054_v42, %v2715_v11  ;;  %v7121_v40 = vadd.f32 %v7048_v37, %v2715_v11 }
0x120e   :  { %5863 = vmatprep.subr.mxu1 %v7092_v20 }
0x120f   :  { %v3233_v0 = vpop.permute.xlu1 %3232  ;;  %5864 = vmatpush3.msra.mxu1 %v7092_v20 }
0x1210   :  { %5865 = vmatprep.subr.mxu1 %v7095_v22  ;;  %5883 = vmatprep.subr.msk.mxu0 %vm369_vm1, %v3233_v0 }
0x1211   :  { %5866 = vmatpush3.msra.mxu1 %v7095_v22  ;;  %5884 = vmatpush3.xpose.msk.msra.mxu0 %vm369_vm1, %v3233_v0 }
0x1212   :  { %5867 = vmatprep.subr.mxu1 %v7100_v5 }
0x1213   :  { %v3330_v26 = vpop.permute.xlu1 %3329  ;;  %5868 = vmatpush3.msra.mxu1 %v7100_v5  ;;  %v6167_v27 = vpop.eup %6166 }
0x1214   :  { %5872 = vmatprep.subr.mxu1 %v7107_v23  ;;  %v3061_v39 = vmul.f32 %v6167_v27, %v6159_v57 }
0x1215   :  { %v6169_v29 = vpop.eup %6168 }
0x1216   :  { %v3060_v35 = vmul.f32 %v6169_v29, %v6161_v21 }
0x1217   :  { %v3231_v36 = vpop.permute.xlu1 %3230 }
0x1218   :  { %5869 = vmatprep.mubr.msk.f32.mxu1 %vm3019_vm3, %v3060_v35  ;;  %5885 = vmatprep.subr.msk.mxu0 %vm369_vm1, %v3231_v36 }
0x1219   :  { %5870 = vmatmul.mubr.msk.f32.vlgmr.msra.gmra.mxu1 %vm3019_vm3, %v3061_v39  ;;  %5886 = vmatpush3.xpose.msk.msra.mxu0 %vm369_vm1, %v3231_v36 }
0x121a   :  { %5873 = vmatpush3.msra.mxu1 %v7107_v23 }
0x121b   :  { %5874 = vmatprep.subr.mxu1 %v7115_v43  ;;  %v3328_v46 = vpop.permute.xlu1 %3327 }
0x121c   :  { %5875 = vmatpush3.msra.mxu1 %v7115_v43 }
0x121d   :  { %5876 = vmatprep.subr.mxu1 %v7121_v40 }
0x121e   :  { %5877 = vmatpush3.msra.mxu1 %v7121_v40 }
0x121f   :  { %5890 = vmatprep.subr.msk.mxu1 %vm369_vm1, %v3330_v26 }
0x123a   :  { %v3055_v42 = vpop.xlane.xlu0 %3054 }
0x123b   :  { %6170 = vrcp.f32 %v3055_v42 }
0x123e   :  { %v3227_v44 = vpop.permute.xlu0 %3226 }
0x123f   :  { %5887 = vmatprep.mubr.msk.f32.mxu0 %vm369_vm1, %v3227_v44 }
0x1242   :  { %v3229_v45 = vpop.permute.xlu0 %3228 }
0x1243   :  { %5888 = vmatmul.mubr.msk.f32.vlgmr.msra.gmra.mxu0 %vm369_vm1, %v3229_v45 }
0x1246   :  { %v3322_v52 = vpop.permute.xlu0 %3321 }
0x1248   :  { %v6171_v47 = vpop.eup %6170 }
0x1249   :  { %v3063_v50 = vmul.f32 %v6171_v47, %v7074_v63 }
0x124c   :  { %v3052_v37 = vpop.xlane.xlu1 %3051 }
0x124d   :  { %6172 = vrcp.f32 %v3052_v37  ;;  %v2831_v37 = vld [vmem:[%s7469_s10 + $0x8] sm:$0xff] }
0x124e   :  { %5917 = vmatprep.subr.mxu0 %v2831_v37 }
0x124f   :  { %5918 = vmatpush3.msra.mxu0 %v2831_v37 }
0x1250   :  { %v3326_v53 = vpop.permute.xlu1 %3325 }
0x1254   :  { %v3324_v16 = vpop.permute.xlu1 %3323 }
0x125a   :  { %v6173_v48 = vpop.eup %6172 }
0x125b   :  { %v3062_v49 = vmul.f32 %v6173_v48, %v6165_v4 }
0x125d   :  { %5878 = vmatprep.mubr.msk.f32.mxu1 %vm3019_vm3, %v3062_v49 }
0x125e   :  { %5879 = vmatmul.mubr.msk.f32.vlgmr.msra.gmra.mxu1 %vm3019_vm3, %v3063_v50 }
0x125f   :  { %5891 = vmatpush3.xpose.msk.msra.mxu1 %vm369_vm1, %v3330_v26  ;;  %5896 = vmatprep.mubr.msk.f32.mxu1 %vm369_vm1, %v3322_v52 }
0x1260   :  { %5892 = vmatprep.subr.msk.mxu1 %vm369_vm1, %v3328_v46 }
0x1263   :  { %5893 = vmatpush3.xpose.msk.msra.mxu1 %vm369_vm1, %v3328_v46 }
0x1264   :  { %5894 = vmatprep.subr.msk.mxu1 %vm369_vm1, %v3326_v53 }
0x1267   :  { %5895 = vmatpush3.xpose.msk.msra.mxu1 %vm369_vm1, %v3326_v53 }
0x126a   :  { %5897 = vmatmul.mubr.msk.f32.vlgmr.msra.gmra.mxu1 %vm369_vm1, %v3324_v16 }
0x12d9   :  { %v7142_v19 = vpop.f32.mrf.mxu1 }
0x12db   :  { %v7144_v57 = vpop.f32.mrf.mxu1 }
0x1303   :  { %v5889_v14 = vpop.f32.mrf.mxu0 }
0x1304   :  { %v3417_v18 = vmul.f32 0.35355338, %v5889_v14 }
0x1305   :  { %v3312_v54 = vpop.f32.mrf.mxu0 }
0x1306   :  { %v3416_v55 = vmul.f32 0.35355338, %v3312_v54  ;;  %v3423_v56 = vsel %vm3019_vm3, %v3417_v18, -inf }
0x1307   :  { %3424 = vmax.xlane.f32.xlu1 %v3423_v56 }
0x1308   :  { %v3420_v15 = vsel %vm3019_vm3, %v3416_v55, -inf }
0x1309   :  { %3421 = vmax.xlane.f32.xlu0 %v3420_v15 }
0x131e   :  { %v7146_v17 = vpop.f32.mrf.mxu1 }
0x1320   :  { %v7148_v21 = vpop.f32.mrf.mxu1 }
0x132a   :  { %v5898_v58 = vpop.f32.mrf.mxu1 }
0x132b   :  { %v3419_v61 = vmul.f32 0.35355338, %v5898_v58 }
0x132c   :  { %v3407_v59 = vpop.f32.mrf.mxu1 }
0x132d   :  { %v3418_v60 = vmul.f32 0.35355338, %v3407_v59  ;;  %v3429_v2 = vsel %vm3019_vm3, %v3419_v61, -inf }
0x132f   :  { %v3426_v62 = vsel %vm3019_vm3, %v3418_v60, -inf }
0x1330   :  { %3427 = vmax.xlane.f32.xlu0 %v3426_v62 }
0x1334   :  { %3430 = vmax.xlane.f32.xlu0 %v3429_v2 }
0x1390   :  { %v3425_v63 = vpop.xlane.xlu1 %3424 }
0x1391   :  { %v3433_v1 = vsub.f32 %v3417_v18, %v3425_v63 }
0x1392   :  { %v3422_v3 = vpop.xlane.xlu0 %3421 }
0x1393   :  { %v3438_v4 = vmul.f32 1.442695, %v3433_v1  ;;  %v3432_v7 = vsub.f32 %v3416_v55, %v3422_v3 }
0x1395   :  { %6174 = vpow2.f32 %v3438_v4  ;;  %v3436_v9 = vmul.f32 1.442695, %v3432_v7 }
0x1397   :  { %6176 = vpow2.f32 %v3436_v9 }
0x13a2   :  { %v6175_v8 = vpop.eup %6174 }
0x13a3   :  { %v3447_v10 = vsel %vm3019_vm3, %v6175_v8, 0.0 }
0x13a4   :  { %v6177_v11 = vpop.eup %6176  ;;  %3448 = vadd.xlane.f32.xlu1 %v3447_v10 }
0x13a5   :  { %v3444_v0 = vsel %vm3019_vm3, %v6177_v11, 0.0 }
0x13a6   :  { %3445 = vadd.xlane.f32.xlu0 %v3444_v0 }
0x13b5   :  { %3469 = vrot.lane.b32.xlu1 %v7095_v22, %s6414_s1 }
0x13b9   :  { %3467 = vrot.lane.b32.xlu1 %v7100_v5, %s6414_s1  ;;  %v3428_v26 = vpop.xlane.xlu0 %3427 }
0x13ba   :  { %v3434_v27 = vsub.f32 %v3418_v60, %v3428_v26  ;;  %v2830_v60 = vld [vmem:[%s7469_s10] sm:$0xff] }
0x13bc   :  { %3471 = vrot.lane.b32.xlu0 %v7092_v20, %s6414_s1  ;;  %v3440_v35 = vmul.f32 1.442695, %v3434_v27 }
0x13bd   :  { %3564 = vrot.lane.b32.xlu1 %v7107_v23, %s6414_s1  ;;  %v3431_v29 = vpop.xlane.xlu0 %3430 }
0x13be   :  { %v3435_v36 = vsub.f32 %v3419_v61, %v3431_v29  ;;  %6178 = vpow2.f32 %v3440_v35 }
0x13c0   :  { %v3442_v39 = vmul.f32 1.442695, %v3435_v36 }
0x13c2   :  { %6180 = vpow2.f32 %v3442_v39 }
0x13cb   :  { %v6179_v42 = vpop.eup %6178 }
0x13cc   :  { %v3450_v44 = vsel %vm3019_vm3, %v6179_v42, 0.0 }
0x13cf   :  { %v6181_v45 = vpop.eup %6180 }
0x13d0   :  { %v3453_v46 = vsel %vm3019_vm3, %v6181_v45, 0.0 }
0x13db   :  { %3451 = vadd.xlane.f32.xlu0 %v3450_v44 }
0x13e1   :  { %3454 = vadd.xlane.f32.xlu1 %v3453_v46 }
0x13f1   :  { %3562 = vrot.lane.b32.xlu0 %v7115_v43, %s6414_s1 }
0x13f2   :  { %3560 = vrot.lane.b32.xlu1 %v7121_v40, %s6414_s1 }
0x13f5   :  { %3852 = vrot.lane.b32.xlu0 %v6993_v6, %s6417_s6 }
0x13f6   :  { %3850 = vrot.lane.b32.xlu1 %v6995_v24, %s6417_s6 }
0x13f9   :  { %3947 = vrot.lane.b32.xlu0 %v6997_v25, %s6417_s6 }
0x13fa   :  { %3848 = vrot.lane.b32.xlu1 %v7011_v30, %s6417_s6 }
0x13fd   :  { %3844 = vrot.lane.b32.xlu0 %v6989_v12, %s6417_s6 }
0x13fe   :  { %3945 = vrot.lane.b32.xlu1 %v7003_v28, %s6417_s6 }
0x1401   :  { %3846 = vrot.lane.b32.xlu0 %v7033_v33, %s6417_s6 }
0x1402   :  { %3943 = vrot.lane.b32.xlu1 %v7020_v32, %s6417_s6 }
0x1405   :  { %3939 = vrot.lane.b32.xlu0 %v7014_v31, %s6417_s6 }
0x1406   :  { %3941 = vrot.lane.b32.xlu1 %v7038_v34, %s6417_s6 }
0x142d   :  { %v3449_v47 = vpop.xlane.xlu1 %3448 }
0x142e   :  { %6182 = vrcp.f32 %v3449_v47 }
0x142f   :  { %v3446_v48 = vpop.xlane.xlu0 %3445 }
0x1430   :  { %6184 = vrcp.f32 %v3446_v48 }
0x1431   :  { %v3470_v49 = vpop.permute.xlu1 %3469 }
0x1433   :  { %v3472_v50 = vpop.permute.xlu0 %3471 }
0x1434   :  { %5899 = vmatprep.subr.mxu1 %v3472_v50 }
0x1435   :  { %v3468_v52 = vpop.permute.xlu1 %3467  ;;  %5900 = vmatpush3.msra.mxu1 %v3472_v50 }
0x1436   :  { %5901 = vmatprep.subr.mxu1 %v3470_v49 }
0x1437   :  { %5902 = vmatpush3.msra.mxu1 %v3470_v49 }
0x1438   :  { %5903 = vmatprep.subr.mxu1 %v3468_v52 }
0x1439   :  { %v3565_v53 = vpop.permute.xlu1 %3564  ;;  %5904 = vmatpush3.msra.mxu1 %v3468_v52 }
0x143a   :  { %5908 = vmatprep.subr.mxu1 %v3565_v53 }
0x143b   :  { %v6183_v16 = vpop.eup %6182 }
0x143c   :  { %v3461_v54 = vmul.f32 %v6183_v16, %v6175_v8 }
0x143d   :  { %v6185_v14 = vpop.eup %6184 }
0x143e   :  { %v3460_v18 = vmul.f32 %v6185_v14, %v6177_v11 }
0x1440   :  { %5905 = vmatprep.mubr.msk.f32.mxu1 %vm3019_vm3, %v3460_v18 }
0x1441   :  { %5906 = vmatmul.mubr.msk.f32.vlgmr.msra.gmra.mxu1 %vm3019_vm3, %v3461_v54 }
0x1442   :  { %5909 = vmatpush3.msra.mxu1 %v3565_v53 }
0x1464   :  { %v3452_v55 = vpop.xlane.xlu0 %3451 }
0x1465   :  { %6186 = vrcp.f32 %v3452_v55 }
0x1468   :  { %v3563_v56 = vpop.permute.xlu0 %3562 }
0x1469   :  { %5910 = vmatprep.subr.mxu1 %v3563_v56 }
0x146a   :  { %v3455_v15 = vpop.xlane.xlu1 %3454  ;;  %5911 = vmatpush3.msra.mxu1 %v3563_v56 }
0x146b   :  { %6188 = vrcp.f32 %v3455_v15 }
0x146c   :  { %v3853_v58 = vpop.permute.xlu0 %3852 }
0x146d   :  { %5933 = vmatprep.subr.msk.mxu0 %vm369_vm1, %v3853_v58 }
0x146e   :  { %v3561_v59 = vpop.permute.xlu1 %3560 }
0x146f   :  { %5912 = vmatprep.subr.mxu1 %v3561_v59 }
0x1470   :  { %5913 = vmatpush3.msra.mxu1 %v3561_v59  ;;  %v3948_v61 = vpop.permute.xlu0 %3947 }
0x1471   :  { %5925 = vmatprep.subr.mxu1 %v2830_v60 }
0x1472   :  { %v6187_v62 = vpop.eup %6186  ;;  %v3851_v2 = vpop.permute.xlu1 %3850 }
0x1473   :  { %v3462_v63 = vmul.f32 %v6187_v62, %v6179_v42 }
0x1474   :  { %v3845_v1 = vpop.permute.xlu0 %3844 }
0x1475   :  { %5914 = vmatprep.mubr.msk.f32.mxu1 %vm3019_vm3, %v3462_v63 }
0x1476   :  { %v3849_v4 = vpop.permute.xlu1 %3848 }
0x1478   :  { %v6189_v3 = vpop.eup %6188  ;;  %v3847_v9 = vpop.permute.xlu0 %3846 }
0x1479   :  { %v3463_v7 = vmul.f32 %v6189_v3, %v6181_v45 }
0x147a   :  { %v3946_v8 = vpop.permute.xlu1 %3945 }
0x147b   :  { %5915 = vmatmul.mubr.msk.f32.vlgmr.msra.gmra.mxu1 %vm3019_vm3, %v3463_v7 }
0x147c   :  { %5926 = vmatpush3.msra.mxu1 %v2830_v60  ;;  %5927 = vmatprep.mubr.msk.f32.mxu1 %vm369_vm1, %v7144_v57  ;;  %v3940_v10 = vpop.permute.xlu0 %3939 }
0x147d   :  { %5942 = vmatprep.subr.msk.mxu1 %vm369_vm1, %v3948_v61 }
0x147e   :  { %v3944_v11 = vpop.permute.xlu1 %3943 }
0x147f   :  { %5928 = vmatmul.mubr.msk.f32.vlgmr.msra.gmra.mxu1 %vm369_vm1, %v7142_v19 }
0x1480   :  { %5943 = vmatpush3.xpose.msk.msra.mxu1 %vm369_vm1, %v3948_v61  ;;  %5930 = vmatprep.mubr.msk.f32.mxu1 %vm369_vm1, %v7148_v21 }
0x1481   :  { %5944 = vmatprep.subr.msk.mxu1 %vm369_vm1, %v3946_v8 }
0x1482   :  { %v3942_v19 = vpop.permute.xlu1 %3941 }
0x1483   :  { %5931 = vmatmul.mubr.msk.f32.gmra.mxu1 %vm369_vm1, %v7146_v17 }
0x1484   :  { %5945 = vmatpush3.xpose.msk.msra.mxu1 %vm369_vm1, %v3946_v8  ;;  %5948 = vmatprep.mubr.msk.f32.mxu1 %vm369_vm1, %v3940_v10 }
0x1485   :  { %5946 = vmatprep.subr.msk.mxu1 %vm369_vm1, %v3944_v11 }
0x1488   :  { %5947 = vmatpush3.xpose.msk.msra.mxu1 %vm369_vm1, %v3944_v11 }
0x148b   :  { %5949 = vmatmul.mubr.msk.f32.vlgmr.msra.gmra.mxu1 %vm369_vm1, %v3942_v19 }
0x1501   :  { %v5907_v57 = vpop.f32.mrf.mxu1 }
0x1503   :  { %v3548_v21 = vpop.f32.mrf.mxu1 }
0x1504   :  { %5919 = vmatprep.mubr.msk.f32.mxu0 %vm369_vm1, %v3548_v21 }
0x1505   :  { %5920 = vmatmul.mubr.msk.f32.vlgmr.msra.gmra.mxu0 %vm369_vm1, %v5907_v57 }
0x1506   :  { %5934 = vmatpush3.xpose.msk.msra.mxu0 %vm369_vm1, %v3853_v58 }
0x1507   :  { %5935 = vmatprep.subr.msk.mxu0 %vm369_vm1, %v3851_v2 }
0x150a   :  { %5936 = vmatpush3.xpose.msk.msra.mxu0 %vm369_vm1, %v3851_v2 }
0x150b   :  { %5937 = vmatprep.subr.msk.mxu0 %vm369_vm1, %v3849_v4 }
0x150e   :  { %5938 = vmatpush3.xpose.msk.msra.mxu0 %vm369_vm1, %v3849_v4 }
0x153b   :  { %v5916_v17 = vpop.f32.mrf.mxu1 }
0x153d   :  { %v3641_v0 = vpop.f32.mrf.mxu1 }
0x153e   :  { %5922 = vmatprep.mubr.msk.f32.mxu0 %vm369_vm1, %v3641_v0 }
0x153f   :  { %5923 = vmatmul.mubr.msk.f32.gmra.mxu0 %vm369_vm1, %v5916_v17  ;;  %v7226_v26 = vpop.f32.mrf.mxu1 }
0x1540   :  { %5939 = vmatprep.mubr.msk.f32.mxu0 %vm369_vm1, %v3845_v1 }
0x1541   :  { %v7228_v27 = vpop.f32.mrf.mxu1 }
0x1543   :  { %5940 = vmatmul.mubr.msk.f32.vlgmr.msra.gmra.mxu0 %vm369_vm1, %v3847_v9  ;;  %v7232_v35 = vpop.f32.mrf.mxu1 }
0x1545   :  { %v7236_v39 = vpop.f32.mrf.mxu1 }
0x154b   :  { %v5950_v44 = vpop.f32.mrf.mxu1 }
0x154c   :  { %v4037_v16 = vmul.f32 0.35355338, %v5950_v44 }
0x154d   :  { %v4025_v47 = vpop.f32.mrf.mxu1 }
0x154e   :  { %v4036_v52 = vmul.f32 0.35355338, %v4025_v47  ;;  %v4047_v18 = vsel %vm3019_vm3, %v4037_v16, -inf }
0x1550   :  { %v4044_v14 = vsel %vm3019_vm3, %v4036_v52, -inf }
0x15c5   :  { %v7230_v29 = vpop.f32.mrf.mxu0 }
0x15c7   :  { %v7234_v36 = vpop.f32.mrf.mxu0 }
0x15ff   :  { %v7238_v42 = vpop.f32.mrf.mxu0 }
0x1601   :  { %v7240_v45 = vpop.f32.mrf.mxu0 }
0x1603   :  { %v5941_v46 = vpop.f32.mrf.mxu0 }
0x1604   :  { %v4035_v37 = vmul.f32 0.35355338, %v5941_v46 }
0x1605   :  { %v3930_v48 = vpop.f32.mrf.mxu0 }
0x1606   :  { %v4034_v49 = vmul.f32 0.35355338, %v3930_v48  ;;  %v4041_v50 = vsel %vm3019_vm3, %v4035_v37, -inf }
0x1607   :  { %4042 = vmax.xlane.f32.xlu1 %v4041_v50 }
0x1608   :  { %v4038_v53 = vsel %vm3019_vm3, %v4034_v49, -inf }
0x1609   :  { %4039 = vmax.xlane.f32.xlu0 %v4038_v53 }
0x160d   :  { %4045 = vmax.xlane.f32.xlu0 %v4044_v14 }
0x1611   :  { %4048 = vmax.xlane.f32.xlu0 %v4047_v18 }
0x1690   :  { %v4043_v56 = vpop.xlane.xlu1 %4042 }
0x1691   :  { %v4051_v59 = vsub.f32 %v4035_v37, %v4043_v56 }
0x1692   :  { %v4040_v54 = vpop.xlane.xlu0 %4039 }
0x1693   :  { %v4050_v55 = vsub.f32 %v4034_v49, %v4040_v54  ;;  %v4056_v63 = vmul.f32 1.442695, %v4051_v59 }
0x1695   :  { %v4054_v60 = vmul.f32 1.442695, %v4050_v55 }
0x1696   :  { %v4046_v15 = vpop.xlane.xlu0 %4045 }
0x1697   :  { %v4052_v58 = vsub.f32 %v4036_v52, %v4046_v15 }
0x1699   :  { %v4058_v61 = vmul.f32 1.442695, %v4052_v58 }
0x169a   :  { %v4049_v62 = vpop.xlane.xlu0 %4048 }
0x169b   :  { %6190 = vpow2.f32 %v4058_v61  ;;  %v4053_v2 = vsub.f32 %v4037_v16, %v4049_v62  ;;  %v3831_v61 = vadd.f32 %v7226_v26, %v7230_v29 }
0x169c   :  { %6192 = vpow2.f32 %v4054_v60 }
0x169d   :  { %v4060_v1 = vmul.f32 1.442695, %v4053_v2  ;;  %v3826_v2 = vadd.f32 %v7228_v27, %v7234_v36 }
0x169f   :  { %6194 = vpow2.f32 %v4060_v1 }
0x16a0   :  { %6196 = vpow2.f32 %v4056_v63 }
0x16a8   :  { %v6191_v3 = vpop.eup %6190 }
0x16a9   :  { %v4068_v4 = vsel %vm3019_vm3, %v6191_v3, 0.0  ;;  %v6193_v7 = vpop.eup %6192 }
0x16aa   :  { %4069 = vadd.xlane.f32.xlu0 %v4068_v4  ;;  %v4062_v8 = vsel %vm3019_vm3, %v6193_v7, 0.0 }
0x16ac   :  { %v7247_v9 = vpop.eup %6194 }
0x16ad   :  { %v4071_v10 = vsel %vm3019_vm3, %v7247_v9, 0.0  ;;  %v6197_v11 = vpop.eup %6196 }
0x16ae   :  { %4063 = vadd.xlane.f32.xlu0 %v4062_v8  ;;  %4072 = vadd.xlane.f32.xlu1 %v4071_v10  ;;  %v4065_v19 = vsel %vm3019_vm3, %v6197_v11, 0.0 }
0x16b2   :  { %4066 = vadd.xlane.f32.xlu1 %v4065_v19 }
0x16c3   :  { %4084 = vrot.lane.b32.xlu1 %v7095_v22, %s6417_s6 }
0x16c4   :  { %4086 = vrot.lane.b32.xlu0 %v7092_v20, %s6417_s6 }
0x16c7   :  { %4082 = vrot.lane.b32.xlu1 %v7100_v5, %s6417_s6 }
0x16c8   :  { %4174 = vrot.lane.b32.xlu0 %v7115_v43, %s6417_s6 }
0x16cb   :  { %4176 = vrot.lane.b32.xlu1 %v7107_v23, %s6417_s6 }
0x16cc   :  { %4371 = vrot.lane.b32.xlu0 %v6993_v6, %s6420_s28 }
0x16cf   :  { %4172 = vrot.lane.b32.xlu1 %v7121_v40, %s6417_s6 }
0x16d0   :  { %4466 = vrot.lane.b32.xlu0 %v6997_v25, %s6420_s28 }
0x16d3   :  { %4369 = vrot.lane.b32.xlu1 %v6995_v24, %s6420_s28 }
0x16d4   :  { %4464 = vrot.lane.b32.xlu0 %v7003_v28, %s6420_s28 }
0x16d7   :  { %4367 = vrot.lane.b32.xlu1 %v7011_v30, %s6420_s28 }
0x16d8   :  { %4365 = vrot.lane.b32.xlu0 %v7033_v33, %s6420_s28 }
0x16db   :  { %4363 = vrot.lane.b32.xlu1 %v6989_v12, %s6420_s28 }
0x16dc   :  { %4458 = vrot.lane.b32.xlu0 %v7014_v31, %s6420_s28 }
0x16df   :  { %4462 = vrot.lane.b32.xlu1 %v7020_v32, %s6420_s28 }
0x16e3   :  { %4460 = vrot.lane.b32.xlu1 %v7038_v34, %s6420_s28  ;;  %v2832_v34 = vld [vmem:[%s7469_s10 + $0x10] sm:$0xff] }
0x1733   :  { %v4070_v6 = vpop.xlane.xlu0 %4069 }
0x1734   :  { %6198 = vrcp.f32 %v4070_v6 }
0x1737   :  { %v4073_v24 = vpop.xlane.xlu1 %4072  ;;  %v4064_v25 = vpop.xlane.xlu0 %4063 }
0x1738   :  { %6200 = vrcp.f32 %v4064_v25 }
0x1739   :  { %6202 = vrcp.f32 %v4073_v24 }
0x173b   :  { %v4067_v28 = vpop.xlane.xlu1 %4066  ;;  %v4087_v30 = vpop.permute.xlu0 %4086 }
0x173c   :  { %6204 = vrcp.f32 %v4067_v28  ;;  %5951 = vmatprep.subr.mxu0 %v4087_v30 }
0x173d   :  { %5952 = vmatpush3.msra.mxu0 %v4087_v30 }
0x173f   :  { %v4085_v12 = vpop.permute.xlu1 %4084  ;;  %v4175_v33 = vpop.permute.xlu0 %4174 }
0x1740   :  { %5953 = vmatprep.subr.mxu0 %v4085_v12 }
0x1741   :  { %v6199_v31 = vpop.eup %6198  ;;  %5954 = vmatpush3.msra.mxu0 %v4085_v12 }
0x1742   :  { %v4080_v32 = vmul.f32 %v6199_v31, %v6191_v3  ;;  %v3841_v3 = vadd.f32 %v7232_v35, %v7238_v42 }
0x1743   :  { %v4083_v57 = vpop.permute.xlu1 %4082  ;;  %v4372_v21 = vpop.permute.xlu0 %4371 }
0x1744   :  { %5955 = vmatprep.subr.mxu0 %v4083_v57  ;;  %5966 = vmatprep.mubr.msk.f32.mxu1 %vm3019_vm3, %v4080_v32 }
0x1745   :  { %5956 = vmatpush3.msra.mxu0 %v4083_v57  ;;  %v6201_v17 = vpop.eup %6200 }
0x1746   :  { %5969 = vmatprep.subr.mxu0 %v2832_v34  ;;  %v4078_v46 = vmul.f32 %v6201_v17, %v6193_v7  ;;  %v6203_v37 = vpop.eup %6202 }
0x1747   :  { %v4177_v0 = vpop.permute.xlu1 %4176  ;;  %v4467_v44 = vpop.permute.xlu0 %4466  ;;  %v4081_v52 = vmul.f32 %v6203_v37, %v7247_v9  ;;  %v3836_v9 = vadd.f32 %v7236_v39, %v7240_v45 }
0x1748   :  { %5960 = vmatprep.subr.mxu1 %v4177_v0  ;;  %5957 = vmatprep.mubr.msk.f32.mxu0 %vm3019_vm3, %v4078_v46 }
0x1749   :  { %v6205_v47 = vpop.eup %6204  ;;  %5961 = vmatpush3.msra.mxu1 %v4177_v0 }
0x174a   :  { %5962 = vmatprep.subr.mxu1 %v4175_v33  ;;  %v4079_v48 = vmul.f32 %v6205_v47, %v6197_v11 }
0x174b   :  { %v4173_v49 = vpop.permute.xlu1 %4172  ;;  %5963 = vmatpush3.msra.mxu1 %v4175_v33  ;;  %v4465_v50 = vpop.permute.xlu0 %4464 }
0x174c   :  { %5958 = vmatmul.mubr.msk.f32.vlgmr.msra.gmra.mxu0 %vm3019_vm3, %v4079_v48  ;;  %5964 = vmatprep.subr.mxu1 %v4173_v49 }
0x174d   :  { %5970 = vmatpush3.msra.mxu0 %v2832_v34  ;;  %5965 = vmatpush3.msra.mxu1 %v4173_v49 }
0x174e   :  { %5977 = vmatprep.subr.msk.mxu0 %vm369_vm1, %v4372_v21  ;;  %5967 = vmatmul.mubr.msk.f32.vlgmr.msra.gmra.mxu1 %vm3019_vm3, %v4081_v52 }
0x174f   :  { %5986 = vmatprep.subr.msk.mxu1 %vm369_vm1, %v4467_v44  ;;  %v4370_v53 = vpop.permute.xlu1 %4369  ;;  %v4366_v16 = vpop.permute.xlu0 %4365 }
0x1750   :  { %5987 = vmatpush3.xpose.msk.msra.mxu1 %vm369_vm1, %v4467_v44 }
0x1751   :  { %5988 = vmatprep.subr.msk.mxu1 %vm369_vm1, %v4465_v50 }
0x1753   :  { %v4368_v14 = vpop.permute.xlu1 %4367  ;;  %v4459_v18 = vpop.permute.xlu0 %4458 }
0x1754   :  { %5989 = vmatpush3.xpose.msk.msra.mxu1 %vm369_vm1, %v4465_v50  ;;  %5992 = vmatprep.mubr.msk.f32.mxu1 %vm369_vm1, %v4459_v18 }
0x1757   :  { %v4364_v54 = vpop.permute.xlu1 %4363 }
0x175b   :  { %v4463_v55 = vpop.permute.xlu1 %4462 }
0x175c   :  { %5990 = vmatprep.subr.msk.mxu1 %vm369_vm1, %v4463_v55 }
0x175d   :  { %5991 = vmatpush3.xpose.msk.msra.mxu1 %vm369_vm1, %v4463_v55 }
0x175f   :  { %v4461_v56 = vpop.permute.xlu1 %4460 }
0x1760   :  { %5993 = vmatmul.mubr.msk.f32.vlgmr.msra.gmra.mxu1 %vm369_vm1, %v4461_v56 }
0x180c   :  { %v5959_v15 = vpop.f32.mrf.mxu0 }
0x180e   :  { %v4163_v58 = vpop.f32.mrf.mxu0  ;;  %v5968_v59 = vpop.f32.mrf.mxu1 }
0x180f   :  { %5971 = vmatprep.mubr.msk.f32.mxu0 %vm369_vm1, %v4163_v58 }
0x1810   :  { %v4253_v60 = vpop.f32.mrf.mxu1  ;;  %5972 = vmatmul.mubr.msk.f32.vlgmr.msra.gmra.mxu0 %vm369_vm1, %v5959_v15 }
0x1811   :  { %5978 = vmatpush3.xpose.msk.msra.mxu0 %vm369_vm1, %v4372_v21  ;;  %5974 = vmatprep.mubr.msk.f32.mxu0 %vm369_vm1, %v4253_v60 }
0x1812   :  { %5979 = vmatprep.subr.msk.mxu0 %vm369_vm1, %v4370_v53 }
0x1814   :  { %5975 = vmatmul.mubr.msk.f32.gmra.mxu0 %vm369_vm1, %v5968_v59 }
0x1815   :  { %5980 = vmatpush3.xpose.msk.msra.mxu0 %vm369_vm1, %v4370_v53  ;;  %5983 = vmatprep.mubr.msk.f32.mxu0 %vm369_vm1, %v4364_v54 }
0x1816   :  { %5981 = vmatprep.subr.msk.mxu0 %vm369_vm1, %v4368_v14 }
0x1819   :  { %5982 = vmatpush3.xpose.msk.msra.mxu0 %vm369_vm1, %v4368_v14 }
0x181c   :  { %5984 = vmatmul.mubr.msk.f32.vlgmr.msra.gmra.mxu0 %vm369_vm1, %v4366_v16 }
0x1820   :  { %v5994_v29 = vpop.f32.mrf.mxu1 }
0x1821   :  { %v4556_v25 = vmul.f32 0.35355338, %v5994_v29 }
0x1822   :  { %v4544_v36 = vpop.f32.mrf.mxu1 }
0x1823   :  { %v4555_v35 = vmul.f32 0.35355338, %v4544_v36  ;;  %v4566_v45 = vsel %vm3019_vm3, %v4556_v25, -inf }
0x1825   :  { %v4563_v39 = vsel %vm3019_vm3, %v4555_v35, -inf }
0x18d0   :  { %v5973_v62 = vpop.f32.mrf.mxu0 }
0x18d1   :  { %v7317_v63 = vadd.f32 %v5973_v62, %v3831_v61 }
0x18d2   :  { %v4340_v1 = vpop.f32.mrf.mxu0 }
0x18d3   :  { %v7321_v4 = vadd.f32 %v4340_v1, %v3826_v2  ;;  %v2833_v2 = vld [vmem:[%s7469_s10 + $0x18] sm:$0xff] }
0x18d4   :  { %v5976_v7 = vpop.f32.mrf.mxu0 }
0x18d5   :  { %v7325_v8 = vadd.f32 %v5976_v7, %v3841_v3 }
0x18d6   :  { %v4350_v10 = vpop.f32.mrf.mxu0 }
0x18d7   :  { %v7327_v26 = vadd.f32 %v4350_v10, %v3836_v9  ;;  %v5386_v10 = vld [vmem:[%s7470_s11] ss:$0 sm:$0xff] }
0x18dc   :  { %v5985_v11 = vpop.f32.mrf.mxu0 }
0x18dd   :  { %v4554_v27 = vmul.f32 0.35355338, %v5985_v11 }
0x18de   :  { %v4449_v19 = vpop.f32.mrf.mxu0 }
0x18df   :  { %v4553_v6 = vmul.f32 0.35355338, %v4449_v19  ;;  %v4560_v24 = vsel %vm3019_vm3, %v4554_v27, -inf }
0x18e0   :  { %4561 = vmax.xlane.f32.xlu1 %v4560_v24 }
0x18e1   :  { %v4557_v42 = vsel %vm3019_vm3, %v4553_v6, -inf }
0x18e2   :  { %4558 = vmax.xlane.f32.xlu0 %v4557_v42 }
0x18e6   :  { %4564 = vmax.xlane.f32.xlu0 %v4563_v39 }
0x18ea   :  { %4567 = vmax.xlane.f32.xlu0 %v4566_v45 }
0x1969   :  { %v4562_v37 = vpop.xlane.xlu1 %4561 }
0x196a   :  { %v4570_v47 = vsub.f32 %v4554_v27, %v4562_v37 }
0x196b   :  { %v4559_v28 = vpop.xlane.xlu0 %4558 }
0x196c   :  { %v4569_v44 = vsub.f32 %v4553_v6, %v4559_v28  ;;  %v4575_v48 = vmul.f32 1.442695, %v4570_v47 }
0x196e   :  { %v4573_v46 = vmul.f32 1.442695, %v4569_v44 }
0x196f   :  { %v4565_v30 = vpop.xlane.xlu0 %4564 }
0x1970   :  { %v4571_v12 = vsub.f32 %v4555_v35, %v4565_v30 }
0x1972   :  { %v4577_v33 = vmul.f32 1.442695, %v4571_v12 }
0x1973   :  { %v4568_v31 = vpop.xlane.xlu0 %4567 }
0x1974   :  { %6206 = vpow2.f32 %v4577_v33  ;;  %v4572_v32 = vsub.f32 %v4556_v25, %v4568_v31 }
0x1976   :  { %v4579_v57 = vmul.f32 1.442695, %v4572_v32 }
0x1978   :  { %6208 = vpow2.f32 %v4579_v57 }
0x1979   :  { %6210 = vpow2.f32 %v4573_v46 }
0x197a   :  { %6212 = vpow2.f32 %v4575_v48 }
0x1981   :  { %v6207_v21 = vpop.eup %6206 }
0x1982   :  { %v4587_v34 = vsel %vm3019_vm3, %v6207_v21, 0.0 }
0x1983   :  { %4588 = vadd.xlane.f32.xlu0 %v4587_v34 }
0x1985   :  { %v6209_v17 = vpop.eup %6208 }
0x1986   :  { %v4590_v0 = vsel %vm3019_vm3, %v6209_v17, 0.0  ;;  %v6211_v49 = vpop.eup %6210 }
0x1987   :  { %4591 = vadd.xlane.f32.xlu1 %v4590_v0  ;;  %v4581_v50 = vsel %vm3019_vm3, %v6211_v49, 0.0 }
0x1998   :  { %4603 = vrot.lane.b32.xlu1 %v7095_v22, %s6420_s28  ;;  %v6213_v22 = vpop.eup %6212 }
0x1999   :  { %4605 = vrot.lane.b32.xlu0 %v7092_v20, %s6420_s28  ;;  %v4584_v20 = vsel %vm3019_vm3, %v6213_v22, 0.0 }
0x199c   :  { %4601 = vrot.lane.b32.xlu1 %v7100_v5, %s6420_s28 }
0x19a0   :  { %4695 = vrot.lane.b32.xlu1 %v7107_v23, %s6420_s28 }
0x19b8   :  { %4582 = vadd.xlane.f32.xlu0 %v4581_v50 }
0x19c4   :  { %4585 = vadd.xlane.f32.xlu1 %v4584_v20 }
0x19ce   :  { %4693 = vrot.lane.b32.xlu0 %v7115_v43, %s6420_s28 }
0x19d5   :  { %4691 = vrot.lane.b32.xlu1 %v7121_v40, %s6420_s28 }
0x1a0c   :  { %v4589_v5 = vpop.xlane.xlu0 %4588 }
0x1a0d   :  { %6214 = vrcp.f32 %v4589_v5  ;;  %v4973_v5 = vld [vmem:[%s7471_s12 + $0x18] sm:$0xff] }
0x1a10   :  { %v4592_v23 = vpop.xlane.xlu1 %4591  ;;  %v4606_v52 = vpop.permute.xlu0 %4605 }
0x1a11   :  { %5995 = vmatprep.subr.mxu0 %v4606_v52  ;;  %6216 = vrcp.f32 %v4592_v23  ;;  %v4972_v23 = vld [vmem:[%s7471_s12 + $0x10] sm:$0xff] }
0x1a12   :  { %5996 = vmatpush3.msra.mxu0 %v4606_v52  ;;  %v4971_v52 = vld [vmem:[%s7471_s12 + $0x8] sm:$0xff] }
0x1a14   :  { %v4604_v53 = vpop.permute.xlu1 %4603 }
0x1a15   :  { %5997 = vmatprep.subr.mxu0 %v4604_v53 }
0x1a16   :  { %5998 = vmatpush3.msra.mxu0 %v4604_v53  ;;  %v4970_v53 = vld [vmem:[%s7471_s12] sm:$0xff] }
0x1a18   :  { %v4602_v16 = vpop.permute.xlu1 %4601 }
0x1a19   :  { %5999 = vmatprep.subr.mxu0 %v4602_v16 }
0x1a1a   :  { %v6215_v14 = vpop.eup %6214  ;;  %6000 = vmatpush3.msra.mxu0 %v4602_v16  ;;  %v5089_v16 = vld [vmem:[%s7473_s14 + $0x38] sm:$0xff] }
0x1a1b   :  { %v4599_v18 = vmul.f32 %v6215_v14, %v6207_v21  ;;  %6013 = vmatprep.subr.mxu0 %v2833_v2  ;;  %v5088_v14 = vld [vmem:[%s7473_s14 + $0x30] sm:$0xff] }
0x1a1c   :  { %v4696_v54 = vpop.permute.xlu1 %4695 }
0x1a1d   :  { %6004 = vmatprep.subr.mxu1 %v4696_v54  ;;  %6010 = vmatprep.mubr.msk.f32.mxu1 %vm3019_vm3, %v4599_v18  ;;  %v5087_v18 = vld [vmem:[%s7473_s14 + $0x28] sm:$0xff] }
0x1a1e   :  { %6005 = vmatpush3.msra.mxu1 %v4696_v54  ;;  %v6217_v56 = vpop.eup %6216  ;;  %v5086_v54 = vld [vmem:[%s7473_s14 + $0x20] sm:$0xff] }
0x1a1f   :  { %v4600_v60 = vmul.f32 %v6217_v56, %v6209_v17 }
0x1a41   :  { %v4583_v43 = vpop.xlane.xlu0 %4582 }
0x1a42   :  { %6218 = vrcp.f32 %v4583_v43 }
0x1a45   :  { %v4694_v40 = vpop.permute.xlu0 %4693 }
0x1a46   :  { %6006 = vmatprep.subr.mxu1 %v4694_v40 }
0x1a47   :  { %6007 = vmatpush3.msra.mxu1 %v4694_v40 }
0x1a4d   :  { %v4586_v55 = vpop.xlane.xlu1 %4585 }
0x1a4e   :  { %6220 = vrcp.f32 %v4586_v55 }
0x1a4f   :  { %v6219_v15 = vpop.eup %6218 }
0x1a50   :  { %v4597_v58 = vmul.f32 %v6219_v15, %v6211_v49 }
0x1a51   :  { %v4692_v59 = vpop.permute.xlu1 %4691 }
0x1a52   :  { %6001 = vmatprep.mubr.msk.f32.mxu0 %vm3019_vm3, %v4597_v58  ;;  %6008 = vmatprep.subr.mxu1 %v4692_v59 }
0x1a53   :  { %6009 = vmatpush3.msra.mxu1 %v4692_v59 }
0x1a54   :  { %6011 = vmatmul.mubr.msk.f32.vlgmr.msra.gmra.mxu1 %vm3019_vm3, %v4600_v60  ;;  %6021 = vmatprep.subr.mxu1 %v4973_v5 }
0x1a55   :  { %6022 = vmatpush3.msra.mxu1 %v4973_v5 }
0x1a56   :  { %6023 = vmatprep.subr.mxu1 %v4972_v23 }
0x1a57   :  { %6024 = vmatpush3.msra.mxu1 %v4972_v23 }
0x1a58   :  { %6025 = vmatprep.subr.mxu1 %v4971_v52 }
0x1a59   :  { %6026 = vmatpush3.msra.mxu1 %v4971_v52 }
0x1a5a   :  { %6027 = vmatprep.subr.mxu1 %v4970_v53 }
0x1a5b   :  { %v6221_v61 = vpop.eup %6220  ;;  %6028 = vmatpush3.msra.mxu1 %v4970_v53 }
0x1a5c   :  { %v4598_v62 = vmul.f32 %v6221_v61, %v6213_v22 }
0x1a5e   :  { %6002 = vmatmul.mubr.msk.f32.vlgmr.msra.gmra.mxu0 %vm3019_vm3, %v4598_v62 }
0x1a5f   :  { %6014 = vmatpush3.msra.mxu0 %v2833_v2 }
0x1a60   :  { %6035 = vmatprep.subr.mxu0 %v5089_v16 }
0x1b14   :  { %v6012_v1 = vpop.f32.mrf.mxu1 }
0x1b16   :  { %v4772_v9 = vpop.f32.mrf.mxu1 }
0x1b1e   :  { %v6003_v3 = vpop.f32.mrf.mxu0 }
0x1b20   :  { %v4682_v7 = vpop.f32.mrf.mxu0 }
0x1b21   :  { %6015 = vmatprep.mubr.msk.f32.mxu0 %vm369_vm1, %v4682_v7 }
0x1b22   :  { %6016 = vmatmul.mubr.msk.f32.vlgmr.msra.gmra.mxu0 %vm369_vm1, %v6003_v3 }
0x1b23   :  { %6018 = vmatprep.mubr.msk.f32.mxu0 %vm369_vm1, %v4772_v9  ;;  %6036 = vmatpush3.msra.mxu0 %v5089_v16  ;;  %v5387_v9 = vld [vmem:[#allocation11] ss:$0 sm:$0xff] }
0x1b24   :  { %6037 = vmatprep.subr.mxu0 %v5088_v14 }
0x1b25   :  { %6038 = vmatpush3.msra.mxu0 %v5088_v14 }
0x1b26   :  { %6019 = vmatmul.mubr.msk.f32.gmra.mxu0 %vm369_vm1, %v6012_v1  ;;  %6039 = vmatprep.subr.mxu0 %v5087_v18 }
0x1b27   :  { %6040 = vmatpush3.msra.mxu0 %v5087_v18 }
0x1b28   :  { %6041 = vmatprep.subr.mxu0 %v5086_v54 }
0x1b29   :  { %6042 = vmatpush3.msra.mxu0 %v5086_v54 }
0x1be2   :  { %v6017_v29 = vpop.f32.mrf.mxu0 }
0x1be3   :  { %v4879_v11 = vadd.f32 %v6017_v29, %v7317_v63 }
0x1be4   :  { %v4859_v27 = vpop.f32.mrf.mxu0 }
0x1be5   :  { %v4889_v36 = vadd.f32 %v5386_v10, %v4879_v11  ;;  %v4878_v19 = vadd.f32 %v4859_v27, %v7321_v4  ;;  %v5388_v27 = vld [vmem:[#allocation13] ss:$0 sm:$0xff] }
0x1be6   :  { %v6020_v6 = vpop.f32.mrf.mxu0 }
0x1be7   :  { %v7366_v24 = vadd.f32 %v4889_v36, %v6860_v38  ;;  %v4888_v35 = vadd.f32 %v5386_v10, %v4878_v19  ;;  %v4881_v42 = vadd.f32 %v6020_v6, %v7325_v8 }
0x1be8   :  { %v4869_v25 = vpop.f32.mrf.mxu0 }
0x1be9   :  { %v7370_v39 = vadd.f32 %v4888_v35, %v6865_v41  ;;  %v4880_v45 = vadd.f32 %v4869_v25, %v7327_v26  ;;  %v4901_v63 = vsel %vm181_vm0, %v7366_v24, 0.0  ;;  %v4891_v28 = vadd.f32 %v5386_v10, %v4881_v42 }
0x1bea   :  { %4902 = vadd.xlane.f32.xlu1 %v4901_v63 }
0x1beb   :  { %v4890_v30 = vadd.f32 %v5386_v10, %v4880_v45  ;;  %v4898_v4 = vsel %vm181_vm0, %v7370_v39, 0.0  ;;  %v7381_v8 = vadd.f32 %v4891_v28, %v6881_v13 }
0x1bec   :  { %4899 = vadd.xlane.f32.xlu0 %v4898_v4 }
0x1bed   :  { %v7378_v38 = vadd.f32 %v4890_v30, %v6876_v51  ;;  %v4907_v26 = vsel %vm181_vm0, %v7381_v8, 0.0 }
0x1bef   :  { %v4904_v41 = vsel %vm181_vm0, %v7378_v38, 0.0 }
0x1bf0   :  { %4905 = vadd.xlane.f32.xlu0 %v4904_v41  ;;  %v5085_v41 = vld [vmem:[%s7473_s14 + $0x18] sm:$0xff] }
0x1bf1   :  { %6043 = vmatprep.subr.mxu0 %v5085_v41 }
0x1bf2   :  { %6044 = vmatpush3.msra.mxu0 %v5085_v41 }
0x1bf4   :  { %4908 = vadd.xlane.f32.xlu0 %v4907_v26  ;;  %v5084_v26 = vld [vmem:[%s7473_s14 + $0x10] sm:$0xff] }
0x1bf5   :  { %6045 = vmatprep.subr.mxu0 %v5084_v26 }
0x1bf6   :  { %6046 = vmatpush3.msra.mxu0 %v5084_v26 }
0x1c73   :  { %v4903_v12 = vpop.xlane.xlu1 %4902 }
0x1c74   :  { %v4911_v33 = vmul.f32 0.03125, %v4903_v12  ;;  %v5083_v12 = vld [vmem:[%s7473_s14 + $0x8] sm:$0xff] }
0x1c75   :  { %v4900_v31 = vpop.xlane.xlu0 %4899  ;;  %6047 = vmatprep.subr.mxu0 %v5083_v12 }
0x1c76   :  { %v4915_v32 = vsub.f32 %v7366_v24, %v4911_v33  ;;  %v4910_v57 = vmul.f32 0.03125, %v4900_v31  ;;  %6048 = vmatpush3.msra.mxu0 %v5083_v12  ;;  %v5082_v33 = vld [vmem:[%s7473_s14] sm:$0xff] }
0x1c77   :  { %6049 = vmatprep.subr.mxu0 %v5082_v33  ;;  %v5389_v31 = vld [vmem:[%s7472_s13] ss:$0 sm:$0xff]  ;;  %s6422_s13 = smov [#allocation14]  }
0x1c78   :  { %v7389_v51 = vsub.f32 %v7370_v39, %v4910_v57  ;;  %v4919_v21 = vmul.f32 %v4915_v32, %v4915_v32  ;;  %6050 = vmatpush3.msra.mxu0 %v5082_v33  ;;  %s5208_s14 = sshll.u32 %s6422_s13, 4  ;;  %s5209_s14 = int_to_ptr.vmem [resolvable:$true] %s5208_s14 }
0x1c79   :  { %v4906_v13 = vpop.xlane.xlu0 %4905  ;;  %s6374_s26 = scalar_lea.vmem %s5209_s14, 512  ;;  %p6379_p8 = scmp.lt.s32.totalorder %s5209_s14, %s5209_s14 }
0x1c7a   :  { %v4912_v34 = vmul.f32 0.03125, %v4906_v13  ;;  %v4925_v17 = vsel %vm181_vm0, %v4919_v21, 0.0  ;;  %v4918_v0 = vmul.f32 %v7389_v51, %v7389_v51  ;;  %p6375_p7 = scmp.ne.s32.totalorder %s5209_s14, %s6374_s26  ;;  %p6380_p9 = scmp.lt.s32.totalorder %s6374_s26, %s6374_s26 }
0x1c7b   :  { %4926 = vadd.xlane.f32.xlu1 %v4925_v17 }
0x1c7c   :  { %v4916_v44 = vsub.f32 %v7378_v38, %v4912_v34  ;;  %v4922_v46 = vsel %vm181_vm0, %v4918_v0, 0.0  ;;  %p6381_p10 = por %p6380_p9, %p6379_p8 }
0x1c7d   :  { %4923 = vadd.xlane.f32.xlu0 %v4922_v46  ;;  %v4909_v37 = vpop.xlane.xlu0 %4908 }
0x1c7e   :  { %v4913_v47 = vmul.f32 0.03125, %v4909_v37  ;;  %v4920_v48 = vmul.f32 %v4916_v44, %v4916_v44  ;;  %p6382_p11 = pnand %p6381_p10, %p6375_p7 }
0x1c80   :  { %v7397_v49 = vsub.f32 %v7381_v8, %v4913_v47  ;;  %v4928_v50 = vsel %vm181_vm0, %v4920_v48, 0.0  ;;  %v5394_v48 = vld [vmem:[#allocation2] ss:$0 sm:$0xff] }
0x1c81   :  { %4929 = vadd.xlane.f32.xlu0 %v4928_v50 }
0x1c82   :  { %v4921_v22 = vmul.f32 %v7397_v49, %v7397_v49 }
0x1c84   :  { %v4931_v20 = vsel %vm181_vm0, %v4921_v22, 0.0 }
0x1c85   :  { %4932 = vadd.xlane.f32.xlu1 %v4931_v20 }
0x1d04   :  { %v4927_v43 = vpop.xlane.xlu1 %4926 }
0x1d05   :  { %v4935_v40 = vmul.f32 0.03125, %v4927_v43 }
0x1d06   :  { %v4924_v55 = vpop.xlane.xlu0 %4923 }
0x1d07   :  { %v4939_v56 = vadd.f32 1e-05, %v4935_v40  ;;  %v4934_v15 = vmul.f32 0.03125, %v4924_v55 }
0x1d09   :  { %6222 = vrsqrt.f32 %v4939_v56  ;;  %v4938_v58 = vadd.f32 1e-05, %v4934_v15 }
0x1d0a   :  { %v4930_v59 = vpop.xlane.xlu0 %4929 }
0x1d0b   :  { %6224 = vrsqrt.f32 %v4938_v58  ;;  %v4936_v60 = vmul.f32 0.03125, %v4930_v59 }
0x1d0d   :  { %v4940_v61 = vadd.f32 1e-05, %v4936_v60 }
0x1d0e   :  { %v4933_v62 = vpop.xlane.xlu1 %4932 }
0x1d0f   :  { %6226 = vrsqrt.f32 %v4940_v61  ;;  %v4937_v2 = vmul.f32 0.03125, %v4933_v62 }
0x1d11   :  { %v4941_v1 = vadd.f32 1e-05, %v4937_v2 }
0x1d13   :  { %6228 = vrsqrt.f32 %v4941_v1 }
0x1d16   :  { %v6223_v3 = vpop.eup %6222 }
0x1d17   :  { %v4947_v7 = vmul.f32 %v6223_v3, %v4915_v32 }
0x1d18   :  { %v6225_v10 = vpop.eup %6224 }
0x1d19   :  { %v4946_v29 = vmul.f32 %v6225_v10, %v7389_v51  ;;  %v4957_v11 = vmul.f32 %v5387_v9, %v4947_v7 }
0x1d1b   :  { %v4956_v36 = vmul.f32 %v5387_v9, %v4946_v29  ;;  %v4967_v42 = vadd.f32 %v5388_v27, %v4957_v11 }
0x1d1c   :  { %v6227_v19 = vpop.eup %6226 }
0x1d1d   :  { %v4966_v6 = vadd.f32 %v5388_v27, %v4956_v36  ;;  %v4948_v35 = vmul.f32 %v6227_v19, %v4916_v44 }
0x1d1f   :  { %6029 = vmatprep.mubr.msk.f32.mxu1 %vm181_vm0, %v4966_v6  ;;  %v4958_v25 = vmul.f32 %v5387_v9, %v4948_v35 }
0x1d20   :  { %v6229_v45 = vpop.eup %6228  ;;  %6030 = vmatmul.mubr.msk.f32.vlgmr.msra.gmra.mxu1 %vm181_vm0, %v4967_v42 }
0x1d21   :  { %v4968_v63 = vadd.f32 %v5388_v27, %v4958_v25  ;;  %v4949_v28 = vmul.f32 %v6229_v45, %v7397_v49 }
0x1d23   :  { %6032 = vmatprep.mubr.msk.f32.mxu1 %vm181_vm0, %v4968_v63  ;;  %v4959_v30 = vmul.f32 %v5387_v9, %v4949_v28 }
0x1d25   :  { %v4969_v4 = vadd.f32 %v5388_v27, %v4959_v30 }
0x1d27   :  { %6033 = vmatmul.mubr.msk.f32.gmra.mxu1 %vm181_vm0, %v4969_v4 }
0x1de0   :  { %v6031_v32 = vpop.f32.mrf.mxu1 }
0x1de1   :  { %v5065_v57 = vadd.f32 %v6031_v32, %v5389_v31 }
0x1de2   :  { %v5059_v51 = vpop.f32.mrf.mxu1 }
0x1de3   :  { %v5060_v21 = vadd.f32 %v5389_v31, %v5059_v51  ;;  %v5079_v34 = vmax.f32 %v5065_v57, 0.0 }
0x1de5   :  { %v5078_v13 = vmax.f32 %v5060_v21, 0.0 }
0x1de7   :  { %v6034_v17 = vpop.f32.mrf.mxu1  ;;  %6051 = vmatprep.mubr.msk.f32.mxu0 %vm5097_vm4, %v5078_v13 }
0x1de8   :  { %6052 = vmatmul.mubr.msk.f32.vlgmr.msra.gmra.mxu0 %vm5097_vm4, %v5079_v34  ;;  %v5075_v0 = vadd.f32 %v6034_v17, %v5389_v31 }
0x1de9   :  { %v5069_v44 = vpop.f32.mrf.mxu1 }
0x1dea   :  { %v5070_v46 = vadd.f32 %v5389_v31, %v5069_v44  ;;  %v5081_v47 = vmax.f32 %v5075_v0, 0.0 }
0x1dec   :  { %v5080_v37 = vmax.f32 %v5070_v46, 0.0 }
0x1dee   :  { %6054 = vmatprep.mubr.msk.f32.mxu0 %vm5097_vm4, %v5080_v37 }
0x1def   :  { %6055 = vmatmul.mubr.msk.f32.gmra.mxu0 %vm5097_vm4, %v5081_v47 }
0x1ea8   :  { %v6053_v49 = vpop.f32.mrf.mxu0 }
0x1ea9   :  { %v5182_v50 = vadd.f32 %v6053_v49, %v5394_v48 }
0x1eaa   :  { %v5176_v22 = vpop.f32.mrf.mxu0 }
0x1eab   :  { %v5196_v20 = vadd.f32 %v5182_v50, %v7366_v24  ;;  %v5177_v5 = vadd.f32 %v5394_v48, %v5176_v22 }
0x1ead   :  { %5200 = vst.msk [vmem:[#allocation14 + $0x8] sm:$0xff] %vm181_vm0, %v5196_v20  ;;  %v5195_v23 = vadd.f32 %v5177_v5, %v7370_v39 }
0x1eaf   :  { %5199 = vst.msk [vmem:[#allocation14] sm:$0xff] %vm181_vm0, %v5195_v23  ;;  %v6056_v52 = vpop.f32.mrf.mxu0 }
0x1eb0   :  { %v5192_v53 = vadd.f32 %v6056_v52, %v5394_v48 }
0x1eb1   :  { %v5186_v16 = vpop.f32.mrf.mxu0 }
0x1eb2   :  { %v5198_v14 = vadd.f32 %v5192_v53, %v7381_v8  ;;  %v5187_v18 = vadd.f32 %v5394_v48, %v5186_v16 }
0x1eb4   :  { %5202 = vst.msk [vmem:[#allocation14 + $0x18] sm:$0xff] %vm181_vm0, %v5198_v14  ;;  %v5197_v24 = vadd.f32 %v5187_v18, %v7378_v38 }
0x1eb6   :  { %5201 = vst.msk [vmem:[#allocation14 + $0x10] sm:$0xff] %vm181_vm0, %v5197_v24 }
0x1eb7   :  { %6385 = shalt.err (!%p6382_p11)
}
0x1eb8   :  { %s6423_s2 = smov 128   ;;  %s6424_s10 = smov 8  }
0x1eb9   :  { %5214 = dma.vmem_to_hbm [thread:$0]  %s5209_s14, 512, %s7481_s22, [#allocation4], %s6423_s2, %s6423_s2, %s6424_s10  }
0x1eba   :  { %6402 = dma.done.wait [#allocation4], 512  }
0x1ebb   :  { %6403 = vsyncadd [#allocation4], 4294966784 }
0x1ebc   :  { %5218 = vsyncpa [#allocation3], 1 }
0x1ebd   :  { %5219 = vsyncpa [#allocation6], 1 }
0x1ebe   :  { %5220 = vsyncpa [#allocation9], 1 }
0x1ebf   :  { %5221 = vsyncpa [#allocation12], 1 }
0x1ec0   :  { %5222 = vsyncpa [#allocation4], 1 }

</bundles_post_ra>
